<compile_context>
chip_gen: v7x
topology: tpu7x:2x2x1
jax: 0.10.0
libtpu: 0.0.40
codegen_flags: <defaults>
</compile_context>

<pallas_src>
import math
import jax
import jax.numpy as jnp
from jax import lax
from jax.experimental import pallas as pl
from jax.experimental.pallas import tpu as pltpu

# ----------------------------- model config -----------------------------
TAG_NAMES = ["O", "B-Attack", "I-Attack", "B-Transport", "I-Transport"]
NUM_TAGS = len(TAG_NAMES)
PAD_IDX = 0
VOCAB = 100
VOCAB_PAD = 128       # padded vocab rows -> full 128-lane MXU contraction
EMB_DIM = 32          # stand-in for BERT output dim
LSTM_HIDDEN = 16      # per direction
LSTM_LAYERS = 2
ENC_DIM = 2 * LSTM_HIDDEN   # 32 (== EMB_DIM so layer-0 / layer-1 Wih stack cleanly)
ATTN_HEADS = 4
HEAD_DIM = ENC_DIM // ATTN_HEADS
GATE_DIM = 8 * LSTM_HIDDEN  # 128 fused gate lanes (both directions)

assert EMB_DIM == ENC_DIM, "kernel stacks layer-0/1 input projections; dims must match"


# ----------------------------- fused Pallas kernel -----------------------------
def fused_ee_kernel(tokens_ref, tags_ref, emb_ref,
                    wih_ref, whh_ref, b_ref,
                    wqkv_ref, bqkv_ref, wo_ref, bo_ref,
                    fcw_ref, fcb_ref,
                    out_ref, loss_ref):
    """Whole Model_EE forward (+ masked CE loss) for one small batch, VMEM-resident.

    tokens_ref: [B, T] int32        tags_ref: [B, T] int32
    emb_ref:    [VOCAB_PAD, EMB_DIM]
    wih_ref:    [L, EMB_DIM, 8H]    (fused gate cols: i_f i_b f_f f_b o_f o_b g_f g_b)
    whh_ref:    [L, 2H, 8H]         (block-diagonal per direction)
    b_ref:      [L, 1, 8H]
    wqkv_ref:   [E, 3E]   bqkv_ref: [1, 3E]
    wo_ref:     [E, E]    bo_ref:   [1, E]
    fcw_ref:    [E, C]    fcb_ref:  [1, C]
    out_ref:    [B, T, C]           loss_ref: [1, 1] (SMEM scalar)
    """
    B, T = tokens_ref.shape
    H = LSTM_HIDDEN
    E = ENC_DIM
    G = GATE_DIM
    D = HEAD_DIM
    N = B * T
    f32 = jnp.float32

    tokens = tokens_ref[...]                                             # [B, T] int32
    # additive key-padding mask (0 for real tokens, -1e9 for PAD)
    neg_mask = jnp.where(tokens == PAD_IDX, f32(-1e9), f32(0.0))         # [B, T]

    # ---- 1) embedding lookup (BertTransformer stand-in): one-hot @ table on MXU ----
    vocab_iota = lax.broadcasted_iota(jnp.int32, (B, T, VOCAB_PAD), 2)
    one_hot = (tokens[:, :, None] == vocab_iota).astype(f32)             # [B, T, 128]
    x_flat = jnp.dot(one_hot.reshape(N, VOCAB_PAD), emb_ref[...],
                     preferred_element_type=f32)                         # [N, EMB_DIM]

    # helpers hoisted out of the layer/time loops
    col_iota = lax.broadcasted_iota(jnp.int32, (1, G), 1)
    fwd_cols = (col_iota % (2 * H)) < H                                  # fwd gate columns
    lane_is_fwd = lax.broadcasted_iota(jnp.int32, (B, E), 1) < H         # fwd half of h_cat
    tpos = lax.broadcasted_iota(jnp.int32, (1, T, 1), 1)                 # time positions

    # ---- 2) 2-layer BiLSTM; fwd + bwd fused into ONE 8-step recurrence per layer ----
    for layer in range(LSTM_LAYERS):
        whh = whh_ref[layer]                                             # [2H, 8H]
        # hoisted input projection: ONE matmul covers the whole sequence & both dirs
        gx = jnp.dot(x_flat, wih_ref[layer],
                     preferred_element_type=f32) + b_ref[layer]          # [N, 8H]
        gx3 = gx.reshape(B, T, G)
        # per-step fused gate inputs: fwd slots read time s, bwd slots read time T-1-s.
        # No dependence on h/c -> off the serial critical path.
        g_in = [jnp.where(fwd_cols, gx3[:, s, :], gx3[:, T - 1 - s, :]) for s in range(T)]

        h_cat = jnp.zeros((B, E), f32)        # [h_fwd | h_bwd]
        c_cat = jnp.zeros((B, E), f32)
        h_steps = []
        for s in range(T):                    # static unroll; ONE matmul per step
            g = g_in[s] + jnp.dot(h_cat, whh, preferred_element_type=f32)   # [B, 8H]
            # single sigmoid pass over all six (i, f, o) gates of both directions,
            # with the divide routed to the EUP approx-reciprocal slot
            sig = pl.reciprocal(1.0 + jnp.exp(-g[:, :6 * H]), approx=True)
            i_cat = sig[:, 0:2 * H]
            f_cat = sig[:, 2 * H:4 * H]
            o_cat = sig[:, 4 * H:6 * H]
            ghat = jnp.tanh(g[:, 6 * H:])                                    # both g gates
            c_cat = f_cat * c_cat + i_cat * ghat
            h_cat = o_cat * jnp.tanh(c_cat)
            h_steps.append(h_cat)             # stays in vregs; no scratch stores

        # assemble layer output [B, T, 2H]:
        #   y[:, t, :H] = h_fwd from step t,  y[:, t, H:] = h_bwd from step T-1-t
        y = jnp.zeros((B, T, E), f32)
        for t in range(T):
            y_t = jnp.where(lane_is_fwd, h_steps[t], h_steps[T - 1 - t])     # [B, 2H]
            y = jnp.where(tpos == t, y_t[:, None, :], y)
        x_flat = y.reshape(N, E)
        # lstm_dropout: identity at inference

    enc_flat = x_flat                                                     # [N, E]

    # ---- 3) multi-head self-attention with key-padding mask (heads fused) ----
    qkv = jnp.dot(enc_flat, wqkv_ref[...],
                  preferred_element_type=f32) + bqkv_ref[...]             # [N, 3E]
    q3 = qkv[:, 0:E].reshape(B, T, E)
    k3 = qkv[:, E:2 * E].reshape(B, T, E)
    v3 = qkv[:, 2 * E:3 * E].reshape(B, T, E)

    def split_heads(a3):   # [B, T, E] -> [heads*B, T, D]
        return jnp.stack([a3[:, :, h * D:(h + 1) * D] for h in range(ATTN_HEADS)],
                         axis=0).reshape(ATTN_HEADS * B, T, D)

    qs = split_heads(q3)
    ks = split_heads(k3)
    vs = split_heads(v3)

    scale = 1.0 / math.sqrt(D)
    scores = jnp.einsum('ntd,nsd->nts', qs, ks,
                        preferred_element_type=f32) * scale               # [hB, T, T]
    mask_n = jnp.concatenate([neg_mask] * ATTN_HEADS, axis=0)             # [hB, T]
    scores = scores + mask_n[:, None, :]
    # ONE softmax pass covering all heads; divide via EUP approx reciprocal
    m = jnp.max(scores, axis=-1, keepdims=True)
    e = jnp.exp(scores - m)
    p = e * pl.reciprocal(jnp.sum(e, axis=-1, keepdims=True), approx=True)
    ctx = jnp.einsum('nts,nsd->ntd', p, vs,
                     preferred_element_type=f32)                          # [hB, T, D]

    # output projection folded per head (avoids a minor-dim head concat)
    ctx4 = ctx.reshape(ATTN_HEADS, B, T, D)
    attn = jnp.zeros((N, E), f32)
    for h in range(ATTN_HEADS):
        attn = attn + jnp.dot(ctx4[h].reshape(N, D), wo_ref[h * D:(h + 1) * D, :],
                              preferred_element_type=f32)
    attn = attn + bo_ref[...]                                             # [N, E]
    # attn_dropout: identity at inference

    # ---- 4) Fully_Connected tag head -> logits ----
    logits = jnp.dot(attn, fcw_ref[...],
                     preferred_element_type=f32) + fcb_ref[...]           # [N, C]
    logits3 = logits.reshape(B, T, NUM_TAGS)
    out_ref[...] = logits3

    # ---- 5) fused masked token-level cross-entropy loss -> SMEM scalar ----
    m3 = jnp.max(logits3, axis=-1, keepdims=True)
    lse3 = m3 + jnp.log(jnp.sum(jnp.exp(logits3 - m3), axis=-1, keepdims=True))   # [B,T,1]
    tag_iota = lax.broadcasted_iota(jnp.int32, (B, T, NUM_TAGS), 2)
    picked3 = jnp.sum(jnp.where(tags_ref[...][:, :, None] == tag_iota, logits3, 0.0),
                      axis=-1, keepdims=True)                                     # [B,T,1]
    valid3 = jnp.where(tokens == PAD_IDX, f32(0.0), f32(1.0))[:, :, None]          # [B,T,1]
    nll_sum = jnp.sum((lse3 - picked3) * valid3)
    loss_ref[0, 0] = nll_sum / jnp.maximum(jnp.sum(valid3), 1.0)


# ----------------------------- wrapper -----------------------------
def _spec(shape):
    return pl.BlockSpec(shape, lambda i: (0,) * len(shape))


def model_ee_forward(params, tokens, tags=None):
    B, T = tokens.shape
    tags_in = tags if tags is not None else jnp.zeros_like(tokens)

    ed_out, loss = pl.pallas_call(
        fused_ee_kernel,
        out_shape=(jax.ShapeDtypeStruct((B, T, NUM_TAGS), jnp.float32),
                   jax.ShapeDtypeStruct((1, 1), jnp.float32)),
        grid=(1,),
        in_specs=[_spec((B, T)),
                  _spec((B, T)),
                  _spec((VOCAB_PAD, EMB_DIM)),
                  _spec((LSTM_LAYERS, EMB_DIM, GATE_DIM)),
                  _spec((LSTM_LAYERS, ENC_DIM, GATE_DIM)),
                  _spec((LSTM_LAYERS, 1, GATE_DIM)),
                  _spec((ENC_DIM, 3 * ENC_DIM)),
                  _spec((1, 3 * ENC_DIM)),
                  _spec((ENC_DIM, ENC_DIM)),
                  _spec((1, ENC_DIM)),
                  _spec((ENC_DIM, NUM_TAGS)),
                  _spec((1, NUM_TAGS))],
        out_specs=(_spec((B, T, NUM_TAGS)),
                   pl.BlockSpec(memory_space=pltpu.SMEM)),
        compiler_params=pltpu.CompilerParams(dimension_semantics=("arbitrary",)),
    )(tokens, tags_in, params['emb'],
      params['lstm_wih'], params['lstm_whh'], params['lstm_b'],
      params['wqkv'], params['bqkv'], params['wo'], params['bo'],
      params['fc_w'], params['fc_b'])

    ed_loss = loss[0, 0] if tags is not None else None
    return ed_out, ed_loss


# ----------------------------- parameters -----------------------------
def init_params(key):
    H = LSTM_HIDDEN
    ks = iter(jax.random.split(key, 32))
    p = {}
    p['emb'] = jax.random.normal(next(ks), (VOCAB_PAD, EMB_DIM), jnp.float32) * 0.1

    # Fused-direction LSTM weights.  Gate column layout (each H=16 lanes wide):
    #   [i_f, i_b, f_f, f_b, o_f, o_b, g_f, g_b]   -> 8H = 128 lanes.
    # NOTE: gate order differs from PyTorch's (i, f, g, o); loading real weights
    # would require a column permutation (fine with fresh random init here).
    s = 1.0 / math.sqrt(H)
    p['lstm_wih'] = jax.random.uniform(
        next(ks), (LSTM_LAYERS, EMB_DIM, GATE_DIM), jnp.float32, -s, s)
    p['lstm_b'] = jax.random.uniform(
        next(ks), (LSTM_LAYERS, 1, GATE_DIM), jnp.float32, -s, s)
    # block-diagonal recurrent weights: h_fwd only feeds fwd gate columns, h_bwd bwd ones
    whh = jnp.zeros((LSTM_LAYERS, ENC_DIM, GATE_DIM), jnp.float32)
    for l in range(LSTM_LAYERS):
        for d in range(2):
            for gi in range(4):
                c0 = (2 * gi + d) * H
                blk = jax.random.uniform(next(ks), (H, H), jnp.float32, -s, s)
                whh = whh.at[l, d * H:(d + 1) * H, c0:c0 + H].set(blk)
    p['lstm_whh'] = whh

    sa = 1.0 / math.sqrt(ENC_DIM)
    p['wqkv'] = jax.random.uniform(next(ks), (ENC_DIM, 3 * ENC_DIM), jnp.float32, -sa, sa)
    p['bqkv'] = jnp.zeros((1, 3 * ENC_DIM), jnp.float32)
    p['wo'] = jax.random.uniform(next(ks), (ENC_DIM, ENC_DIM), jnp.float32, -sa, sa)
    p['bo'] = jnp.zeros((1, ENC_DIM), jnp.float32)
    p['fc_w'] = jax.random.uniform(next(ks), (ENC_DIM, NUM_TAGS), jnp.float32, -sa, sa)
    p['fc_b'] = jnp.zeros((1, NUM_TAGS), jnp.float32)
    return p


# ----------------------------- main -----------------------------
if __name__ == "__main__":
    B, T = 2, 8
    key = jax.random.PRNGKey(0)
    k_tok, k_tag, k_par = jax.random.split(key, 3)

    tokens = jax.random.randint(k_tok, (B, T), 1, VOCAB).astype(jnp.int32)
    tokens = tokens.at[1, -2:].set(PAD_IDX)                        # pad tail of sample 1
    tags = jax.random.randint(k_tag, (B, T), 0, NUM_TAGS).astype(jnp.int32)

    params = init_params(k_par)

    fwd = jax.jit(model_ee_forward)
    ed_out, ed_loss = fwd(params, tokens, tags)
    jax.block_until_ready(ed_out)
    jax.block_until_ready(ed_loss)

    assert ed_out.shape == (B, T, NUM_TAGS)
    assert jnp.isfinite(ed_out).all() and jnp.isfinite(ed_loss)
    print("KERNEL_OK")
</pallas_src>

<mosaic_0001>
module attributes {stable_mosaic.version = 11 : i64} {
  func.func @fused_ee_kernel(%arg0: i32, %arg1: memref<2x8xi32, #tpu.memory_space<vmem>>, %arg2: memref<2x8xi32, #tpu.memory_space<vmem>>, %arg3: memref<128x32xf32, #tpu.memory_space<vmem>>, %arg4: memref<2x32x128xf32, #tpu.memory_space<vmem>>, %arg5: memref<2x32x128xf32, #tpu.memory_space<vmem>>, %arg6: memref<2x1x128xf32, #tpu.memory_space<vmem>>, %arg7: memref<32x96xf32, #tpu.memory_space<vmem>>, %arg8: memref<1x96xf32, #tpu.memory_space<vmem>>, %arg9: memref<32x32xf32, #tpu.memory_space<vmem>>, %arg10: memref<1x32xf32, #tpu.memory_space<vmem>>, %arg11: memref<32x5xf32, #tpu.memory_space<vmem>>, %arg12: memref<1x5xf32, #tpu.memory_space<vmem>>, %arg13: memref<2x8x5xf32, #tpu.memory_space<vmem>>, %arg14: memref<1x1xf32, #tpu.memory_space<smem>>) attributes {dimension_semantics = [#tpu.dimension_semantics<arbitrary>], iteration_bounds = array<i64: 1>, scalar_prefetch = 0 : i64, scratch_operands = 0 : i64, tpu.core_type = #tpu.core_type<tc>, window_params = [{pipeline_mode = #tpu.pipeline_mode<synchronous>, transform_indices = @transform_0, window_bounds = array<i64: 2, 8>}, {pipeline_mode = #tpu.pipeline_mode<synchronous>, transform_indices = @transform_1, window_bounds = array<i64: 2, 8>}, {pipeline_mode = #tpu.pipeline_mode<synchronous>, transform_indices = @transform_2, window_bounds = array<i64: 128, 32>}, {pipeline_mode = #tpu.pipeline_mode<synchronous>, transform_indices = @transform_3, window_bounds = array<i64: 2, 32, 128>}, {pipeline_mode = #tpu.pipeline_mode<synchronous>, transform_indices = @transform_4, window_bounds = array<i64: 2, 32, 128>}, {pipeline_mode = #tpu.pipeline_mode<synchronous>, transform_indices = @transform_5, window_bounds = array<i64: 2, 1, 128>}, {pipeline_mode = #tpu.pipeline_mode<synchronous>, transform_indices = @transform_6, window_bounds = array<i64: 32, 96>}, {pipeline_mode = #tpu.pipeline_mode<synchronous>, transform_indices = @transform_7, window_bounds = array<i64: 1, 96>}, {pipeline_mode = #tpu.pipeline_mode<synchronous>, transform_indices = @transform_8, window_bounds = array<i64: 32, 32>}, {pipeline_mode = #tpu.pipeline_mode<synchronous>, transform_indices = @transform_9, window_bounds = array<i64: 1, 32>}, {pipeline_mode = #tpu.pipeline_mode<synchronous>, transform_indices = @transform_10, window_bounds = array<i64: 32, 5>}, {pipeline_mode = #tpu.pipeline_mode<synchronous>, transform_indices = @transform_11, window_bounds = array<i64: 1, 5>}, {pipeline_mode = #tpu.pipeline_mode<synchronous>, transform_indices = @transform_12, window_bounds = array<i64: 2, 8, 5>}, {transform_indices = @transform_13, window_bounds = array<i64: 1, 1>}]} {
    %c0 = arith.constant 0 : index
    %c0_0 = arith.constant 0 : index
    %0 = vector.load %arg1[%c0, %c0_0] : memref<2x8xi32, #tpu.memory_space<vmem>>, vector<2x8xi32>
    %c0_i32 = arith.constant 0 : i32
    %1 = vector.broadcast %c0_i32 : i32 to vector<2x8xi32>
    %2 = arith.cmpi eq, %0, %1 : vector<2x8xi32>
    %cst = arith.constant -1.000000e+09 : f32
    %cst_1 = arith.constant 0.000000e+00 : f32
    %3 = vector.broadcast %cst : f32 to vector<2x8xf32>
    %4 = vector.broadcast %cst_1 : f32 to vector<2x8xf32>
    %5 = arith.select %2, %3, %4 : vector<2x8xi1>, vector<2x8xf32>
    %6 = tpu.iota {dimensions = array<i32: 2>} : vector<2x8x128xi32>
    %7 = vector.shape_cast %0 : vector<2x8xi32> to vector<2x8x1xi32>
    %8 = vector.broadcast %7 : vector<2x8x1xi32> to vector<2x8x128xi32>
    %9 = arith.cmpi eq, %8, %6 : vector<2x8x128xi32>
    %10 = arith.extui %9 : vector<2x8x128xi1> to vector<2x8x128xi32>
    %11 = arith.sitofp %10 : vector<2x8x128xi32> to vector<2x8x128xf32>
    %12 = vector.shape_cast %11 : vector<2x8x128xf32> to vector<16x128xf32>
    %c0_2 = arith.constant 0 : index
    %c0_3 = arith.constant 0 : index
    %13 = vector.load %arg3[%c0_2, %c0_3] : memref<128x32xf32, #tpu.memory_space<vmem>>, vector<128x32xf32>
    %cst_4 = arith.constant dense<0.000000e+00> : vector<16x32xf32>
    %14 = tpu.matmul %12, %13, %cst_4 {dimension_numbers = #tpu.dot_dimension_numbers<[1], [0], [0], [1], [0, 0, 1, 1], [], []>} : vector<16x128xf32>, vector<128x32xf32>, vector<16x32xf32> -> vector<16x32xf32>
    %15 = tpu.iota {dimensions = array<i32: 1>} : vector<1x128xi32>
    %c32_i32 = arith.constant 32 : i32
    %c0_i32_5 = arith.constant 0 : i32
    %16 = arith.cmpi eq, %c32_i32, %c0_i32_5 : i32
    %c1_i32 = arith.constant 1 : i32
    %17 = arith.select %16, %c1_i32, %c32_i32 : i32
    %18 = vector.broadcast %17 : i32 to vector<1x128xi32>
    %19 = arith.remsi %15, %18 : vector<1x128xi32>
    %c0_i32_6 = arith.constant 0 : i32
    %20 = vector.broadcast %c0_i32_6 : i32 to vector<1x128xi32>
    %21 = arith.cmpi ne, %19, %20 : vector<1x128xi32>
    %c0_i32_7 = arith.constant 0 : i32
    %22 = vector.broadcast %c0_i32_7 : i32 to vector<1x128xi32>
    %23 = arith.cmpi slt, %19, %22 : vector<1x128xi32>
    %c0_i32_8 = arith.constant 0 : i32
    %24 = arith.cmpi slt, %17, %c0_i32_8 : i32
    %25 = vector.broadcast %24 : i1 to vector<1x128xi1>
    %26 = vector.broadcast %25 : vector<1x128xi1> to vector<1x128xi1>
    %27 = arith.xori %23, %26 : vector<1x128xi1>
    %28 = arith.andi %27, %21 : vector<1x128xi1>
    %29 = vector.broadcast %17 : i32 to vector<1x128xi32>
    %30 = arith.addi %19, %29 : vector<1x128xi32>
    %31 = arith.select %28, %30, %19 : vector<1x128xi1>, vector<1x128xi32>
    %c16_i32 = arith.constant 16 : i32
    %32 = vector.broadcast %c16_i32 : i32 to vector<1x128xi32>
    %33 = arith.cmpi slt, %31, %32 : vector<1x128xi32>
    %34 = tpu.iota {dimensions = array<i32: 1>} : vector<2x32xi32>
    %c16_i32_9 = arith.constant 16 : i32
    %35 = vector.broadcast %c16_i32_9 : i32 to vector<2x32xi32>
    %36 = arith.cmpi slt, %34, %35 : vector<2x32xi32>
    %37 = tpu.iota {dimensions = array<i32: 1>} : vector<1x8x1xi32>
    %c0_10 = arith.constant 0 : index
    %c0_11 = arith.constant 0 : index
    %c0_12 = arith.constant 0 : index
    %38 = vector.load %arg5[%c0_10, %c0_11, %c0_12] : memref<2x32x128xf32, #tpu.memory_space<vmem>>, vector<1x32x128xf32>
    %39 = vector.shape_cast %38 : vector<1x32x128xf32> to vector<32x128xf32>
    %c0_13 = arith.constant 0 : index
    %c0_14 = arith.constant 0 : index
    %c0_15 = arith.constant 0 : index
    %40 = vector.load %arg4[%c0_13, %c0_14, %c0_15] : memref<2x32x128xf32, #tpu.memory_space<vmem>>, vector<1x32x128xf32>
    %41 = vector.shape_cast %40 : vector<1x32x128xf32> to vector<32x128xf32>
    %cst_16 = arith.constant dense<0.000000e+00> : vector<16x128xf32>
    %42 = tpu.matmul %14, %41, %cst_16 {dimension_numbers = #tpu.dot_dimension_numbers<[1], [0], [0], [1], [0, 0, 1, 1], [], []>} : vector<16x32xf32>, vector<32x128xf32>, vector<16x128xf32> -> vector<16x128xf32>
    %c0_17 = arith.constant 0 : index
    %c0_18 = arith.constant 0 : index
    %c0_19 = arith.constant 0 : index
    %43 = vector.load %arg6[%c0_17, %c0_18, %c0_19] : memref<2x1x128xf32, #tpu.memory_space<vmem>>, vector<1x1x128xf32>
    %44 = vector.shape_cast %43 : vector<1x1x128xf32> to vector<1x128xf32>
    %45 = vector.broadcast %44 : vector<1x128xf32> to vector<16x128xf32>
    %46 = arith.addf %42, %45 : vector<16x128xf32>
    %47 = vector.shape_cast %46 : vector<16x128xf32> to vector<2x8x128xf32>
    %48 = vector.extract_strided_slice %47 {offsets = [0, 0, 0], sizes = [2, 1, 128], strides = [1, 1, 1]} : vector<2x8x128xf32> to vector<2x1x128xf32>
    %49 = vector.shape_cast %48 : vector<2x1x128xf32> to vector<2x128xf32>
    %50 = vector.extract_strided_slice %47 {offsets = [0, 7, 0], sizes = [2, 1, 128], strides = [1, 1, 1]} : vector<2x8x128xf32> to vector<2x1x128xf32>
    %51 = vector.shape_cast %50 : vector<2x1x128xf32> to vector<2x128xf32>
    %52 = vector.shape_cast %33 : vector<1x128xi1> to vector<1x128xi1>
    %53 = vector.broadcast %52 : vector<1x128xi1> to vector<2x128xi1>
    %54 = arith.select %53, %49, %51 : vector<2x128xi1>, vector<2x128xf32>
    %55 = vector.extract_strided_slice %47 {offsets = [0, 1, 0], sizes = [2, 1, 128], strides = [1, 1, 1]} : vector<2x8x128xf32> to vector<2x1x128xf32>
    %56 = vector.shape_cast %55 : vector<2x1x128xf32> to vector<2x128xf32>
    %57 = vector.extract_strided_slice %47 {offsets = [0, 6, 0], sizes = [2, 1, 128], strides = [1, 1, 1]} : vector<2x8x128xf32> to vector<2x1x128xf32>
    %58 = vector.shape_cast %57 : vector<2x1x128xf32> to vector<2x128xf32>
    %59 = vector.shape_cast %33 : vector<1x128xi1> to vector<1x128xi1>
    %60 = vector.broadcast %59 : vector<1x128xi1> to vector<2x128xi1>
    %61 = arith.select %60, %56, %58 : vector<2x128xi1>, vector<2x128xf32>
    %62 = vector.extract_strided_slice %47 {offsets = [0, 2, 0], sizes = [2, 1, 128], strides = [1, 1, 1]} : vector<2x8x128xf32> to vector<2x1x128xf32>
    %63 = vector.shape_cast %62 : vector<2x1x128xf32> to vector<2x128xf32>
    %64 = vector.extract_strided_slice %47 {offsets = [0, 5, 0], sizes = [2, 1, 128], strides = [1, 1, 1]} : vector<2x8x128xf32> to vector<2x1x128xf32>
    %65 = vector.shape_cast %64 : vector<2x1x128xf32> to vector<2x128xf32>
    %66 = vector.shape_cast %33 : vector<1x128xi1> to vector<1x128xi1>
    %67 = vector.broadcast %66 : vector<1x128xi1> to vector<2x128xi1>
    %68 = arith.select %67, %63, %65 : vector<2x128xi1>, vector<2x128xf32>
    %69 = vector.extract_strided_slice %47 {offsets = [0, 3, 0], sizes = [2, 1, 128], strides = [1, 1, 1]} : vector<2x8x128xf32> to vector<2x1x128xf32>
    %70 = vector.shape_cast %69 : vector<2x1x128xf32> to vector<2x128xf32>
    %71 = vector.extract_strided_slice %47 {offsets = [0, 4, 0], sizes = [2, 1, 128], strides = [1, 1, 1]} : vector<2x8x128xf32> to vector<2x1x128xf32>
    %72 = vector.shape_cast %71 : vector<2x1x128xf32> to vector<2x128xf32>
    %73 = vector.shape_cast %33 : vector<1x128xi1> to vector<1x128xi1>
    %74 = vector.broadcast %73 : vector<1x128xi1> to vector<2x128xi1>
    %75 = arith.select %74, %70, %72 : vector<2x128xi1>, vector<2x128xf32>
    %76 = vector.extract_strided_slice %47 {offsets = [0, 4, 0], sizes = [2, 1, 128], strides = [1, 1, 1]} : vector<2x8x128xf32> to vector<2x1x128xf32>
    %77 = vector.shape_cast %76 : vector<2x1x128xf32> to vector<2x128xf32>
    %78 = vector.extract_strided_slice %47 {offsets = [0, 3, 0], sizes = [2, 1, 128], strides = [1, 1, 1]} : vector<2x8x128xf32> to vector<2x1x128xf32>
    %79 = vector.shape_cast %78 : vector<2x1x128xf32> to vector<2x128xf32>
    %80 = vector.shape_cast %33 : vector<1x128xi1> to vector<1x128xi1>
    %81 = vector.broadcast %80 : vector<1x128xi1> to vector<2x128xi1>
    %82 = arith.select %81, %77, %79 : vector<2x128xi1>, vector<2x128xf32>
    %83 = vector.extract_strided_slice %47 {offsets = [0, 5, 0], sizes = [2, 1, 128], strides = [1, 1, 1]} : vector<2x8x128xf32> to vector<2x1x128xf32>
    %84 = vector.shape_cast %83 : vector<2x1x128xf32> to vector<2x128xf32>
    %85 = vector.extract_strided_slice %47 {offsets = [0, 2, 0], sizes = [2, 1, 128], strides = [1, 1, 1]} : vector<2x8x128xf32> to vector<2x1x128xf32>
    %86 = vector.shape_cast %85 : vector<2x1x128xf32> to vector<2x128xf32>
    %87 = vector.shape_cast %33 : vector<1x128xi1> to vector<1x128xi1>
    %88 = vector.broadcast %87 : vector<1x128xi1> to vector<2x128xi1>
    %89 = arith.select %88, %84, %86 : vector<2x128xi1>, vector<2x128xf32>
    %90 = vector.extract_strided_slice %47 {offsets = [0, 6, 0], sizes = [2, 1, 128], strides = [1, 1, 1]} : vector<2x8x128xf32> to vector<2x1x128xf32>
    %91 = vector.shape_cast %90 : vector<2x1x128xf32> to vector<2x128xf32>
    %92 = vector.extract_strided_slice %47 {offsets = [0, 1, 0], sizes = [2, 1, 128], strides = [1, 1, 1]} : vector<2x8x128xf32> to vector<2x1x128xf32>
    %93 = vector.shape_cast %92 : vector<2x1x128xf32> to vector<2x128xf32>
    %94 = vector.shape_cast %33 : vector<1x128xi1> to vector<1x128xi1>
    %95 = vector.broadcast %94 : vector<1x128xi1> to vector<2x128xi1>
    %96 = arith.select %95, %91, %93 : vector<2x128xi1>, vector<2x128xf32>
    %97 = vector.extract_strided_slice %47 {offsets = [0, 7, 0], sizes = [2, 1, 128], strides = [1, 1, 1]} : vector<2x8x128xf32> to vector<2x1x128xf32>
    %98 = vector.shape_cast %97 : vector<2x1x128xf32> to vector<2x128xf32>
    %99 = vector.extract_strided_slice %47 {offsets = [0, 0, 0], sizes = [2, 1, 128], strides = [1, 1, 1]} : vector<2x8x128xf32> to vector<2x1x128xf32>
    %100 = vector.shape_cast %99 : vector<2x1x128xf32> to vector<2x128xf32>
    %101 = vector.shape_cast %33 : vector<1x128xi1> to vector<1x128xi1>
    %102 = vector.broadcast %101 : vector<1x128xi1> to vector<2x128xi1>
    %103 = arith.select %102, %98, %100 : vector<2x128xi1>, vector<2x128xf32>
    %cst_20 = arith.constant 0.000000e+00 : f32
    %104 = vector.broadcast %cst_20 : f32 to vector<2x32xf32>
    %cst_21 = arith.constant 0.000000e+00 : f32
    %105 = vector.broadcast %cst_21 : f32 to vector<2x32xf32>
    %cst_22 = arith.constant dense<0.000000e+00> : vector<2x128xf32>
    %106 = tpu.matmul %104, %39, %cst_22 {dimension_numbers = #tpu.dot_dimension_numbers<[1], [0], [0], [1], [0, 0, 1, 1], [], []>} : vector<2x32xf32>, vector<32x128xf32>, vector<2x128xf32> -> vector<2x128xf32>
    %107 = arith.addf %54, %106 : vector<2x128xf32>
    %108 = vector.extract_strided_slice %107 {offsets = [0, 0], sizes = [2, 96], strides = [1, 1]} : vector<2x128xf32> to vector<2x96xf32>
    %cst_23 = arith.constant 0.000000e+00 : f32
    %109 = vector.broadcast %cst_23 : f32 to vector<2x96xf32>
    %110 = arith.subf %109, %108 : vector<2x96xf32>
    %111 = math.exp %110 : vector<2x96xf32>
    %cst_24 = arith.constant 1.000000e+00 : f32
    %112 = vector.broadcast %cst_24 : f32 to vector<2x96xf32>
    %113 = arith.addf %112, %111 : vector<2x96xf32>
    %114 = tpu.reciprocal %113 {approx = true} : vector<2x96xf32> -> vector<2x96xf32>
    %115 = vector.extract_strided_slice %114 {offsets = [0, 0], sizes = [2, 32], strides = [1, 1]} : vector<2x96xf32> to vector<2x32xf32>
    %116 = vector.extract_strided_slice %114 {offsets = [0, 32], sizes = [2, 32], strides = [1, 1]} : vector<2x96xf32> to vector<2x32xf32>
    %117 = vector.extract_strided_slice %114 {offsets = [0, 64], sizes = [2, 32], strides = [1, 1]} : vector<2x96xf32> to vector<2x32xf32>
    %118 = vector.extract_strided_slice %107 {offsets = [0, 96], sizes = [2, 32], strides = [1, 1]} : vector<2x128xf32> to vector<2x32xf32>
    %119 = math.tanh %118 : vector<2x32xf32>
    %120 = arith.mulf %116, %105 : vector<2x32xf32>
    %121 = arith.mulf %115, %119 : vector<2x32xf32>
    %122 = arith.addf %120, %121 : vector<2x32xf32>
    %123 = math.tanh %122 : vector<2x32xf32>
    %124 = arith.mulf %117, %123 : vector<2x32xf32>
    %cst_25 = arith.constant dense<0.000000e+00> : vector<2x128xf32>
    %125 = tpu.matmul %124, %39, %cst_25 {dimension_numbers = #tpu.dot_dimension_numbers<[1], [0], [0], [1], [0, 0, 1, 1], [], []>} : vector<2x32xf32>, vector<32x128xf32>, vector<2x128xf32> -> vector<2x128xf32>
    %126 = arith.addf %61, %125 : vector<2x128xf32>
    %127 = vector.extract_strided_slice %126 {offsets = [0, 0], sizes = [2, 96], strides = [1, 1]} : vector<2x128xf32> to vector<2x96xf32>
    %cst_26 = arith.constant 0.000000e+00 : f32
    %128 = vector.broadcast %cst_26 : f32 to vector<2x96xf32>
    %129 = arith.subf %128, %127 : vector<2x96xf32>
    %130 = math.exp %129 : vector<2x96xf32>
    %cst_27 = arith.constant 1.000000e+00 : f32
    %131 = vector.broadcast %cst_27 : f32 to vector<2x96xf32>
    %132 = arith.addf %131, %130 : vector<2x96xf32>
    %133 = tpu.reciprocal %132 {approx = true} : vector<2x96xf32> -> vector<2x96xf32>
    %134 = vector.extract_strided_slice %133 {offsets = [0, 0], sizes = [2, 32], strides = [1, 1]} : vector<2x96xf32> to vector<2x32xf32>
    %135 = vector.extract_strided_slice %133 {offsets = [0, 32], sizes = [2, 32], strides = [1, 1]} : vector<2x96xf32> to vector<2x32xf32>
    %136 = vector.extract_strided_slice %133 {offsets = [0, 64], sizes = [2, 32], strides = [1, 1]} : vector<2x96xf32> to vector<2x32xf32>
    %137 = vector.extract_strided_slice %126 {offsets = [0, 96], sizes = [2, 32], strides = [1, 1]} : vector<2x128xf32> to vector<2x32xf32>
    %138 = math.tanh %137 : vector<2x32xf32>
    %139 = arith.mulf %135, %122 : vector<2x32xf32>
    %140 = arith.mulf %134, %138 : vector<2x32xf32>
    %141 = arith.addf %139, %140 : vector<2x32xf32>
    %142 = math.tanh %141 : vector<2x32xf32>
    %143 = arith.mulf %136, %142 : vector<2x32xf32>
    %cst_28 = arith.constant dense<0.000000e+00> : vector<2x128xf32>
    %144 = tpu.matmul %143, %39, %cst_28 {dimension_numbers = #tpu.dot_dimension_numbers<[1], [0], [0], [1], [0, 0, 1, 1], [], []>} : vector<2x32xf32>, vector<32x128xf32>, vector<2x128xf32> -> vector<2x128xf32>
    %145 = arith.addf %68, %144 : vector<2x128xf32>
    %146 = vector.extract_strided_slice %145 {offsets = [0, 0], sizes = [2, 96], strides = [1, 1]} : vector<2x128xf32> to vector<2x96xf32>
    %cst_29 = arith.constant 0.000000e+00 : f32
    %147 = vector.broadcast %cst_29 : f32 to vector<2x96xf32>
    %148 = arith.subf %147, %146 : vector<2x96xf32>
    %149 = math.exp %148 : vector<2x96xf32>
    %cst_30 = arith.constant 1.000000e+00 : f32
    %150 = vector.broadcast %cst_30 : f32 to vector<2x96xf32>
    %151 = arith.addf %150, %149 : vector<2x96xf32>
    %152 = tpu.reciprocal %151 {approx = true} : vector<2x96xf32> -> vector<2x96xf32>
    %153 = vector.extract_strided_slice %152 {offsets = [0, 0], sizes = [2, 32], strides = [1, 1]} : vector<2x96xf32> to vector<2x32xf32>
    %154 = vector.extract_strided_slice %152 {offsets = [0, 32], sizes = [2, 32], strides = [1, 1]} : vector<2x96xf32> to vector<2x32xf32>
    %155 = vector.extract_strided_slice %152 {offsets = [0, 64], sizes = [2, 32], strides = [1, 1]} : vector<2x96xf32> to vector<2x32xf32>
    %156 = vector.extract_strided_slice %145 {offsets = [0, 96], sizes = [2, 32], strides = [1, 1]} : vector<2x128xf32> to vector<2x32xf32>
    %157 = math.tanh %156 : vector<2x32xf32>
    %158 = arith.mulf %154, %141 : vector<2x32xf32>
    %159 = arith.mulf %153, %157 : vector<2x32xf32>
    %160 = arith.addf %158, %159 : vector<2x32xf32>
    %161 = math.tanh %160 : vector<2x32xf32>
    %162 = arith.mulf %155, %161 : vector<2x32xf32>
    %cst_31 = arith.constant dense<0.000000e+00> : vector<2x128xf32>
    %163 = tpu.matmul %162, %39, %cst_31 {dimension_numbers = #tpu.dot_dimension_numbers<[1], [0], [0], [1], [0, 0, 1, 1], [], []>} : vector<2x32xf32>, vector<32x128xf32>, vector<2x128xf32> -> vector<2x128xf32>
    %164 = arith.addf %75, %163 : vector<2x128xf32>
    %165 = vector.extract_strided_slice %164 {offsets = [0, 0], sizes = [2, 96], strides = [1, 1]} : vector<2x128xf32> to vector<2x96xf32>
    %cst_32 = arith.constant 0.000000e+00 : f32
    %166 = vector.broadcast %cst_32 : f32 to vector<2x96xf32>
    %167 = arith.subf %166, %165 : vector<2x96xf32>
    %168 = math.exp %167 : vector<2x96xf32>
    %cst_33 = arith.constant 1.000000e+00 : f32
    %169 = vector.broadcast %cst_33 : f32 to vector<2x96xf32>
    %170 = arith.addf %169, %168 : vector<2x96xf32>
    %171 = tpu.reciprocal %170 {approx = true} : vector<2x96xf32> -> vector<2x96xf32>
    %172 = vector.extract_strided_slice %171 {offsets = [0, 0], sizes = [2, 32], strides = [1, 1]} : vector<2x96xf32> to vector<2x32xf32>
    %173 = vector.extract_strided_slice %171 {offsets = [0, 32], sizes = [2, 32], strides = [1, 1]} : vector<2x96xf32> to vector<2x32xf32>
    %174 = vector.extract_strided_slice %171 {offsets = [0, 64], sizes = [2, 32], strides = [1, 1]} : vector<2x96xf32> to vector<2x32xf32>
    %175 = vector.extract_strided_slice %164 {offsets = [0, 96], sizes = [2, 32], strides = [1, 1]} : vector<2x128xf32> to vector<2x32xf32>
    %176 = math.tanh %175 : vector<2x32xf32>
    %177 = arith.mulf %173, %160 : vector<2x32xf32>
    %178 = arith.mulf %172, %176 : vector<2x32xf32>
    %179 = arith.addf %177, %178 : vector<2x32xf32>
    %180 = math.tanh %179 : vector<2x32xf32>
    %181 = arith.mulf %174, %180 : vector<2x32xf32>
    %cst_34 = arith.constant dense<0.000000e+00> : vector<2x128xf32>
    %182 = tpu.matmul %181, %39, %cst_34 {dimension_numbers = #tpu.dot_dimension_numbers<[1], [0], [0], [1], [0, 0, 1, 1], [], []>} : vector<2x32xf32>, vector<32x128xf32>, vector<2x128xf32> -> vector<2x128xf32>
    %183 = arith.addf %82, %182 : vector<2x128xf32>
    %184 = vector.extract_strided_slice %183 {offsets = [0, 0], sizes = [2, 96], strides = [1, 1]} : vector<2x128xf32> to vector<2x96xf32>
    %cst_35 = arith.constant 0.000000e+00 : f32
    %185 = vector.broadcast %cst_35 : f32 to vector<2x96xf32>
    %186 = arith.subf %185, %184 : vector<2x96xf32>
    %187 = math.exp %186 : vector<2x96xf32>
    %cst_36 = arith.constant 1.000000e+00 : f32
    %188 = vector.broadcast %cst_36 : f32 to vector<2x96xf32>
    %189 = arith.addf %188, %187 : vector<2x96xf32>
    %190 = tpu.reciprocal %189 {approx = true} : vector<2x96xf32> -> vector<2x96xf32>
    %191 = vector.extract_strided_slice %190 {offsets = [0, 0], sizes = [2, 32], strides = [1, 1]} : vector<2x96xf32> to vector<2x32xf32>
    %192 = vector.extract_strided_slice %190 {offsets = [0, 32], sizes = [2, 32], strides = [1, 1]} : vector<2x96xf32> to vector<2x32xf32>
    %193 = vector.extract_strided_slice %190 {offsets = [0, 64], sizes = [2, 32], strides = [1, 1]} : vector<2x96xf32> to vector<2x32xf32>
    %194 = vector.extract_strided_slice %183 {offsets = [0, 96], sizes = [2, 32], strides = [1, 1]} : vector<2x128xf32> to vector<2x32xf32>
    %195 = math.tanh %194 : vector<2x32xf32>
    %196 = arith.mulf %192, %179 : vector<2x32xf32>
    %197 = arith.mulf %191, %195 : vector<2x32xf32>
    %198 = arith.addf %196, %197 : vector<2x32xf32>
    %199 = math.tanh %198 : vector<2x32xf32>
    %200 = arith.mulf %193, %199 : vector<2x32xf32>
    %cst_37 = arith.constant dense<0.000000e+00> : vector<2x128xf32>
    %201 = tpu.matmul %200, %39, %cst_37 {dimension_numbers = #tpu.dot_dimension_numbers<[1], [0], [0], [1], [0, 0, 1, 1], [], []>} : vector<2x32xf32>, vector<32x128xf32>, vector<2x128xf32> -> vector<2x128xf32>
    %202 = arith.addf %89, %201 : vector<2x128xf32>
    %203 = vector.extract_strided_slice %202 {offsets = [0, 0], sizes = [2, 96], strides = [1, 1]} : vector<2x128xf32> to vector<2x96xf32>
    %cst_38 = arith.constant 0.000000e+00 : f32
    %204 = vector.broadcast %cst_38 : f32 to vector<2x96xf32>
    %205 = arith.subf %204, %203 : vector<2x96xf32>
    %206 = math.exp %205 : vector<2x96xf32>
    %cst_39 = arith.constant 1.000000e+00 : f32
    %207 = vector.broadcast %cst_39 : f32 to vector<2x96xf32>
    %208 = arith.addf %207, %206 : vector<2x96xf32>
    %209 = tpu.reciprocal %208 {approx = true} : vector<2x96xf32> -> vector<2x96xf32>
    %210 = vector.extract_strided_slice %209 {offsets = [0, 0], sizes = [2, 32], strides = [1, 1]} : vector<2x96xf32> to vector<2x32xf32>
    %211 = vector.extract_strided_slice %209 {offsets = [0, 32], sizes = [2, 32], strides = [1, 1]} : vector<2x96xf32> to vector<2x32xf32>
    %212 = vector.extract_strided_slice %209 {offsets = [0, 64], sizes = [2, 32], strides = [1, 1]} : vector<2x96xf32> to vector<2x32xf32>
    %213 = vector.extract_strided_slice %202 {offsets = [0, 96], sizes = [2, 32], strides = [1, 1]} : vector<2x128xf32> to vector<2x32xf32>
    %214 = math.tanh %213 : vector<2x32xf32>
    %215 = arith.mulf %211, %198 : vector<2x32xf32>
    %216 = arith.mulf %210, %214 : vector<2x32xf32>
    %217 = arith.addf %215, %216 : vector<2x32xf32>
    %218 = math.tanh %217 : vector<2x32xf32>
    %219 = arith.mulf %212, %218 : vector<2x32xf32>
    %cst_40 = arith.constant dense<0.000000e+00> : vector<2x128xf32>
    %220 = tpu.matmul %219, %39, %cst_40 {dimension_numbers = #tpu.dot_dimension_numbers<[1], [0], [0], [1], [0, 0, 1, 1], [], []>} : vector<2x32xf32>, vector<32x128xf32>, vector<2x128xf32> -> vector<2x128xf32>
    %221 = arith.addf %96, %220 : vector<2x128xf32>
    %222 = vector.extract_strided_slice %221 {offsets = [0, 0], sizes = [2, 96], strides = [1, 1]} : vector<2x128xf32> to vector<2x96xf32>
    %cst_41 = arith.constant 0.000000e+00 : f32
    %223 = vector.broadcast %cst_41 : f32 to vector<2x96xf32>
    %224 = arith.subf %223, %222 : vector<2x96xf32>
    %225 = math.exp %224 : vector<2x96xf32>
    %cst_42 = arith.constant 1.000000e+00 : f32
    %226 = vector.broadcast %cst_42 : f32 to vector<2x96xf32>
    %227 = arith.addf %226, %225 : vector<2x96xf32>
    %228 = tpu.reciprocal %227 {approx = true} : vector<2x96xf32> -> vector<2x96xf32>
    %229 = vector.extract_strided_slice %228 {offsets = [0, 0], sizes = [2, 32], strides = [1, 1]} : vector<2x96xf32> to vector<2x32xf32>
    %230 = vector.extract_strided_slice %228 {offsets = [0, 32], sizes = [2, 32], strides = [1, 1]} : vector<2x96xf32> to vector<2x32xf32>
    %231 = vector.extract_strided_slice %228 {offsets = [0, 64], sizes = [2, 32], strides = [1, 1]} : vector<2x96xf32> to vector<2x32xf32>
    %232 = vector.extract_strided_slice %221 {offsets = [0, 96], sizes = [2, 32], strides = [1, 1]} : vector<2x128xf32> to vector<2x32xf32>
    %233 = math.tanh %232 : vector<2x32xf32>
    %234 = arith.mulf %230, %217 : vector<2x32xf32>
    %235 = arith.mulf %229, %233 : vector<2x32xf32>
    %236 = arith.addf %234, %235 : vector<2x32xf32>
    %237 = math.tanh %236 : vector<2x32xf32>
    %238 = arith.mulf %231, %237 : vector<2x32xf32>
    %cst_43 = arith.constant dense<0.000000e+00> : vector<2x128xf32>
    %239 = tpu.matmul %238, %39, %cst_43 {dimension_numbers = #tpu.dot_dimension_numbers<[1], [0], [0], [1], [0, 0, 1, 1], [], []>} : vector<2x32xf32>, vector<32x128xf32>, vector<2x128xf32> -> vector<2x128xf32>
    %240 = arith.addf %103, %239 : vector<2x128xf32>
    %241 = vector.extract_strided_slice %240 {offsets = [0, 0], sizes = [2, 96], strides = [1, 1]} : vector<2x128xf32> to vector<2x96xf32>
    %cst_44 = arith.constant 0.000000e+00 : f32
    %242 = vector.broadcast %cst_44 : f32 to vector<2x96xf32>
    %243 = arith.subf %242, %241 : vector<2x96xf32>
    %244 = math.exp %243 : vector<2x96xf32>
    %cst_45 = arith.constant 1.000000e+00 : f32
    %245 = vector.broadcast %cst_45 : f32 to vector<2x96xf32>
    %246 = arith.addf %245, %244 : vector<2x96xf32>
    %247 = tpu.reciprocal %246 {approx = true} : vector<2x96xf32> -> vector<2x96xf32>
    %248 = vector.extract_strided_slice %247 {offsets = [0, 0], sizes = [2, 32], strides = [1, 1]} : vector<2x96xf32> to vector<2x32xf32>
    %249 = vector.extract_strided_slice %247 {offsets = [0, 32], sizes = [2, 32], strides = [1, 1]} : vector<2x96xf32> to vector<2x32xf32>
    %250 = vector.extract_strided_slice %247 {offsets = [0, 64], sizes = [2, 32], strides = [1, 1]} : vector<2x96xf32> to vector<2x32xf32>
    %251 = vector.extract_strided_slice %240 {offsets = [0, 96], sizes = [2, 32], strides = [1, 1]} : vector<2x128xf32> to vector<2x32xf32>
    %252 = math.tanh %251 : vector<2x32xf32>
    %253 = arith.mulf %249, %236 : vector<2x32xf32>
    %254 = arith.mulf %248, %252 : vector<2x32xf32>
    %255 = arith.addf %253, %254 : vector<2x32xf32>
    %256 = math.tanh %255 : vector<2x32xf32>
    %257 = arith.mulf %250, %256 : vector<2x32xf32>
    %cst_46 = arith.constant 0.000000e+00 : f32
    %258 = vector.broadcast %cst_46 : f32 to vector<2x8x32xf32>
    %259 = arith.select %36, %124, %257 : vector<2x32xi1>, vector<2x32xf32>
    %c0_i32_47 = arith.constant 0 : i32
    %260 = vector.broadcast %c0_i32_47 : i32 to vector<1x8x1xi32>
    %261 = arith.cmpi eq, %37, %260 : vector<1x8x1xi32>
    %262 = vector.shape_cast %259 : vector<2x32xf32> to vector<2x1x32xf32>
    %263 = vector.shape_cast %261 : vector<1x8x1xi1> to vector<1x8x1xi1>
    %264 = vector.broadcast %263 : vector<1x8x1xi1> to vector<2x8x32xi1>
    %265 = vector.shape_cast %262 : vector<2x1x32xf32> to vector<2x1x32xf32>
    %266 = vector.broadcast %265 : vector<2x1x32xf32> to vector<2x8x32xf32>
    %267 = arith.select %264, %266, %258 : vector<2x8x32xi1>, vector<2x8x32xf32>
    %268 = arith.select %36, %143, %238 : vector<2x32xi1>, vector<2x32xf32>
    %c1_i32_48 = arith.constant 1 : i32
    %269 = vector.broadcast %c1_i32_48 : i32 to vector<1x8x1xi32>
    %270 = arith.cmpi eq, %37, %269 : vector<1x8x1xi32>
    %271 = vector.shape_cast %268 : vector<2x32xf32> to vector<2x1x32xf32>
    %272 = vector.shape_cast %270 : vector<1x8x1xi1> to vector<1x8x1xi1>
    %273 = vector.broadcast %272 : vector<1x8x1xi1> to vector<2x8x32xi1>
    %274 = vector.shape_cast %271 : vector<2x1x32xf32> to vector<2x1x32xf32>
    %275 = vector.broadcast %274 : vector<2x1x32xf32> to vector<2x8x32xf32>
    %276 = arith.select %273, %275, %267 : vector<2x8x32xi1>, vector<2x8x32xf32>
    %277 = arith.select %36, %162, %219 : vector<2x32xi1>, vector<2x32xf32>
    %c2_i32 = arith.constant 2 : i32
    %278 = vector.broadcast %c2_i32 : i32 to vector<1x8x1xi32>
    %279 = arith.cmpi eq, %37, %278 : vector<1x8x1xi32>
    %280 = vector.shape_cast %277 : vector<2x32xf32> to vector<2x1x32xf32>
    %281 = vector.shape_cast %279 : vector<1x8x1xi1> to vector<1x8x1xi1>
    %282 = vector.broadcast %281 : vector<1x8x1xi1> to vector<2x8x32xi1>
    %283 = vector.shape_cast %280 : vector<2x1x32xf32> to vector<2x1x32xf32>
    %284 = vector.broadcast %283 : vector<2x1x32xf32> to vector<2x8x32xf32>
    %285 = arith.select %282, %284, %276 : vector<2x8x32xi1>, vector<2x8x32xf32>
    %286 = arith.select %36, %181, %200 : vector<2x32xi1>, vector<2x32xf32>
    %c3_i32 = arith.constant 3 : i32
    %287 = vector.broadcast %c3_i32 : i32 to vector<1x8x1xi32>
    %288 = arith.cmpi eq, %37, %287 : vector<1x8x1xi32>
    %289 = vector.shape_cast %286 : vector<2x32xf32> to vector<2x1x32xf32>
    %290 = vector.shape_cast %288 : vector<1x8x1xi1> to vector<1x8x1xi1>
    %291 = vector.broadcast %290 : vector<1x8x1xi1> to vector<2x8x32xi1>
    %292 = vector.shape_cast %289 : vector<2x1x32xf32> to vector<2x1x32xf32>
    %293 = vector.broadcast %292 : vector<2x1x32xf32> to vector<2x8x32xf32>
    %294 = arith.select %291, %293, %285 : vector<2x8x32xi1>, vector<2x8x32xf32>
    %295 = arith.select %36, %200, %181 : vector<2x32xi1>, vector<2x32xf32>
    %c4_i32 = arith.constant 4 : i32
    %296 = vector.broadcast %c4_i32 : i32 to vector<1x8x1xi32>
    %297 = arith.cmpi eq, %37, %296 : vector<1x8x1xi32>
    %298 = vector.shape_cast %295 : vector<2x32xf32> to vector<2x1x32xf32>
    %299 = vector.shape_cast %297 : vector<1x8x1xi1> to vector<1x8x1xi1>
    %300 = vector.broadcast %299 : vector<1x8x1xi1> to vector<2x8x32xi1>
    %301 = vector.shape_cast %298 : vector<2x1x32xf32> to vector<2x1x32xf32>
    %302 = vector.broadcast %301 : vector<2x1x32xf32> to vector<2x8x32xf32>
    %303 = arith.select %300, %302, %294 : vector<2x8x32xi1>, vector<2x8x32xf32>
    %304 = arith.select %36, %219, %162 : vector<2x32xi1>, vector<2x32xf32>
    %c5_i32 = arith.constant 5 : i32
    %305 = vector.broadcast %c5_i32 : i32 to vector<1x8x1xi32>
    %306 = arith.cmpi eq, %37, %305 : vector<1x8x1xi32>
    %307 = vector.shape_cast %304 : vector<2x32xf32> to vector<2x1x32xf32>
    %308 = vector.shape_cast %306 : vector<1x8x1xi1> to vector<1x8x1xi1>
    %309 = vector.broadcast %308 : vector<1x8x1xi1> to vector<2x8x32xi1>
    %310 = vector.shape_cast %307 : vector<2x1x32xf32> to vector<2x1x32xf32>
    %311 = vector.broadcast %310 : vector<2x1x32xf32> to vector<2x8x32xf32>
    %312 = arith.select %309, %311, %303 : vector<2x8x32xi1>, vector<2x8x32xf32>
    %313 = arith.select %36, %238, %143 : vector<2x32xi1>, vector<2x32xf32>
    %c6_i32 = arith.constant 6 : i32
    %314 = vector.broadcast %c6_i32 : i32 to vector<1x8x1xi32>
    %315 = arith.cmpi eq, %37, %314 : vector<1x8x1xi32>
    %316 = vector.shape_cast %313 : vector<2x32xf32> to vector<2x1x32xf32>
    %317 = vector.shape_cast %315 : vector<1x8x1xi1> to vector<1x8x1xi1>
    %318 = vector.broadcast %317 : vector<1x8x1xi1> to vector<2x8x32xi1>
    %319 = vector.shape_cast %316 : vector<2x1x32xf32> to vector<2x1x32xf32>
    %320 = vector.broadcast %319 : vector<2x1x32xf32> to vector<2x8x32xf32>
    %321 = arith.select %318, %320, %312 : vector<2x8x32xi1>, vector<2x8x32xf32>
    %322 = arith.select %36, %257, %124 : vector<2x32xi1>, vector<2x32xf32>
    %c7_i32 = arith.constant 7 : i32
    %323 = vector.broadcast %c7_i32 : i32 to vector<1x8x1xi32>
    %324 = arith.cmpi eq, %37, %323 : vector<1x8x1xi32>
    %325 = vector.shape_cast %322 : vector<2x32xf32> to vector<2x1x32xf32>
    %326 = vector.shape_cast %324 : vector<1x8x1xi1> to vector<1x8x1xi1>
    %327 = vector.broadcast %326 : vector<1x8x1xi1> to vector<2x8x32xi1>
    %328 = vector.shape_cast %325 : vector<2x1x32xf32> to vector<2x1x32xf32>
    %329 = vector.broadcast %328 : vector<2x1x32xf32> to vector<2x8x32xf32>
    %330 = arith.select %327, %329, %321 : vector<2x8x32xi1>, vector<2x8x32xf32>
    %331 = vector.shape_cast %330 : vector<2x8x32xf32> to vector<16x32xf32>
    %c1 = arith.constant 1 : index
    %c0_49 = arith.constant 0 : index
    %c0_50 = arith.constant 0 : index
    %332 = vector.load %arg5[%c1, %c0_49, %c0_50] : memref<2x32x128xf32, #tpu.memory_space<vmem>>, vector<1x32x128xf32>
    %333 = vector.shape_cast %332 : vector<1x32x128xf32> to vector<32x128xf32>
    %c1_51 = arith.constant 1 : index
    %c0_52 = arith.constant 0 : index
    %c0_53 = arith.constant 0 : index
    %334 = vector.load %arg4[%c1_51, %c0_52, %c0_53] : memref<2x32x128xf32, #tpu.memory_space<vmem>>, vector<1x32x128xf32>
    %335 = vector.shape_cast %334 : vector<1x32x128xf32> to vector<32x128xf32>
    %cst_54 = arith.constant dense<0.000000e+00> : vector<16x128xf32>
    %336 = tpu.matmul %331, %335, %cst_54 {dimension_numbers = #tpu.dot_dimension_numbers<[1], [0], [0], [1], [0, 0, 1, 1], [], []>} : vector<16x32xf32>, vector<32x128xf32>, vector<16x128xf32> -> vector<16x128xf32>
    %c1_55 = arith.constant 1 : index
    %c0_56 = arith.constant 0 : index
    %c0_57 = arith.constant 0 : index
    %337 = vector.load %arg6[%c1_55, %c0_56, %c0_57] : memref<2x1x128xf32, #tpu.memory_space<vmem>>, vector<1x1x128xf32>
    %338 = vector.shape_cast %337 : vector<1x1x128xf32> to vector<1x128xf32>
    %339 = vector.broadcast %338 : vector<1x128xf32> to vector<16x128xf32>
    %340 = arith.addf %336, %339 : vector<16x128xf32>
    %341 = vector.shape_cast %340 : vector<16x128xf32> to vector<2x8x128xf32>
    %342 = vector.extract_strided_slice %341 {offsets = [0, 0, 0], sizes = [2, 1, 128], strides = [1, 1, 1]} : vector<2x8x128xf32> to vector<2x1x128xf32>
    %343 = vector.shape_cast %342 : vector<2x1x128xf32> to vector<2x128xf32>
    %344 = vector.extract_strided_slice %341 {offsets = [0, 7, 0], sizes = [2, 1, 128], strides = [1, 1, 1]} : vector<2x8x128xf32> to vector<2x1x128xf32>
    %345 = vector.shape_cast %344 : vector<2x1x128xf32> to vector<2x128xf32>
    %346 = vector.shape_cast %33 : vector<1x128xi1> to vector<1x128xi1>
    %347 = vector.broadcast %346 : vector<1x128xi1> to vector<2x128xi1>
    %348 = arith.select %347, %343, %345 : vector<2x128xi1>, vector<2x128xf32>
    %349 = vector.extract_strided_slice %341 {offsets = [0, 1, 0], sizes = [2, 1, 128], strides = [1, 1, 1]} : vector<2x8x128xf32> to vector<2x1x128xf32>
    %350 = vector.shape_cast %349 : vector<2x1x128xf32> to vector<2x128xf32>
    %351 = vector.extract_strided_slice %341 {offsets = [0, 6, 0], sizes = [2, 1, 128], strides = [1, 1, 1]} : vector<2x8x128xf32> to vector<2x1x128xf32>
    %352 = vector.shape_cast %351 : vector<2x1x128xf32> to vector<2x128xf32>
    %353 = vector.shape_cast %33 : vector<1x128xi1> to vector<1x128xi1>
    %354 = vector.broadcast %353 : vector<1x128xi1> to vector<2x128xi1>
    %355 = arith.select %354, %350, %352 : vector<2x128xi1>, vector<2x128xf32>
    %356 = vector.extract_strided_slice %341 {offsets = [0, 2, 0], sizes = [2, 1, 128], strides = [1, 1, 1]} : vector<2x8x128xf32> to vector<2x1x128xf32>
    %357 = vector.shape_cast %356 : vector<2x1x128xf32> to vector<2x128xf32>
    %358 = vector.extract_strided_slice %341 {offsets = [0, 5, 0], sizes = [2, 1, 128], strides = [1, 1, 1]} : vector<2x8x128xf32> to vector<2x1x128xf32>
    %359 = vector.shape_cast %358 : vector<2x1x128xf32> to vector<2x128xf32>
    %360 = vector.shape_cast %33 : vector<1x128xi1> to vector<1x128xi1>
    %361 = vector.broadcast %360 : vector<1x128xi1> to vector<2x128xi1>
    %362 = arith.select %361, %357, %359 : vector<2x128xi1>, vector<2x128xf32>
    %363 = vector.extract_strided_slice %341 {offsets = [0, 3, 0], sizes = [2, 1, 128], strides = [1, 1, 1]} : vector<2x8x128xf32> to vector<2x1x128xf32>
    %364 = vector.shape_cast %363 : vector<2x1x128xf32> to vector<2x128xf32>
    %365 = vector.extract_strided_slice %341 {offsets = [0, 4, 0], sizes = [2, 1, 128], strides = [1, 1, 1]} : vector<2x8x128xf32> to vector<2x1x128xf32>
    %366 = vector.shape_cast %365 : vector<2x1x128xf32> to vector<2x128xf32>
    %367 = vector.shape_cast %33 : vector<1x128xi1> to vector<1x128xi1>
    %368 = vector.broadcast %367 : vector<1x128xi1> to vector<2x128xi1>
    %369 = arith.select %368, %364, %366 : vector<2x128xi1>, vector<2x128xf32>
    %370 = vector.extract_strided_slice %341 {offsets = [0, 4, 0], sizes = [2, 1, 128], strides = [1, 1, 1]} : vector<2x8x128xf32> to vector<2x1x128xf32>
    %371 = vector.shape_cast %370 : vector<2x1x128xf32> to vector<2x128xf32>
    %372 = vector.extract_strided_slice %341 {offsets = [0, 3, 0], sizes = [2, 1, 128], strides = [1, 1, 1]} : vector<2x8x128xf32> to vector<2x1x128xf32>
    %373 = vector.shape_cast %372 : vector<2x1x128xf32> to vector<2x128xf32>
    %374 = vector.shape_cast %33 : vector<1x128xi1> to vector<1x128xi1>
    %375 = vector.broadcast %374 : vector<1x128xi1> to vector<2x128xi1>
    %376 = arith.select %375, %371, %373 : vector<2x128xi1>, vector<2x128xf32>
    %377 = vector.extract_strided_slice %341 {offsets = [0, 5, 0], sizes = [2, 1, 128], strides = [1, 1, 1]} : vector<2x8x128xf32> to vector<2x1x128xf32>
    %378 = vector.shape_cast %377 : vector<2x1x128xf32> to vector<2x128xf32>
    %379 = vector.extract_strided_slice %341 {offsets = [0, 2, 0], sizes = [2, 1, 128], strides = [1, 1, 1]} : vector<2x8x128xf32> to vector<2x1x128xf32>
    %380 = vector.shape_cast %379 : vector<2x1x128xf32> to vector<2x128xf32>
    %381 = vector.shape_cast %33 : vector<1x128xi1> to vector<1x128xi1>
    %382 = vector.broadcast %381 : vector<1x128xi1> to vector<2x128xi1>
    %383 = arith.select %382, %378, %380 : vector<2x128xi1>, vector<2x128xf32>
    %384 = vector.extract_strided_slice %341 {offsets = [0, 6, 0], sizes = [2, 1, 128], strides = [1, 1, 1]} : vector<2x8x128xf32> to vector<2x1x128xf32>
    %385 = vector.shape_cast %384 : vector<2x1x128xf32> to vector<2x128xf32>
    %386 = vector.extract_strided_slice %341 {offsets = [0, 1, 0], sizes = [2, 1, 128], strides = [1, 1, 1]} : vector<2x8x128xf32> to vector<2x1x128xf32>
    %387 = vector.shape_cast %386 : vector<2x1x128xf32> to vector<2x128xf32>
    %388 = vector.shape_cast %33 : vector<1x128xi1> to vector<1x128xi1>
    %389 = vector.broadcast %388 : vector<1x128xi1> to vector<2x128xi1>
    %390 = arith.select %389, %385, %387 : vector<2x128xi1>, vector<2x128xf32>
    %391 = vector.extract_strided_slice %341 {offsets = [0, 7, 0], sizes = [2, 1, 128], strides = [1, 1, 1]} : vector<2x8x128xf32> to vector<2x1x128xf32>
    %392 = vector.shape_cast %391 : vector<2x1x128xf32> to vector<2x128xf32>
    %393 = vector.extract_strided_slice %341 {offsets = [0, 0, 0], sizes = [2, 1, 128], strides = [1, 1, 1]} : vector<2x8x128xf32> to vector<2x1x128xf32>
    %394 = vector.shape_cast %393 : vector<2x1x128xf32> to vector<2x128xf32>
    %395 = vector.shape_cast %33 : vector<1x128xi1> to vector<1x128xi1>
    %396 = vector.broadcast %395 : vector<1x128xi1> to vector<2x128xi1>
    %397 = arith.select %396, %392, %394 : vector<2x128xi1>, vector<2x128xf32>
    %cst_58 = arith.constant 0.000000e+00 : f32
    %398 = vector.broadcast %cst_58 : f32 to vector<2x32xf32>
    %cst_59 = arith.constant 0.000000e+00 : f32
    %399 = vector.broadcast %cst_59 : f32 to vector<2x32xf32>
    %cst_60 = arith.constant dense<0.000000e+00> : vector<2x128xf32>
    %400 = tpu.matmul %398, %333, %cst_60 {dimension_numbers = #tpu.dot_dimension_numbers<[1], [0], [0], [1], [0, 0, 1, 1], [], []>} : vector<2x32xf32>, vector<32x128xf32>, vector<2x128xf32> -> vector<2x128xf32>
    %401 = arith.addf %348, %400 : vector<2x128xf32>
    %402 = vector.extract_strided_slice %401 {offsets = [0, 0], sizes = [2, 96], strides = [1, 1]} : vector<2x128xf32> to vector<2x96xf32>
    %cst_61 = arith.constant 0.000000e+00 : f32
    %403 = vector.broadcast %cst_61 : f32 to vector<2x96xf32>
    %404 = arith.subf %403, %402 : vector<2x96xf32>
    %405 = math.exp %404 : vector<2x96xf32>
    %cst_62 = arith.constant 1.000000e+00 : f32
    %406 = vector.broadcast %cst_62 : f32 to vector<2x96xf32>
    %407 = arith.addf %406, %405 : vector<2x96xf32>
    %408 = tpu.reciprocal %407 {approx = true} : vector<2x96xf32> -> vector<2x96xf32>
    %409 = vector.extract_strided_slice %408 {offsets = [0, 0], sizes = [2, 32], strides = [1, 1]} : vector<2x96xf32> to vector<2x32xf32>
    %410 = vector.extract_strided_slice %408 {offsets = [0, 32], sizes = [2, 32], strides = [1, 1]} : vector<2x96xf32> to vector<2x32xf32>
    %411 = vector.extract_strided_slice %408 {offsets = [0, 64], sizes = [2, 32], strides = [1, 1]} : vector<2x96xf32> to vector<2x32xf32>
    %412 = vector.extract_strided_slice %401 {offsets = [0, 96], sizes = [2, 32], strides = [1, 1]} : vector<2x128xf32> to vector<2x32xf32>
    %413 = math.tanh %412 : vector<2x32xf32>
    %414 = arith.mulf %410, %399 : vector<2x32xf32>
    %415 = arith.mulf %409, %413 : vector<2x32xf32>
    %416 = arith.addf %414, %415 : vector<2x32xf32>
    %417 = math.tanh %416 : vector<2x32xf32>
    %418 = arith.mulf %411, %417 : vector<2x32xf32>
    %cst_63 = arith.constant dense<0.000000e+00> : vector<2x128xf32>
    %419 = tpu.matmul %418, %333, %cst_63 {dimension_numbers = #tpu.dot_dimension_numbers<[1], [0], [0], [1], [0, 0, 1, 1], [], []>} : vector<2x32xf32>, vector<32x128xf32>, vector<2x128xf32> -> vector<2x128xf32>
    %420 = arith.addf %355, %419 : vector<2x128xf32>
    %421 = vector.extract_strided_slice %420 {offsets = [0, 0], sizes = [2, 96], strides = [1, 1]} : vector<2x128xf32> to vector<2x96xf32>
    %cst_64 = arith.constant 0.000000e+00 : f32
    %422 = vector.broadcast %cst_64 : f32 to vector<2x96xf32>
    %423 = arith.subf %422, %421 : vector<2x96xf32>
    %424 = math.exp %423 : vector<2x96xf32>
    %cst_65 = arith.constant 1.000000e+00 : f32
    %425 = vector.broadcast %cst_65 : f32 to vector<2x96xf32>
    %426 = arith.addf %425, %424 : vector<2x96xf32>
    %427 = tpu.reciprocal %426 {approx = true} : vector<2x96xf32> -> vector<2x96xf32>
    %428 = vector.extract_strided_slice %427 {offsets = [0, 0], sizes = [2, 32], strides = [1, 1]} : vector<2x96xf32> to vector<2x32xf32>
    %429 = vector.extract_strided_slice %427 {offsets = [0, 32], sizes = [2, 32], strides = [1, 1]} : vector<2x96xf32> to vector<2x32xf32>
    %430 = vector.extract_strided_slice %427 {offsets = [0, 64], sizes = [2, 32], strides = [1, 1]} : vector<2x96xf32> to vector<2x32xf32>
    %431 = vector.extract_strided_slice %420 {offsets = [0, 96], sizes = [2, 32], strides = [1, 1]} : vector<2x128xf32> to vector<2x32xf32>
    %432 = math.tanh %431 : vector<2x32xf32>
    %433 = arith.mulf %429, %416 : vector<2x32xf32>
    %434 = arith.mulf %428, %432 : vector<2x32xf32>
    %435 = arith.addf %433, %434 : vector<2x32xf32>
    %436 = math.tanh %435 : vector<2x32xf32>
    %437 = arith.mulf %430, %436 : vector<2x32xf32>
    %cst_66 = arith.constant dense<0.000000e+00> : vector<2x128xf32>
    %438 = tpu.matmul %437, %333, %cst_66 {dimension_numbers = #tpu.dot_dimension_numbers<[1], [0], [0], [1], [0, 0, 1, 1], [], []>} : vector<2x32xf32>, vector<32x128xf32>, vector<2x128xf32> -> vector<2x128xf32>
    %439 = arith.addf %362, %438 : vector<2x128xf32>
    %440 = vector.extract_strided_slice %439 {offsets = [0, 0], sizes = [2, 96], strides = [1, 1]} : vector<2x128xf32> to vector<2x96xf32>
    %cst_67 = arith.constant 0.000000e+00 : f32
    %441 = vector.broadcast %cst_67 : f32 to vector<2x96xf32>
    %442 = arith.subf %441, %440 : vector<2x96xf32>
    %443 = math.exp %442 : vector<2x96xf32>
    %cst_68 = arith.constant 1.000000e+00 : f32
    %444 = vector.broadcast %cst_68 : f32 to vector<2x96xf32>
    %445 = arith.addf %444, %443 : vector<2x96xf32>
    %446 = tpu.reciprocal %445 {approx = true} : vector<2x96xf32> -> vector<2x96xf32>
    %447 = vector.extract_strided_slice %446 {offsets = [0, 0], sizes = [2, 32], strides = [1, 1]} : vector<2x96xf32> to vector<2x32xf32>
    %448 = vector.extract_strided_slice %446 {offsets = [0, 32], sizes = [2, 32], strides = [1, 1]} : vector<2x96xf32> to vector<2x32xf32>
    %449 = vector.extract_strided_slice %446 {offsets = [0, 64], sizes = [2, 32], strides = [1, 1]} : vector<2x96xf32> to vector<2x32xf32>
    %450 = vector.extract_strided_slice %439 {offsets = [0, 96], sizes = [2, 32], strides = [1, 1]} : vector<2x128xf32> to vector<2x32xf32>
    %451 = math.tanh %450 : vector<2x32xf32>
    %452 = arith.mulf %448, %435 : vector<2x32xf32>
    %453 = arith.mulf %447, %451 : vector<2x32xf32>
    %454 = arith.addf %452, %453 : vector<2x32xf32>
    %455 = math.tanh %454 : vector<2x32xf32>
    %456 = arith.mulf %449, %455 : vector<2x32xf32>
    %cst_69 = arith.constant dense<0.000000e+00> : vector<2x128xf32>
    %457 = tpu.matmul %456, %333, %cst_69 {dimension_numbers = #tpu.dot_dimension_numbers<[1], [0], [0], [1], [0, 0, 1, 1], [], []>} : vector<2x32xf32>, vector<32x128xf32>, vector<2x128xf32> -> vector<2x128xf32>
    %458 = arith.addf %369, %457 : vector<2x128xf32>
    %459 = vector.extract_strided_slice %458 {offsets = [0, 0], sizes = [2, 96], strides = [1, 1]} : vector<2x128xf32> to vector<2x96xf32>
    %cst_70 = arith.constant 0.000000e+00 : f32
    %460 = vector.broadcast %cst_70 : f32 to vector<2x96xf32>
    %461 = arith.subf %460, %459 : vector<2x96xf32>
    %462 = math.exp %461 : vector<2x96xf32>
    %cst_71 = arith.constant 1.000000e+00 : f32
    %463 = vector.broadcast %cst_71 : f32 to vector<2x96xf32>
    %464 = arith.addf %463, %462 : vector<2x96xf32>
    %465 = tpu.reciprocal %464 {approx = true} : vector<2x96xf32> -> vector<2x96xf32>
    %466 = vector.extract_strided_slice %465 {offsets = [0, 0], sizes = [2, 32], strides = [1, 1]} : vector<2x96xf32> to vector<2x32xf32>
    %467 = vector.extract_strided_slice %465 {offsets = [0, 32], sizes = [2, 32], strides = [1, 1]} : vector<2x96xf32> to vector<2x32xf32>
    %468 = vector.extract_strided_slice %465 {offsets = [0, 64], sizes = [2, 32], strides = [1, 1]} : vector<2x96xf32> to vector<2x32xf32>
    %469 = vector.extract_strided_slice %458 {offsets = [0, 96], sizes = [2, 32], strides = [1, 1]} : vector<2x128xf32> to vector<2x32xf32>
    %470 = math.tanh %469 : vector<2x32xf32>
    %471 = arith.mulf %467, %454 : vector<2x32xf32>
    %472 = arith.mulf %466, %470 : vector<2x32xf32>
    %473 = arith.addf %471, %472 : vector<2x32xf32>
    %474 = math.tanh %473 : vector<2x32xf32>
    %475 = arith.mulf %468, %474 : vector<2x32xf32>
    %cst_72 = arith.constant dense<0.000000e+00> : vector<2x128xf32>
    %476 = tpu.matmul %475, %333, %cst_72 {dimension_numbers = #tpu.dot_dimension_numbers<[1], [0], [0], [1], [0, 0, 1, 1], [], []>} : vector<2x32xf32>, vector<32x128xf32>, vector<2x128xf32> -> vector<2x128xf32>
    %477 = arith.addf %376, %476 : vector<2x128xf32>
    %478 = vector.extract_strided_slice %477 {offsets = [0, 0], sizes = [2, 96], strides = [1, 1]} : vector<2x128xf32> to vector<2x96xf32>
    %cst_73 = arith.constant 0.000000e+00 : f32
    %479 = vector.broadcast %cst_73 : f32 to vector<2x96xf32>
    %480 = arith.subf %479, %478 : vector<2x96xf32>
    %481 = math.exp %480 : vector<2x96xf32>
    %cst_74 = arith.constant 1.000000e+00 : f32
    %482 = vector.broadcast %cst_74 : f32 to vector<2x96xf32>
    %483 = arith.addf %482, %481 : vector<2x96xf32>
    %484 = tpu.reciprocal %483 {approx = true} : vector<2x96xf32> -> vector<2x96xf32>
    %485 = vector.extract_strided_slice %484 {offsets = [0, 0], sizes = [2, 32], strides = [1, 1]} : vector<2x96xf32> to vector<2x32xf32>
    %486 = vector.extract_strided_slice %484 {offsets = [0, 32], sizes = [2, 32], strides = [1, 1]} : vector<2x96xf32> to vector<2x32xf32>
    %487 = vector.extract_strided_slice %484 {offsets = [0, 64], sizes = [2, 32], strides = [1, 1]} : vector<2x96xf32> to vector<2x32xf32>
    %488 = vector.extract_strided_slice %477 {offsets = [0, 96], sizes = [2, 32], strides = [1, 1]} : vector<2x128xf32> to vector<2x32xf32>
    %489 = math.tanh %488 : vector<2x32xf32>
    %490 = arith.mulf %486, %473 : vector<2x32xf32>
    %491 = arith.mulf %485, %489 : vector<2x32xf32>
    %492 = arith.addf %490, %491 : vector<2x32xf32>
    %493 = math.tanh %492 : vector<2x32xf32>
    %494 = arith.mulf %487, %493 : vector<2x32xf32>
    %cst_75 = arith.constant dense<0.000000e+00> : vector<2x128xf32>
    %495 = tpu.matmul %494, %333, %cst_75 {dimension_numbers = #tpu.dot_dimension_numbers<[1], [0], [0], [1], [0, 0, 1, 1], [], []>} : vector<2x32xf32>, vector<32x128xf32>, vector<2x128xf32> -> vector<2x128xf32>
    %496 = arith.addf %383, %495 : vector<2x128xf32>
    %497 = vector.extract_strided_slice %496 {offsets = [0, 0], sizes = [2, 96], strides = [1, 1]} : vector<2x128xf32> to vector<2x96xf32>
    %cst_76 = arith.constant 0.000000e+00 : f32
    %498 = vector.broadcast %cst_76 : f32 to vector<2x96xf32>
    %499 = arith.subf %498, %497 : vector<2x96xf32>
    %500 = math.exp %499 : vector<2x96xf32>
    %cst_77 = arith.constant 1.000000e+00 : f32
    %501 = vector.broadcast %cst_77 : f32 to vector<2x96xf32>
    %502 = arith.addf %501, %500 : vector<2x96xf32>
    %503 = tpu.reciprocal %502 {approx = true} : vector<2x96xf32> -> vector<2x96xf32>
    %504 = vector.extract_strided_slice %503 {offsets = [0, 0], sizes = [2, 32], strides = [1, 1]} : vector<2x96xf32> to vector<2x32xf32>
    %505 = vector.extract_strided_slice %503 {offsets = [0, 32], sizes = [2, 32], strides = [1, 1]} : vector<2x96xf32> to vector<2x32xf32>
    %506 = vector.extract_strided_slice %503 {offsets = [0, 64], sizes = [2, 32], strides = [1, 1]} : vector<2x96xf32> to vector<2x32xf32>
    %507 = vector.extract_strided_slice %496 {offsets = [0, 96], sizes = [2, 32], strides = [1, 1]} : vector<2x128xf32> to vector<2x32xf32>
    %508 = math.tanh %507 : vector<2x32xf32>
    %509 = arith.mulf %505, %492 : vector<2x32xf32>
    %510 = arith.mulf %504, %508 : vector<2x32xf32>
    %511 = arith.addf %509, %510 : vector<2x32xf32>
    %512 = math.tanh %511 : vector<2x32xf32>
    %513 = arith.mulf %506, %512 : vector<2x32xf32>
    %cst_78 = arith.constant dense<0.000000e+00> : vector<2x128xf32>
    %514 = tpu.matmul %513, %333, %cst_78 {dimension_numbers = #tpu.dot_dimension_numbers<[1], [0], [0], [1], [0, 0, 1, 1], [], []>} : vector<2x32xf32>, vector<32x128xf32>, vector<2x128xf32> -> vector<2x128xf32>
    %515 = arith.addf %390, %514 : vector<2x128xf32>
    %516 = vector.extract_strided_slice %515 {offsets = [0, 0], sizes = [2, 96], strides = [1, 1]} : vector<2x128xf32> to vector<2x96xf32>
    %cst_79 = arith.constant 0.000000e+00 : f32
    %517 = vector.broadcast %cst_79 : f32 to vector<2x96xf32>
    %518 = arith.subf %517, %516 : vector<2x96xf32>
    %519 = math.exp %518 : vector<2x96xf32>
    %cst_80 = arith.constant 1.000000e+00 : f32
    %520 = vector.broadcast %cst_80 : f32 to vector<2x96xf32>
    %521 = arith.addf %520, %519 : vector<2x96xf32>
    %522 = tpu.reciprocal %521 {approx = true} : vector<2x96xf32> -> vector<2x96xf32>
    %523 = vector.extract_strided_slice %522 {offsets = [0, 0], sizes = [2, 32], strides = [1, 1]} : vector<2x96xf32> to vector<2x32xf32>
    %524 = vector.extract_strided_slice %522 {offsets = [0, 32], sizes = [2, 32], strides = [1, 1]} : vector<2x96xf32> to vector<2x32xf32>
    %525 = vector.extract_strided_slice %522 {offsets = [0, 64], sizes = [2, 32], strides = [1, 1]} : vector<2x96xf32> to vector<2x32xf32>
    %526 = vector.extract_strided_slice %515 {offsets = [0, 96], sizes = [2, 32], strides = [1, 1]} : vector<2x128xf32> to vector<2x32xf32>
    %527 = math.tanh %526 : vector<2x32xf32>
    %528 = arith.mulf %524, %511 : vector<2x32xf32>
    %529 = arith.mulf %523, %527 : vector<2x32xf32>
    %530 = arith.addf %528, %529 : vector<2x32xf32>
    %531 = math.tanh %530 : vector<2x32xf32>
    %532 = arith.mulf %525, %531 : vector<2x32xf32>
    %cst_81 = arith.constant dense<0.000000e+00> : vector<2x128xf32>
    %533 = tpu.matmul %532, %333, %cst_81 {dimension_numbers = #tpu.dot_dimension_numbers<[1], [0], [0], [1], [0, 0, 1, 1], [], []>} : vector<2x32xf32>, vector<32x128xf32>, vector<2x128xf32> -> vector<2x128xf32>
    %534 = arith.addf %397, %533 : vector<2x128xf32>
    %535 = vector.extract_strided_slice %534 {offsets = [0, 0], sizes = [2, 96], strides = [1, 1]} : vector<2x128xf32> to vector<2x96xf32>
    %cst_82 = arith.constant 0.000000e+00 : f32
    %536 = vector.broadcast %cst_82 : f32 to vector<2x96xf32>
    %537 = arith.subf %536, %535 : vector<2x96xf32>
    %538 = math.exp %537 : vector<2x96xf32>
    %cst_83 = arith.constant 1.000000e+00 : f32
    %539 = vector.broadcast %cst_83 : f32 to vector<2x96xf32>
    %540 = arith.addf %539, %538 : vector<2x96xf32>
    %541 = tpu.reciprocal %540 {approx = true} : vector<2x96xf32> -> vector<2x96xf32>
    %542 = vector.extract_strided_slice %541 {offsets = [0, 0], sizes = [2, 32], strides = [1, 1]} : vector<2x96xf32> to vector<2x32xf32>
    %543 = vector.extract_strided_slice %541 {offsets = [0, 32], sizes = [2, 32], strides = [1, 1]} : vector<2x96xf32> to vector<2x32xf32>
    %544 = vector.extract_strided_slice %541 {offsets = [0, 64], sizes = [2, 32], strides = [1, 1]} : vector<2x96xf32> to vector<2x32xf32>
    %545 = vector.extract_strided_slice %534 {offsets = [0, 96], sizes = [2, 32], strides = [1, 1]} : vector<2x128xf32> to vector<2x32xf32>
    %546 = math.tanh %545 : vector<2x32xf32>
    %547 = arith.mulf %543, %530 : vector<2x32xf32>
    %548 = arith.mulf %542, %546 : vector<2x32xf32>
    %549 = arith.addf %547, %548 : vector<2x32xf32>
    %550 = math.tanh %549 : vector<2x32xf32>
    %551 = arith.mulf %544, %550 : vector<2x32xf32>
    %cst_84 = arith.constant 0.000000e+00 : f32
    %552 = vector.broadcast %cst_84 : f32 to vector<2x8x32xf32>
    %553 = arith.select %36, %418, %551 : vector<2x32xi1>, vector<2x32xf32>
    %c0_i32_85 = arith.constant 0 : i32
    %554 = vector.broadcast %c0_i32_85 : i32 to vector<1x8x1xi32>
    %555 = arith.cmpi eq, %37, %554 : vector<1x8x1xi32>
    %556 = vector.shape_cast %553 : vector<2x32xf32> to vector<2x1x32xf32>
    %557 = vector.shape_cast %555 : vector<1x8x1xi1> to vector<1x8x1xi1>
    %558 = vector.broadcast %557 : vector<1x8x1xi1> to vector<2x8x32xi1>
    %559 = vector.shape_cast %556 : vector<2x1x32xf32> to vector<2x1x32xf32>
    %560 = vector.broadcast %559 : vector<2x1x32xf32> to vector<2x8x32xf32>
    %561 = arith.select %558, %560, %552 : vector<2x8x32xi1>, vector<2x8x32xf32>
    %562 = arith.select %36, %437, %532 : vector<2x32xi1>, vector<2x32xf32>
    %c1_i32_86 = arith.constant 1 : i32
    %563 = vector.broadcast %c1_i32_86 : i32 to vector<1x8x1xi32>
    %564 = arith.cmpi eq, %37, %563 : vector<1x8x1xi32>
    %565 = vector.shape_cast %562 : vector<2x32xf32> to vector<2x1x32xf32>
    %566 = vector.shape_cast %564 : vector<1x8x1xi1> to vector<1x8x1xi1>
    %567 = vector.broadcast %566 : vector<1x8x1xi1> to vector<2x8x32xi1>
    %568 = vector.shape_cast %565 : vector<2x1x32xf32> to vector<2x1x32xf32>
    %569 = vector.broadcast %568 : vector<2x1x32xf32> to vector<2x8x32xf32>
    %570 = arith.select %567, %569, %561 : vector<2x8x32xi1>, vector<2x8x32xf32>
    %571 = arith.select %36, %456, %513 : vector<2x32xi1>, vector<2x32xf32>
    %c2_i32_87 = arith.constant 2 : i32
    %572 = vector.broadcast %c2_i32_87 : i32 to vector<1x8x1xi32>
    %573 = arith.cmpi eq, %37, %572 : vector<1x8x1xi32>
    %574 = vector.shape_cast %571 : vector<2x32xf32> to vector<2x1x32xf32>
    %575 = vector.shape_cast %573 : vector<1x8x1xi1> to vector<1x8x1xi1>
    %576 = vector.broadcast %575 : vector<1x8x1xi1> to vector<2x8x32xi1>
    %577 = vector.shape_cast %574 : vector<2x1x32xf32> to vector<2x1x32xf32>
    %578 = vector.broadcast %577 : vector<2x1x32xf32> to vector<2x8x32xf32>
    %579 = arith.select %576, %578, %570 : vector<2x8x32xi1>, vector<2x8x32xf32>
    %580 = arith.select %36, %475, %494 : vector<2x32xi1>, vector<2x32xf32>
    %c3_i32_88 = arith.constant 3 : i32
    %581 = vector.broadcast %c3_i32_88 : i32 to vector<1x8x1xi32>
    %582 = arith.cmpi eq, %37, %581 : vector<1x8x1xi32>
    %583 = vector.shape_cast %580 : vector<2x32xf32> to vector<2x1x32xf32>
    %584 = vector.shape_cast %582 : vector<1x8x1xi1> to vector<1x8x1xi1>
    %585 = vector.broadcast %584 : vector<1x8x1xi1> to vector<2x8x32xi1>
    %586 = vector.shape_cast %583 : vector<2x1x32xf32> to vector<2x1x32xf32>
    %587 = vector.broadcast %586 : vector<2x1x32xf32> to vector<2x8x32xf32>
    %588 = arith.select %585, %587, %579 : vector<2x8x32xi1>, vector<2x8x32xf32>
    %589 = arith.select %36, %494, %475 : vector<2x32xi1>, vector<2x32xf32>
    %c4_i32_89 = arith.constant 4 : i32
    %590 = vector.broadcast %c4_i32_89 : i32 to vector<1x8x1xi32>
    %591 = arith.cmpi eq, %37, %590 : vector<1x8x1xi32>
    %592 = vector.shape_cast %589 : vector<2x32xf32> to vector<2x1x32xf32>
    %593 = vector.shape_cast %591 : vector<1x8x1xi1> to vector<1x8x1xi1>
    %594 = vector.broadcast %593 : vector<1x8x1xi1> to vector<2x8x32xi1>
    %595 = vector.shape_cast %592 : vector<2x1x32xf32> to vector<2x1x32xf32>
    %596 = vector.broadcast %595 : vector<2x1x32xf32> to vector<2x8x32xf32>
    %597 = arith.select %594, %596, %588 : vector<2x8x32xi1>, vector<2x8x32xf32>
    %598 = arith.select %36, %513, %456 : vector<2x32xi1>, vector<2x32xf32>
    %c5_i32_90 = arith.constant 5 : i32
    %599 = vector.broadcast %c5_i32_90 : i32 to vector<1x8x1xi32>
    %600 = arith.cmpi eq, %37, %599 : vector<1x8x1xi32>
    %601 = vector.shape_cast %598 : vector<2x32xf32> to vector<2x1x32xf32>
    %602 = vector.shape_cast %600 : vector<1x8x1xi1> to vector<1x8x1xi1>
    %603 = vector.broadcast %602 : vector<1x8x1xi1> to vector<2x8x32xi1>
    %604 = vector.shape_cast %601 : vector<2x1x32xf32> to vector<2x1x32xf32>
    %605 = vector.broadcast %604 : vector<2x1x32xf32> to vector<2x8x32xf32>
    %606 = arith.select %603, %605, %597 : vector<2x8x32xi1>, vector<2x8x32xf32>
    %607 = arith.select %36, %532, %437 : vector<2x32xi1>, vector<2x32xf32>
    %c6_i32_91 = arith.constant 6 : i32
    %608 = vector.broadcast %c6_i32_91 : i32 to vector<1x8x1xi32>
    %609 = arith.cmpi eq, %37, %608 : vector<1x8x1xi32>
    %610 = vector.shape_cast %607 : vector<2x32xf32> to vector<2x1x32xf32>
    %611 = vector.shape_cast %609 : vector<1x8x1xi1> to vector<1x8x1xi1>
    %612 = vector.broadcast %611 : vector<1x8x1xi1> to vector<2x8x32xi1>
    %613 = vector.shape_cast %610 : vector<2x1x32xf32> to vector<2x1x32xf32>
    %614 = vector.broadcast %613 : vector<2x1x32xf32> to vector<2x8x32xf32>
    %615 = arith.select %612, %614, %606 : vector<2x8x32xi1>, vector<2x8x32xf32>
    %616 = arith.select %36, %551, %418 : vector<2x32xi1>, vector<2x32xf32>
    %c7_i32_92 = arith.constant 7 : i32
    %617 = vector.broadcast %c7_i32_92 : i32 to vector<1x8x1xi32>
    %618 = arith.cmpi eq, %37, %617 : vector<1x8x1xi32>
    %619 = vector.shape_cast %616 : vector<2x32xf32> to vector<2x1x32xf32>
    %620 = vector.shape_cast %618 : vector<1x8x1xi1> to vector<1x8x1xi1>
    %621 = vector.broadcast %620 : vector<1x8x1xi1> to vector<2x8x32xi1>
    %622 = vector.shape_cast %619 : vector<2x1x32xf32> to vector<2x1x32xf32>
    %623 = vector.broadcast %622 : vector<2x1x32xf32> to vector<2x8x32xf32>
    %624 = arith.select %621, %623, %615 : vector<2x8x32xi1>, vector<2x8x32xf32>
    %625 = vector.shape_cast %624 : vector<2x8x32xf32> to vector<16x32xf32>
    %c0_93 = arith.constant 0 : index
    %c0_94 = arith.constant 0 : index
    %626 = vector.load %arg7[%c0_93, %c0_94] : memref<32x96xf32, #tpu.memory_space<vmem>>, vector<32x96xf32>
    %cst_95 = arith.constant dense<0.000000e+00> : vector<16x96xf32>
    %627 = tpu.matmul %625, %626, %cst_95 {dimension_numbers = #tpu.dot_dimension_numbers<[1], [0], [0], [1], [0, 0, 1, 1], [], []>} : vector<16x32xf32>, vector<32x96xf32>, vector<16x96xf32> -> vector<16x96xf32>
    %c0_96 = arith.constant 0 : index
    %c0_97 = arith.constant 0 : index
    %628 = vector.load %arg8[%c0_96, %c0_97] : memref<1x96xf32, #tpu.memory_space<vmem>>, vector<1x96xf32>
    %629 = vector.broadcast %628 : vector<1x96xf32> to vector<16x96xf32>
    %630 = arith.addf %627, %629 : vector<16x96xf32>
    %631 = vector.extract_strided_slice %630 {offsets = [0, 0], sizes = [16, 32], strides = [1, 1]} : vector<16x96xf32> to vector<16x32xf32>
    %632 = vector.shape_cast %631 : vector<16x32xf32> to vector<2x8x32xf32>
    %633 = vector.extract_strided_slice %630 {offsets = [0, 32], sizes = [16, 32], strides = [1, 1]} : vector<16x96xf32> to vector<16x32xf32>
    %634 = vector.shape_cast %633 : vector<16x32xf32> to vector<2x8x32xf32>
    %635 = vector.extract_strided_slice %630 {offsets = [0, 64], sizes = [16, 32], strides = [1, 1]} : vector<16x96xf32> to vector<16x32xf32>
    %636 = vector.shape_cast %635 : vector<16x32xf32> to vector<2x8x32xf32>
    %637 = vector.extract_strided_slice %632 {offsets = [0, 0, 0], sizes = [2, 8, 8], strides = [1, 1, 1]} : vector<2x8x32xf32> to vector<2x8x8xf32>
    %638 = vector.extract_strided_slice %632 {offsets = [0, 0, 8], sizes = [2, 8, 8], strides = [1, 1, 1]} : vector<2x8x32xf32> to vector<2x8x8xf32>
    %639 = vector.extract_strided_slice %632 {offsets = [0, 0, 16], sizes = [2, 8, 8], strides = [1, 1, 1]} : vector<2x8x32xf32> to vector<2x8x8xf32>
    %640 = vector.extract_strided_slice %632 {offsets = [0, 0, 24], sizes = [2, 8, 8], strides = [1, 1, 1]} : vector<2x8x32xf32> to vector<2x8x8xf32>
    %641 = vector.shape_cast %637 : vector<2x8x8xf32> to vector<1x2x8x8xf32>
    %642 = vector.shape_cast %638 : vector<2x8x8xf32> to vector<1x2x8x8xf32>
    %643 = vector.shape_cast %639 : vector<2x8x8xf32> to vector<1x2x8x8xf32>
    %644 = vector.shape_cast %640 : vector<2x8x8xf32> to vector<1x2x8x8xf32>
    %645 = tpu.concatenate %641, %642, %643, %644 in 0 : vector<1x2x8x8xf32>, vector<1x2x8x8xf32>, vector<1x2x8x8xf32>, vector<1x2x8x8xf32> -> vector<4x2x8x8xf32>
    %646 = vector.shape_cast %645 : vector<4x2x8x8xf32> to vector<8x8x8xf32>
    %647 = vector.extract_strided_slice %634 {offsets = [0, 0, 0], sizes = [2, 8, 8], strides = [1, 1, 1]} : vector<2x8x32xf32> to vector<2x8x8xf32>
    %648 = vector.extract_strided_slice %634 {offsets = [0, 0, 8], sizes = [2, 8, 8], strides = [1, 1, 1]} : vector<2x8x32xf32> to vector<2x8x8xf32>
    %649 = vector.extract_strided_slice %634 {offsets = [0, 0, 16], sizes = [2, 8, 8], strides = [1, 1, 1]} : vector<2x8x32xf32> to vector<2x8x8xf32>
    %650 = vector.extract_strided_slice %634 {offsets = [0, 0, 24], sizes = [2, 8, 8], strides = [1, 1, 1]} : vector<2x8x32xf32> to vector<2x8x8xf32>
    %651 = vector.shape_cast %647 : vector<2x8x8xf32> to vector<1x2x8x8xf32>
    %652 = vector.shape_cast %648 : vector<2x8x8xf32> to vector<1x2x8x8xf32>
    %653 = vector.shape_cast %649 : vector<2x8x8xf32> to vector<1x2x8x8xf32>
    %654 = vector.shape_cast %650 : vector<2x8x8xf32> to vector<1x2x8x8xf32>
    %655 = tpu.concatenate %651, %652, %653, %654 in 0 : vector<1x2x8x8xf32>, vector<1x2x8x8xf32>, vector<1x2x8x8xf32>, vector<1x2x8x8xf32> -> vector<4x2x8x8xf32>
    %656 = vector.shape_cast %655 : vector<4x2x8x8xf32> to vector<8x8x8xf32>
    %657 = vector.extract_strided_slice %636 {offsets = [0, 0, 0], sizes = [2, 8, 8], strides = [1, 1, 1]} : vector<2x8x32xf32> to vector<2x8x8xf32>
    %658 = vector.extract_strided_slice %636 {offsets = [0, 0, 8], sizes = [2, 8, 8], strides = [1, 1, 1]} : vector<2x8x32xf32> to vector<2x8x8xf32>
    %659 = vector.extract_strided_slice %636 {offsets = [0, 0, 16], sizes = [2, 8, 8], strides = [1, 1, 1]} : vector<2x8x32xf32> to vector<2x8x8xf32>
    %660 = vector.extract_strided_slice %636 {offsets = [0, 0, 24], sizes = [2, 8, 8], strides = [1, 1, 1]} : vector<2x8x32xf32> to vector<2x8x8xf32>
    %661 = vector.shape_cast %657 : vector<2x8x8xf32> to vector<1x2x8x8xf32>
    %662 = vector.shape_cast %658 : vector<2x8x8xf32> to vector<1x2x8x8xf32>
    %663 = vector.shape_cast %659 : vector<2x8x8xf32> to vector<1x2x8x8xf32>
    %664 = vector.shape_cast %660 : vector<2x8x8xf32> to vector<1x2x8x8xf32>
    %665 = tpu.concatenate %661, %662, %663, %664 in 0 : vector<1x2x8x8xf32>, vector<1x2x8x8xf32>, vector<1x2x8x8xf32>, vector<1x2x8x8xf32> -> vector<4x2x8x8xf32>
    %666 = vector.shape_cast %665 : vector<4x2x8x8xf32> to vector<8x8x8xf32>
    "tpu.trace_start"() <{level = 10 : i32, message = "ntd,nsd->nts"}> : () -> ()
    %cst_98 = arith.constant dense<0.000000e+00> : vector<8x8x8xf32>
    %667 = tpu.matmul %646, %656, %cst_98 {dimension_numbers = #tpu.dot_dimension_numbers<[2], [2], [1], [1], [0, 0, 0, 1, 1, 1], [0], [0]>} : vector<8x8x8xf32>, vector<8x8x8xf32>, vector<8x8x8xf32> -> vector<8x8x8xf32>
    "tpu.trace_stop"() : () -> ()
    %cst_99 = arith.constant 0.353553385 : f32
    %668 = vector.broadcast %cst_99 : f32 to vector<8x8x8xf32>
    %669 = arith.mulf %667, %668 : vector<8x8x8xf32>
    %670 = tpu.concatenate %5, %5, %5, %5 in 0 : vector<2x8xf32>, vector<2x8xf32>, vector<2x8xf32>, vector<2x8xf32> -> vector<8x8xf32>
    %671 = vector.shape_cast %670 : vector<8x8xf32> to vector<8x1x8xf32>
    %672 = vector.broadcast %671 : vector<8x1x8xf32> to vector<8x8x8xf32>
    %673 = arith.addf %669, %672 : vector<8x8x8xf32>
    %cst_100 = arith.constant dense<0xFF800000> : vector<8x8xf32>
    %674 = vector.multi_reduction <maximumf>, %673, %cst_100 [2] : vector<8x8x8xf32> to vector<8x8xf32>
    %675 = vector.shape_cast %674 : vector<8x8xf32> to vector<8x8x1xf32>
    %676 = vector.broadcast %675 : vector<8x8x1xf32> to vector<8x8x8xf32>
    %677 = arith.subf %673, %676 : vector<8x8x8xf32>
    %678 = math.exp %677 : vector<8x8x8xf32>
    %cst_101 = arith.constant dense<0.000000e+00> : vector<8x8xf32>
    %679 = vector.multi_reduction <add>, %678, %cst_101 [2] : vector<8x8x8xf32> to vector<8x8xf32>
    %680 = vector.shape_cast %679 : vector<8x8xf32> to vector<8x8x1xf32>
    %681 = tpu.reciprocal %680 {approx = true} : vector<8x8x1xf32> -> vector<8x8x1xf32>
    %682 = vector.broadcast %681 : vector<8x8x1xf32> to vector<8x8x8xf32>
    %683 = arith.mulf %678, %682 : vector<8x8x8xf32>
    "tpu.trace_start"() <{level = 10 : i32, message = "nts,nsd->ntd"}> : () -> ()
    %cst_102 = arith.constant dense<0.000000e+00> : vector<8x8x8xf32>
    %684 = tpu.matmul %683, %666, %cst_102 {dimension_numbers = #tpu.dot_dimension_numbers<[2], [1], [1], [2], [0, 0, 0, 1, 1, 2], [0], [0]>} : vector<8x8x8xf32>, vector<8x8x8xf32>, vector<8x8x8xf32> -> vector<8x8x8xf32>
    "tpu.trace_stop"() : () -> ()
    %685 = vector.shape_cast %684 : vector<8x8x8xf32> to vector<4x2x8x8xf32>
    %cst_103 = arith.constant 0.000000e+00 : f32
    %686 = vector.broadcast %cst_103 : f32 to vector<16x32xf32>
    %687 = vector.extract_strided_slice %685 {offsets = [0, 0, 0, 0], sizes = [1, 2, 8, 8], strides = [1, 1, 1, 1]} : vector<4x2x8x8xf32> to vector<1x2x8x8xf32>
    %688 = vector.shape_cast %687 : vector<1x2x8x8xf32> to vector<2x8x8xf32>
    %689 = vector.shape_cast %688 : vector<2x8x8xf32> to vector<16x8xf32>
    %c0_104 = arith.constant 0 : index
    %c0_105 = arith.constant 0 : index
    %690 = vector.load %arg9[%c0_104, %c0_105] : memref<32x32xf32, #tpu.memory_space<vmem>>, vector<8x32xf32>
    %cst_106 = arith.constant dense<0.000000e+00> : vector<16x32xf32>
    %691 = tpu.matmul %689, %690, %cst_106 {dimension_numbers = #tpu.dot_dimension_numbers<[1], [0], [0], [1], [0, 0, 1, 1], [], []>} : vector<16x8xf32>, vector<8x32xf32>, vector<16x32xf32> -> vector<16x32xf32>
    %692 = arith.addf %686, %691 : vector<16x32xf32>
    %693 = vector.extract_strided_slice %685 {offsets = [1, 0, 0, 0], sizes = [1, 2, 8, 8], strides = [1, 1, 1, 1]} : vector<4x2x8x8xf32> to vector<1x2x8x8xf32>
    %694 = vector.shape_cast %693 : vector<1x2x8x8xf32> to vector<2x8x8xf32>
    %695 = vector.shape_cast %694 : vector<2x8x8xf32> to vector<16x8xf32>
    %c8 = arith.constant 8 : index
    %c0_107 = arith.constant 0 : index
    %696 = vector.load %arg9[%c8, %c0_107] : memref<32x32xf32, #tpu.memory_space<vmem>>, vector<8x32xf32>
    %cst_108 = arith.constant dense<0.000000e+00> : vector<16x32xf32>
    %697 = tpu.matmul %695, %696, %cst_108 {dimension_numbers = #tpu.dot_dimension_numbers<[1], [0], [0], [1], [0, 0, 1, 1], [], []>} : vector<16x8xf32>, vector<8x32xf32>, vector<16x32xf32> -> vector<16x32xf32>
    %698 = arith.addf %692, %697 : vector<16x32xf32>
    %699 = vector.extract_strided_slice %685 {offsets = [2, 0, 0, 0], sizes = [1, 2, 8, 8], strides = [1, 1, 1, 1]} : vector<4x2x8x8xf32> to vector<1x2x8x8xf32>
    %700 = vector.shape_cast %699 : vector<1x2x8x8xf32> to vector<2x8x8xf32>
    %701 = vector.shape_cast %700 : vector<2x8x8xf32> to vector<16x8xf32>
    %c16 = arith.constant 16 : index
    %c0_109 = arith.constant 0 : index
    %702 = vector.load %arg9[%c16, %c0_109] : memref<32x32xf32, #tpu.memory_space<vmem>>, vector<8x32xf32>
    %cst_110 = arith.constant dense<0.000000e+00> : vector<16x32xf32>
    %703 = tpu.matmul %701, %702, %cst_110 {dimension_numbers = #tpu.dot_dimension_numbers<[1], [0], [0], [1], [0, 0, 1, 1], [], []>} : vector<16x8xf32>, vector<8x32xf32>, vector<16x32xf32> -> vector<16x32xf32>
    %704 = arith.addf %698, %703 : vector<16x32xf32>
    %705 = vector.extract_strided_slice %685 {offsets = [3, 0, 0, 0], sizes = [1, 2, 8, 8], strides = [1, 1, 1, 1]} : vector<4x2x8x8xf32> to vector<1x2x8x8xf32>
    %706 = vector.shape_cast %705 : vector<1x2x8x8xf32> to vector<2x8x8xf32>
    %707 = vector.shape_cast %706 : vector<2x8x8xf32> to vector<16x8xf32>
    %c24 = arith.constant 24 : index
    %c0_111 = arith.constant 0 : index
    %708 = vector.load %arg9[%c24, %c0_111] : memref<32x32xf32, #tpu.memory_space<vmem>>, vector<8x32xf32>
    %cst_112 = arith.constant dense<0.000000e+00> : vector<16x32xf32>
    %709 = tpu.matmul %707, %708, %cst_112 {dimension_numbers = #tpu.dot_dimension_numbers<[1], [0], [0], [1], [0, 0, 1, 1], [], []>} : vector<16x8xf32>, vector<8x32xf32>, vector<16x32xf32> -> vector<16x32xf32>
    %710 = arith.addf %704, %709 : vector<16x32xf32>
    %c0_113 = arith.constant 0 : index
    %c0_114 = arith.constant 0 : index
    %711 = vector.load %arg10[%c0_113, %c0_114] : memref<1x32xf32, #tpu.memory_space<vmem>>, vector<1x32xf32>
    %712 = vector.broadcast %711 : vector<1x32xf32> to vector<16x32xf32>
    %713 = arith.addf %710, %712 : vector<16x32xf32>
    %c0_115 = arith.constant 0 : index
    %c0_116 = arith.constant 0 : index
    %714 = vector.load %arg11[%c0_115, %c0_116] : memref<32x5xf32, #tpu.memory_space<vmem>>, vector<32x5xf32>
    %cst_117 = arith.constant dense<0.000000e+00> : vector<16x5xf32>
    %715 = tpu.matmul %713, %714, %cst_117 {dimension_numbers = #tpu.dot_dimension_numbers<[1], [0], [0], [1], [0, 0, 1, 1], [], []>} : vector<16x32xf32>, vector<32x5xf32>, vector<16x5xf32> -> vector<16x5xf32>
    %c0_118 = arith.constant 0 : index
    %c0_119 = arith.constant 0 : index
    %716 = vector.load %arg12[%c0_118, %c0_119] : memref<1x5xf32, #tpu.memory_space<vmem>>, vector<1x5xf32>
    %717 = vector.broadcast %716 : vector<1x5xf32> to vector<16x5xf32>
    %718 = arith.addf %715, %717 : vector<16x5xf32>
    %719 = vector.shape_cast %718 : vector<16x5xf32> to vector<2x8x5xf32>
    %c0_120 = arith.constant 0 : index
    %c0_121 = arith.constant 0 : index
    %c0_122 = arith.constant 0 : index
    %720 = vector.load %arg13[%c0_120, %c0_121, %c0_122] : memref<2x8x5xf32, #tpu.memory_space<vmem>>, vector<2x8x5xf32>
    tpu.vector_store %arg13[%c0_120, %c0_121, %c0_122], %719 {strides = array<i32>} : memref<2x8x5xf32, #tpu.memory_space<vmem>>, vector<2x8x5xf32>,
    %cst_123 = arith.constant dense<0xFF800000> : vector<2x8xf32>
    %721 = vector.multi_reduction <maximumf>, %719, %cst_123 [2] : vector<2x8x5xf32> to vector<2x8xf32>
    %722 = vector.shape_cast %721 : vector<2x8xf32> to vector<2x8x1xf32>
    %723 = vector.broadcast %722 : vector<2x8x1xf32> to vector<2x8x5xf32>
    %724 = arith.subf %719, %723 : vector<2x8x5xf32>
    %725 = math.exp %724 : vector<2x8x5xf32>
    %cst_124 = arith.constant dense<0.000000e+00> : vector<2x8xf32>
    %726 = vector.multi_reduction <add>, %725, %cst_124 [2] : vector<2x8x5xf32> to vector<2x8xf32>
    %727 = vector.shape_cast %726 : vector<2x8xf32> to vector<2x8x1xf32>
    %728 = math.log %727 : vector<2x8x1xf32>
    %729 = arith.addf %722, %728 : vector<2x8x1xf32>
    %730 = tpu.iota {dimensions = array<i32: 2>} : vector<2x8x5xi32>
    %c0_125 = arith.constant 0 : index
    %c0_126 = arith.constant 0 : index
    %731 = vector.load %arg2[%c0_125, %c0_126] : memref<2x8xi32, #tpu.memory_space<vmem>>, vector<2x8xi32>
    %732 = vector.shape_cast %731 : vector<2x8xi32> to vector<2x8x1xi32>
    %733 = vector.broadcast %732 : vector<2x8x1xi32> to vector<2x8x5xi32>
    %734 = arith.cmpi eq, %733, %730 : vector<2x8x5xi32>
    %cst_127 = arith.constant 0.000000e+00 : f32
    %735 = vector.broadcast %cst_127 : f32 to vector<2x8x5xf32>
    %736 = arith.select %734, %719, %735 : vector<2x8x5xi1>, vector<2x8x5xf32>
    %cst_128 = arith.constant dense<0.000000e+00> : vector<2x8xf32>
    %737 = vector.multi_reduction <add>, %736, %cst_128 [2] : vector<2x8x5xf32> to vector<2x8xf32>
    %738 = vector.shape_cast %737 : vector<2x8xf32> to vector<2x8x1xf32>
    %c0_i32_129 = arith.constant 0 : i32
    %739 = vector.broadcast %c0_i32_129 : i32 to vector<2x8xi32>
    %740 = arith.cmpi eq, %0, %739 : vector<2x8xi32>
    %cst_130 = arith.constant 0.000000e+00 : f32
    %cst_131 = arith.constant 1.000000e+00 : f32
    %741 = vector.broadcast %cst_130 : f32 to vector<2x8xf32>
    %742 = vector.broadcast %cst_131 : f32 to vector<2x8xf32>
    %743 = arith.select %740, %741, %742 : vector<2x8xi1>, vector<2x8xf32>
    %744 = vector.shape_cast %743 : vector<2x8xf32> to vector<2x8x1xf32>
    %745 = arith.subf %729, %738 : vector<2x8x1xf32>
    %746 = arith.mulf %745, %744 : vector<2x8x1xf32>
    %747 = vector.shape_cast %746 : vector<2x8x1xf32> to vector<1x2x8x1xf32>
    %cst_132 = arith.constant dense<0.000000e+00> : vector<1xf32>
    %748 = vector.multi_reduction <add>, %747, %cst_132 [1, 2, 3] : vector<1x2x8x1xf32> to vector<1xf32>
    %749 = vector.shape_cast %748 : vector<1xf32> to vector<1x1x1x1xf32>
    %750 = vector.extract %749[0, 0, 0, 0] : f32 from vector<1x1x1x1xf32>
    %751 = vector.shape_cast %744 : vector<2x8x1xf32> to vector<1x2x8x1xf32>
    %cst_133 = arith.constant dense<0.000000e+00> : vector<1xf32>
    %752 = vector.multi_reduction <add>, %751, %cst_133 [1, 2, 3] : vector<1x2x8x1xf32> to vector<1xf32>
    %753 = vector.shape_cast %752 : vector<1xf32> to vector<1x1x1x1xf32>
    %754 = vector.extract %753[0, 0, 0, 0] : f32 from vector<1x1x1x1xf32>
    %cst_134 = arith.constant 1.000000e+00 : f32
    %755 = arith.maximumf %754, %cst_134 : f32
    %756 = arith.divf %750, %755 : f32
    %c0_135 = arith.constant 0 : index
    %c0_136 = arith.constant 0 : index
    %757 = memref.load %arg14[%c0_135, %c0_136] : memref<1x1xf32, #tpu.memory_space<smem>>
    memref.store %756, %arg14[%c0_135, %c0_136] : memref<1x1xf32, #tpu.memory_space<smem>>
    return
  }
  func.func @transform_0(%arg0: i32) -> (i32, i32) {
    %c0_i32 = arith.constant 0 : i32
    %c0_i32_0 = arith.constant 0 : i32
    %c0_i32_1 = arith.constant 0 : i32
    return %c0_i32, %c0_i32_0 : i32, i32
  }
  func.func @transform_1(%arg0: i32) -> (i32, i32) {
    %c0_i32 = arith.constant 0 : i32
    %c0_i32_0 = arith.constant 0 : i32
    %c0_i32_1 = arith.constant 0 : i32
    return %c0_i32, %c0_i32_0 : i32, i32
  }
  func.func @transform_2(%arg0: i32) -> (i32, i32) {
    %c0_i32 = arith.constant 0 : i32
    %c0_i32_0 = arith.constant 0 : i32
    %c0_i32_1 = arith.constant 0 : i32
    return %c0_i32, %c0_i32_0 : i32, i32
  }
  func.func @transform_3(%arg0: i32) -> (i32, i32, i32) {
    %c0_i32 = arith.constant 0 : i32
    %c0_i32_0 = arith.constant 0 : i32
    %c0_i32_1 = arith.constant 0 : i32
    %c0_i32_2 = arith.constant 0 : i32
    return %c0_i32, %c0_i32_0, %c0_i32_1 : i32, i32, i32
  }
  func.func @transform_4(%arg0: i32) -> (i32, i32, i32) {
    %c0_i32 = arith.constant 0 : i32
    %c0_i32_0 = arith.constant 0 : i32
    %c0_i32_1 = arith.constant 0 : i32
    %c0_i32_2 = arith.constant 0 : i32
    return %c0_i32, %c0_i32_0, %c0_i32_1 : i32, i32, i32
  }
  func.func @transform_5(%arg0: i32) -> (i32, i32, i32) {
    %c0_i32 = arith.constant 0 : i32
    %c0_i32_0 = arith.constant 0 : i32
    %c0_i32_1 = arith.constant 0 : i32
    %c0_i32_2 = arith.constant 0 : i32
    return %c0_i32, %c0_i32_0, %c0_i32_1 : i32, i32, i32
  }
  func.func @transform_6(%arg0: i32) -> (i32, i32) {
    %c0_i32 = arith.constant 0 : i32
    %c0_i32_0 = arith.constant 0 : i32
    %c0_i32_1 = arith.constant 0 : i32
    return %c0_i32, %c0_i32_0 : i32, i32
  }
  func.func @transform_7(%arg0: i32) -> (i32, i32) {
    %c0_i32 = arith.constant 0 : i32
    %c0_i32_0 = arith.constant 0 : i32
    %c0_i32_1 = arith.constant 0 : i32
    return %c0_i32, %c0_i32_0 : i32, i32
  }
  func.func @transform_8(%arg0: i32) -> (i32, i32) {
    %c0_i32 = arith.constant 0 : i32
    %c0_i32_0 = arith.constant 0 : i32
    %c0_i32_1 = arith.constant 0 : i32
    return %c0_i32, %c0_i32_0 : i32, i32
  }
  func.func @transform_9(%arg0: i32) -> (i32, i32) {
    %c0_i32 = arith.constant 0 : i32
    %c0_i32_0 = arith.constant 0 : i32
    %c0_i32_1 = arith.constant 0 : i32
    return %c0_i32, %c0_i32_0 : i32, i32
  }
  func.func @transform_10(%arg0: i32) -> (i32, i32) {
    %c0_i32 = arith.constant 0 : i32
    %c0_i32_0 = arith.constant 0 : i32
    %c0_i32_1 = arith.constant 0 : i32
    return %c0_i32, %c0_i32_0 : i32, i32
  }
  func.func @transform_11(%arg0: i32) -> (i32, i32) {
    %c0_i32 = arith.constant 0 : i32
    %c0_i32_0 = arith.constant 0 : i32
    %c0_i32_1 = arith.constant 0 : i32
    return %c0_i32, %c0_i32_0 : i32, i32
  }
  func.func @transform_12(%arg0: i32) -> (i32, i32, i32) {
    %c0_i32 = arith.constant 0 : i32
    %c0_i32_0 = arith.constant 0 : i32
    %c0_i32_1 = arith.constant 0 : i32
    %c0_i32_2 = arith.constant 0 : i32
    return %c0_i32, %c0_i32_0, %c0_i32_1 : i32, i32, i32
  }
  func.func @transform_13(%arg0: i32) -> (i32, i32) {
    %c0_i32 = arith.constant 0 : i32
    %c0_i32_0 = arith.constant 0 : i32
    %c0_i32_1 = arith.constant 0 : i32
    return %c0_i32, %c0_i32_0 : i32, i32
  }
}

</mosaic_0001>

<bundles_post_ra>
// kernel: model_ee_forward.1
= control target key start
LH: loop header
LB: loop body
LE: loop exit
PB: predicated region body
PF: predicated region fallthrough
CT: control target
= control target key end

     0   :  { %19 = vsyncpa [#allocation3], 0  ;;  %s6985_s0 = inlined_call_operand.vmem [shape: s32[2,8], index: 0, kind: input, shape index: {}]   ;;  %s6986_s1 = inlined_call_operand.vmem [shape: s32[2,8], index: 1, kind: input, shape index: {}]   ;;  %s6987_s2 = inlined_call_operand.vmem [shape: f32[128,32], index: 2, kind: input, shape index: {}]   ;;  %s6988_s3 = inlined_call_operand.vmem [shape: f32[2,32,128], index: 3, kind: input, shape index: {}]   ;;  %s6989_s4 = inlined_call_operand.vmem [shape: f32[2,32,128], index: 4, kind: input, shape index: {}]   ;;  %s6990_s5 = inlined_call_operand.hbm [shape: f32[2,1,128], index: 5, kind: input, shape index: {}]   ;;  %s6991_s6 = inlined_call_operand.vmem [shape: f32[32,96], index: 6, kind: input, shape index: {}]   ;;  %s6992_s7 = inlined_call_operand.hbm [shape: f32[1,96], index: 7, kind: input, shape index: {}]   ;;  %s6993_s8 = inlined_call_operand.vmem [shape: f32[32,32], index: 8, kind: input, shape index: {}]   ;;  %s6994_s9 = inlined_call_operand.hbm [shape: f32[1,32], index: 9, kind: input, shape index: {}]   ;;  %s6995_s10 = inlined_call_operand.vmem [shape: f32[32,5], index: 10, kind: input, shape index: {}]   ;;  %s6996_s11 = inlined_call_operand.hbm [shape: f32[1,5], index: 11, kind: input, shape index: {}]   ;;  %s6997_s12 = inlined_call_operand.vmem [shape: f32[2,8,5], index: 12, kind: output, shape index: {0}]   ;;  %s6998_s13 = inlined_call_operand.hbm [shape: f32[1,1], index: 13, kind: output, shape index: {1}]  }
   0x1   :  { %20 = vsyncpa [#allocation6], 0 }
   0x2   :  { %21 = vsyncpa [#allocation9], 0 }
   0x3   :  { %22 = vsyncpa [#allocation4], 0  ;;  %s5849_s25 = smov [#allocation5]   ;;  %s5850_s27 = smov [#allocation2]  }
   0x4   :  { %s53_s26 = sshll.u32 %s5849_s25, 4  ;;  %s38_s28 = sshll.u32 %s5850_s27, 4  ;;  %s54_s26 = int_to_ptr.vmem [resolvable:$true] %s53_s26  ;;  %s5938_s28 = int_to_ptr.vmem [resolvable:$true] %s38_s28 }
   0x5   :  { %s5743_s14 = scalar_lea.hbm %s6992_s7, 16 }
   0x6   :  { %p5744_p0 = scmp.ne.s32.totalorder %s6992_s7, %s5743_s14  ;;  %p5747_p1 = scmp.lt.u32.totalorder %s5743_s14, %s6992_s7 }
   0x8   :  { %p5749_p2 = pnand %p5747_p1, %p5744_p0 }
   0xa   :  { %5752 = shalt.err (!%p5749_p2)
}
   0xb   :  { %s5753_s19 = scalar_lea.vmem %s54_s26, 16  ;;  %s5757_s20 = scalar_lea.vmem %s54_s26, 32 }
   0xc   :  { %p5754_p3 = scmp.ne.s32.totalorder %s54_s26, %s5753_s19  ;;  %p5758_p4 = scmp.lt.s32.totalorder %s54_s26, %s54_s26 }
   0xd   :  { %p5759_p5 = scmp.lt.s32.totalorder %s5757_s20, %s5753_s19 }
   0xf   :  { %p5760_p6 = por %p5759_p5, %p5758_p4 }
  0x11   :  { %p5761_p7 = pnand %p5760_p6, %p5754_p3 }
  0x13   :  { %5764 = shalt.err (!%p5761_p7)
}
  0x14   :  { %56 = dma.hbm_to_vmem [thread:$0]  %s6992_s7, 16, %s54_s26, [#allocation6]  }
  0x15   :  { %s5765_s25 = scalar_lea.hbm %s6990_s5, 32 }
  0x16   :  { %p5766_p8 = scmp.ne.s32.totalorder %s6990_s5, %s5765_s25  ;;  %p5769_p9 = scmp.lt.u32.totalorder %s5765_s25, %s6990_s5 }
  0x18   :  { %p5771_p10 = pnand %p5769_p9, %p5766_p8 }
  0x1a   :  { %5774 = shalt.err (!%p5771_p10)
}
  0x1b   :  { %s5775_s15 = scalar_lea.vmem %s5938_s28, 32  ;;  %p5780_p12 = scmp.lt.s32.totalorder %s5938_s28, %s5938_s28 }
  0x1c   :  { %p5776_p11 = scmp.ne.s32.totalorder %s5938_s28, %s5775_s15  ;;  %p5781_p13 = scmp.lt.s32.totalorder %s5775_s15, %s5775_s15 }
  0x1e   :  { %p5782_p0 = por %p5781_p13, %p5780_p12 }
  0x20   :  { %p5783_p1 = pnand %p5782_p0, %p5776_p11 }
  0x22   :  { %5786 = shalt.err (!%p5783_p1)
}
  0x23   :  { %s5851_s7 = smov 16   ;;  %s5852_s26 = smov 1  }
  0x24   :  { %44 = dma.hbm_to_vmem [thread:$0]  %s6990_s5, 32, %s5938_s28, [#allocation3], %s5851_s7, %s5851_s7, %s5852_s26  }
  0x25   :  { %s5853_s18 = smov [#allocation7]   ;;  %s5854_s20 = smov [#allocation8]  }
  0x26   :  { %s65_s19 = sshll.u32 %s5853_s18, 4  ;;  %s77_s21 = sshll.u32 %s5854_s20, 4  ;;  %s66_s19 = int_to_ptr.vmem [resolvable:$true] %s65_s19  ;;  %s78_s21 = int_to_ptr.vmem [resolvable:$true] %s77_s21 }
  0x27   :  { %s5787_s24 = scalar_lea.hbm %s6994_s9, 16 }
  0x28   :  { %p5788_p2 = scmp.ne.s32.totalorder %s6994_s9, %s5787_s24  ;;  %p5791_p3 = scmp.lt.u32.totalorder %s5787_s24, %s6994_s9 }
  0x2a   :  { %p5793_p4 = pnand %p5791_p3, %p5788_p2 }
  0x2c   :  { %5796 = shalt.err (!%p5793_p4)
}
  0x2d   :  { %s5797_s5 = scalar_lea.vmem %s66_s19, 16  ;;  %s5801_s28 = scalar_lea.vmem %s66_s19, 32 }
  0x2e   :  { %p5798_p5 = scmp.ne.s32.totalorder %s66_s19, %s5797_s5  ;;  %p5802_p6 = scmp.lt.s32.totalorder %s66_s19, %s66_s19 }
  0x2f   :  { %p5803_p7 = scmp.lt.s32.totalorder %s5801_s28, %s5797_s5 }
  0x31   :  { %p5804_p8 = por %p5803_p7, %p5802_p6 }
  0x33   :  { %p5805_p9 = pnand %p5804_p8, %p5798_p5 }
  0x35   :  { %5808 = shalt.err (!%p5805_p9)
}
  0x36   :  { %68 = dma.hbm_to_vmem [thread:$0]  %s6994_s9, 16, %s66_s19, [#allocation6]  }
  0x37   :  { %s5809_s16 = scalar_lea.hbm %s6996_s11, 16 }
  0x38   :  { %p5810_p10 = scmp.ne.s32.totalorder %s6996_s11, %s5809_s16  ;;  %p5813_p11 = scmp.lt.u32.totalorder %s5809_s16, %s6996_s11 }
  0x3a   :  { %p5815_p12 = pnand %p5813_p11, %p5810_p10 }
  0x3c   :  { %5818 = shalt.err (!%p5815_p12)
}
  0x3d   :  { %s5819_s23 = scalar_lea.vmem %s78_s21, 16  ;;  %s5823_s24 = scalar_lea.vmem %s78_s21, 32 }
  0x3e   :  { %p5820_p13 = scmp.ne.s32.totalorder %s78_s21, %s5819_s23  ;;  %p5824_p0 = scmp.lt.s32.totalorder %s78_s21, %s78_s21 }
  0x3f   :  { %p5825_p1 = scmp.lt.s32.totalorder %s5823_s24, %s5819_s23 }
  0x41   :  { %p5826_p2 = por %p5825_p1, %p5824_p0 }
  0x43   :  { %p5827_p3 = pnand %p5826_p2, %p5820_p13 }
  0x45   :  { %5830 = shalt.err (!%p5827_p3)
}
  0x46   :  { %80 = dma.hbm_to_vmem [thread:$0]  %s6996_s11, 16, %s78_s21, [#allocation9]  }
  0x47   :  { %5841 = dma.done.wait [#allocation3], 32  }
  0x48   :  { %5842 = vsyncadd [#allocation3], 4294967264 }
  0x49   :  { %5843 = dma.done.wait [#allocation6], 32  }
  0x4a   :  { %5844 = vsyncadd [#allocation6], 4294967264 }
  0x4b   :  { %5845 = dma.done.wait [#allocation9], 16  }
  0x4c   :  { %5846 = vsyncadd [#allocation9], 4294967280  ;;  %v96_v0 = vlaneseq  ;;  %v93_v4 = vld [vmem:[%s6985_s0] sm:$0x3]  ;;  %v119_v6 = vld [vmem:[%s6987_s2 + $0x8] sm:$0xff]  ;;  %v5855_v39 = vmov 1.0  }
  0x4d   :  { %v118_v5 = vld [vmem:[%s6987_s2] sm:$0xff]  ;;  %v120_v9 = vld [vmem:[%s6987_s2 + $0x10] sm:$0xff]  ;;  %v121_v10 = vld [vmem:[%s6987_s2 + $0x18] sm:$0xff]  ;;  %v5856_v44 = vmov 0.0|0.0   ;;  %vm5857_vm2 = vmmov 0   ;;  %v5858_v48 = vmov 0.0  }
  0x4e   :  { %v5993_v1 = vshrl.u32 %v96_v0, 7  ;;  %v5381_v8 = vpack.c.bf16 %v119_v6, %v118_v5  ;;  %v5385_v11 = vpack.c.bf16 %v121_v10, %v120_v9  ;;  %v122_v12 = vld [vmem:[%s6987_s2 + $0x20] sm:$0xff]  ;;  %v123_v13 = vld [vmem:[%s6987_s2 + $0x28] sm:$0xff]  ;;  %v124_v16 = vld [vmem:[%s6987_s2 + $0x30] sm:$0xff]  ;;  %v6066_v37 = vand.u32 127, %v96_v0  ;;  %s5859_s28 = smov 32  }
  0x4f   :  { %v5389_v15 = vpack.c.bf16 %v123_v13, %v122_v12  ;;  %v125_v17 = vld [vmem:[%s6987_s2 + $0x38] sm:$0xff]  ;;  %v229_v18 = vld [vmem:[%s6988_s3] sm:$0xff]  ;;  %v230_v19 = vld [vmem:[%s6988_s3 + $0x8] sm:$0xff]  ;;  %vm240_vm3 = vcmask 261120   ;;  %vm327_vm5 = vcmask 1041409   ;;  %s5860_s14 = smov 64  }
  0x50   :  { %v5996_v2 = vsub.s32 0, %v5993_v1  ;;  %v5999_v3 = vsub.s32 1, %v5993_v1  ;;  %5382 = vmatprep.subr.bf16.mxu0 %v5381_v8  ;;  %v231_v20 = vld [vmem:[%s6988_s3 + $0x10] sm:$0xff]  ;;  %v5413_v21 = vpack.c.bf16 %v230_v19, %v229_v18  ;;  %v232_v22 = vld [vmem:[%s6988_s3 + $0x18] sm:$0xff]  ;;  %v5393_v24 = vpack.c.bf16 %v125_v17, %v124_v16  ;;  %v126_v25 = vld [vmem:[%s6987_s2 + $0x40] sm:$0xff]  ;;  %s5864_s26 = smov 104  }
  0x51   :  { %5384 = vmatpush3.bf16.msra.mxu0 %v5381_v8  ;;  %v5417_v23 = vpack.c.bf16 %v232_v22, %v231_v20  ;;  %v127_v26 = vld [vmem:[%s6987_s2 + $0x48] sm:$0xff]  ;;  %v128_v28 = vld [vmem:[%s6987_s2 + $0x50] sm:$0xff]  ;;  %v129_v29 = vld [vmem:[%s6987_s2 + $0x58] sm:$0xff]  ;;  %v213_v51 = vand.u32 31, %v6066_v37  ;;  %vm222_vm6 = vcmp.lt.s32.totalorder %v6066_v37, 16  ;;  %vm1161_vm7 = vcmp.eq.s32.totalorder %v5993_v1, 0 }
  0x52   :  { %v101_v7 = vrot.slane %v93_v4, %v5996_v2  ;;  %v108_v14 = vrot.slane %v93_v4, %v5999_v3  ;;  %5386 = vmatprep.subr.bf16.mxu0 %v5385_v11  ;;  %5414 = vmatprep.subr.bf16.mxu1 %v5413_v21  ;;  %v5397_v27 = vpack.c.bf16 %v127_v26, %v126_v25  ;;  %v130_v31 = vld [vmem:[%s6987_s2 + $0x60] sm:$0xff]  ;;  %v131_v32 = vld [vmem:[%s6987_s2 + $0x68] sm:$0xff]  ;;  %v132_v34 = vld [vmem:[%s6987_s2 + $0x70] sm:$0xff]  ;;  %vm1202_vm8 = vcmp.eq.s32.totalorder %v5993_v1, 1  ;;  %s5865_s16 = smov 96  }
  0x53   :  { %5416 = vmatpush3.bf16.msra.mxu1 %v5413_v21  ;;  %v5401_v30 = vpack.c.bf16 %v129_v29, %v128_v28  ;;  %v5405_v33 = vpack.c.bf16 %v131_v32, %v130_v31  ;;  %v133_v35 = vld [vmem:[%s6987_s2 + $0x78] sm:$0xff]  ;;  %v225_v41 = vld [vmem:[%s6989_s4] sm:$0xff]  ;;  %v226_v42 = vld [vmem:[%s6989_s4 + $0x8] sm:$0xff]  ;;  %vm6112_vm4 = vcmp.lt.s32.totalorder %v213_v51, 16  ;;  %vm1243_vm9 = vcmp.eq.s32.totalorder %v5993_v1, 2 }
  0x54   :  { %103 = vbcast.lane.b32.xlu0 %v101_v7, 256  ;;  %5418 = vmatprep.subr.bf16.mxu1 %v5417_v23  ;;  %v5409_v36 = vpack.c.bf16 %v133_v35, %v132_v34  ;;  %v6078_v43 = vpack.c.bf16 %v226_v42, %v225_v41  ;;  %v227_v45 = vld [vmem:[%s6989_s4 + $0x10] sm:$0xff]  ;;  %v228_v46 = vld [vmem:[%s6989_s4 + $0x18] sm:$0xff]  ;;  %v4793_v52 = vld [vmem:[#allocation2] ss:$0 sm:$0xff]  ;;  %vm1284_vm10 = vcmp.eq.s32.totalorder %v5993_v1, 3 }
  0x55   :  { %5388 = vmatpush3.bf16.msra.mxu0 %v5385_v11  ;;  %v6090_v47 = vpack.c.bf16 %v228_v46, %v227_v45  ;;  %vm1323_vm11 = vcmp.eq.s32.totalorder %v5993_v1, 4  ;;  %vm1362_vm12 = vcmp.eq.s32.totalorder %v5993_v1, 5  ;;  %vm1401_vm13 = vcmp.eq.s32.totalorder %v5993_v1, 6 }
  0x56   :  { %5390 = vmatprep.subr.bf16.mxu0 %v5389_v15  ;;  %vm1440_vm14 = vcmp.eq.s32.totalorder %v5993_v1, 7  ;;  %vm2811_vm15 = vcmask 64512  }
  0x57   :  { %5420 = vmatpush3.bf16.msra.mxu1 %v5417_v23 }
  0x58   :  { %110 = vbcast.lane.b32.xlu0 %v108_v14, 256  ;;  %5421 = vmatprep.subr.bf16.mxu1 %v5856_v44 }
  0x59   :  { %5392 = vmatpush3.bf16.msra.mxu0 %v5389_v15 }
  0x5a   :  { %5394 = vmatprep.subr.bf16.mxu0 %v5393_v24 }
  0x5d   :  { %5396 = vmatpush3.bf16.msra.mxu0 %v5393_v24 }
  0x5e   :  { %5398 = vmatprep.subr.bf16.mxu0 %v5397_v27 }
  0x61   :  { %5400 = vmatpush3.bf16.msra.mxu0 %v5397_v27 }
  0x62   :  { %5402 = vmatprep.subr.bf16.mxu0 %v5401_v30 }
  0x65   :  { %5404 = vmatpush3.bf16.msra.mxu0 %v5401_v30 }
  0x66   :  { %5406 = vmatprep.subr.bf16.mxu0 %v5405_v33 }
  0x69   :  { %5408 = vmatpush3.bf16.msra.mxu0 %v5405_v33 }
  0x6a   :  { %5410 = vmatprep.subr.bf16.mxu0 %v5409_v36 }
  0x6d   :  { %5412 = vmatpush3.bf16.msra.mxu0 %v5409_v36 }
  0x6e   :  { %5439 = vmatprep.subr.bf16.mxu0 %v5856_v44 }
  0xc6   :  { %v104_v38 = vpop.permute.xlu0 %103 }
  0xc7   :  { %vm112_vm0 = vcmp.eq.s32.totalorder %v104_v38, %v6066_v37 }
  0xc8   :  { %5058 = vmatprep.mubr.msk.f32.mxu0 %vm112_vm0, %v5855_v39 }
  0xca   :  { %v111_v40 = vpop.permute.xlu0 %110 }
  0xcb   :  { %vm113_vm1 = vcmp.eq.s32.totalorder %v111_v40, %v6066_v37 }
  0xcc   :  { %5059 = vmatmul.mubr.msk.f32.vlgmr.msra.gmra.mrb[0].mxu0 %vm113_vm1, %v5855_v39  ;;  %vm3433_vm1 = vcmask 1041408  }
  0xcd   :  { %5441 = vmatpush3.bf16.msra.mxu0 %v6078_v43  ;;  %5113 = vmatprep.mubr.msk.f32.mxu0 %vm5857_vm2, %v5858_v48 }
  0xce   :  { %5442 = vmatprep.subr.bf16.mxu0 %v5856_v44 }
  0xd1   :  { %5444 = vmatpush3.bf16.msra.mxu0 %v6090_v47 }
  0xd2   :  { %5451 = vmatprep.subr.bf16.mxu0 %v5856_v44 }
 0x19f   :  { %v5060_v49 = vpop.f32.mrb[0].mxu0 }
 0x1a0   :  { %v200_v50 = vpop.f32.mrb[1].mxu0 }
 0x1a1   :  { %5069 = vmatprep.mubr.msk.f32.mxu1 %vm240_vm3, %v200_v50 }
 0x1a2   :  { %5070 = vmatmul.mubr.msk.f32.vlgmr.msra.gmra.mrb[0].mxu1 %vm240_vm3, %v5060_v49 }
 0x1a3   :  { %5423 = vmatpush3.bf16.msra.mxu1 %v6078_v43  ;;  %5080 = vmatprep.mubr.msk.f32.mxu1 %vm5857_vm2, %v5858_v48 }
 0x1a4   :  { %5424 = vmatprep.subr.bf16.mxu1 %v5856_v44 }
 0x1a7   :  { %5426 = vmatpush3.bf16.msra.mxu1 %v6090_v47 }
 0x1a8   :  { %5427 = vmatprep.subr.bf16.mxu1 %v5856_v44 }
 0x1aa   :  { %5081 = vmatmul.mubr.f32.vlgmr.msra.gmra.mrb[2].mxu1 %v5858_v48 }
 0x1ab   :  { %5429 = vmatpush3.bf16.msra.mxu1 %v6078_v43  ;;  %5091 = vmatprep.mubr.msk.f32.mxu1 %vm5857_vm2, %v5858_v48 }
 0x1ac   :  { %5430 = vmatprep.subr.bf16.mxu1 %v5856_v44 }
 0x1af   :  { %5432 = vmatpush3.bf16.msra.mxu1 %v6090_v47 }
 0x1b0   :  { %5433 = vmatprep.subr.bf16.mxu1 %v5856_v44 }
 0x275   :  { %v5071_v53 = vpop.f32.mrb[0].mxu1 }
 0x276   :  { %v319_v54 = vadd.f32 %v5071_v53, %v4793_v52  ;;  %v313_v55 = vpop.f32.mrb[1].mxu1 }
 0x277   :  { %v314_v57 = vadd.f32 %v4793_v52, %v313_v55 }
 0x278   :  { %v326_v58 = vrot.slane %v319_v54, 7  ;;  %v331_v59 = vrot.slane %v319_v54, 6  ;;  %v339_v60 = vrot.slane %v319_v54, 5  ;;  %v344_v61 = vrot.slane %v319_v54, 1 }
 0x279   :  { %v330_v62 = vrot.slane %v314_v57, 7  ;;  %v335_v63 = vrot.slane %v314_v57, 1  ;;  %v338_v0 = vrot.slane %v314_v57, 6  ;;  %v343_v4 = vrot.slane %v314_v57, 2 }
 0x27a   :  { %v6117_v5 = vsel %vm327_vm5, %v326_v58, %v314_v57  ;;  %v347_v6 = vrot.slane %v314_v57, 5  ;;  %v348_v7 = vrot.slane %v319_v54, 4  ;;  %v352_v8 = vrot.slane %v314_v57, 3 }
 0x27b   :  { %v6120_v9 = vsel %vm327_vm5, %v331_v59, %v330_v62  ;;  %v6123_v10 = vsel %vm327_vm5, %v319_v54, %v335_v63  ;;  %v6126_v11 = vsel %vm327_vm5, %v339_v60, %v338_v0  ;;  %v6129_v12 = vsel %vm327_vm5, %v344_v61, %v343_v4 }
 0x27c   :  { %v334_v13 = vsel %vm6112_vm4, %v6117_v5, %v6120_v9  ;;  %v342_v14 = vsel %vm6112_vm4, %v6123_v10, %v6126_v11  ;;  %v6140_v15 = vsel %vm327_vm5, %v348_v7, %v347_v6  ;;  %v353_v16 = vrot.slane %v319_v54, 2 }
 0x27d   :  { %v434_v17 = vpop.f32.mrb[2].mxu1  ;;  %v351_v18 = vsel %vm6112_vm4, %v6129_v12, %v6140_v15  ;;  %v356_v19 = vrot.slane %v314_v57, 4  ;;  %v357_v20 = vrot.slane %v319_v54, 3  ;;  %v362_v21 = vsel %vm6112_vm4, %v6140_v15, %v6129_v12 }
 0x27e   :  { %v438_v22 = vadd.f32 %v434_v17, %v334_v13  ;;  %v5082_v23 = vpop.f32.mrb[3].mxu1  ;;  %v6151_v24 = vsel %vm327_vm5, %v353_v16, %v352_v8  ;;  %v363_v25 = vsel %vm6112_vm4, %v6126_v11, %v6123_v10  ;;  %v364_v26 = vsel %vm6112_vm4, %v6120_v9, %v6117_v5 }
 0x27f   :  { %v6162_v27 = vsel %vm327_vm5, %v357_v20, %v356_v19 }
 0x280   :  { %5572 = vtanh.f32 %v438_v22  ;;  %v360_v28 = vsel %vm6112_vm4, %v6151_v24, %v6162_v27  ;;  %v361_v29 = vsel %vm6112_vm4, %v6162_v27, %v6151_v24  ;;  %v439_v31 = vsub.f32 0.0, %v438_v22 }
 0x282   :  { %v440_v32 = vmul.f32 1.442695, %v439_v31 }
 0x284   :  { %5574 = vpow2.f32 %v440_v32 }
 0x28a   :  { %v5573_v30 = vpop.eup %5572 }
 0x28b   :  { %447 = vrot.lane.b32.xlu1 %v5573_v30, %s5859_s28 }
 0x28e   :  { %v5575_v33 = vpop.eup %5574 }
 0x28f   :  { %v442_v34 = vadd.f32 1.0, %v5575_v33 }
 0x291   :  { %5576 = vrcp.f32 %v442_v34 }
 0x29b   :  { %v5577_v35 = vpop.eup %5576 }
 0x29c   :  { %v445_v40 = vmul.f32 0.0, %v5577_v35 }
 0x2fd   :  { %v448_v36 = vpop.permute.xlu1 %447 }
 0x2fe   :  { %v450_v38 = vmul.f32 %v5577_v35, %v448_v36 }
 0x300   :  { %452 = vrot.lane.b32.xlu1 %v450_v38, %s5859_s28 }
 0x372   :  { %v453_v41 = vpop.permute.xlu1 %452 }
 0x373   :  { %v455_v42 = vadd.f32 %v453_v41, %v445_v40 }
 0x375   :  { %5578 = vtanh.f32 %v455_v42 }
 0x37f   :  { %v5579_v45 = vpop.eup %5578 }
 0x380   :  { %458 = vrot.lane.b32.xlu0 %v5579_v45, %s5859_s28 }
 0x3f2   :  { %v459_v46 = vpop.permute.xlu0 %458 }
 0x3f3   :  { %v461_v49 = vmul.f32 %v5577_v35, %v459_v46 }
 0x3f5   :  { %463 = vrot.lane.b32.xlu1 %v461_v49, %s5860_s14 }
 0x467   :  { %v6176_v50 = vpop.permute.xlu1 %463 }
 0x468   :  { %5092 = vmatmul.mubr.msk.f32.vlgmr.msra.gmra.mrb[4].mxu1 %vm240_vm3, %v6176_v50 }
 0x469   :  { %5435 = vmatpush3.bf16.msra.mxu1 %v6078_v43  ;;  %5102 = vmatprep.mubr.msk.f32.mxu1 %vm5857_vm2, %v5858_v48 }
 0x46a   :  { %5436 = vmatprep.subr.bf16.mxu1 %v5856_v44 }
 0x46d   :  { %5438 = vmatpush3.bf16.msra.mxu1 %v6090_v47 }
 0x46e   :  { %5445 = vmatprep.subr.bf16.mxu1 %v5856_v44 }
 0x53b   :  { %v533_v51 = vpop.f32.mrb[4].mxu1 }
 0x53c   :  { %v537_v52 = vadd.f32 %v533_v51, %v342_v14  ;;  %v5093_v53 = vpop.f32.mrb[5].mxu1 }
 0x53e   :  { %5580 = vtanh.f32 %v537_v52  ;;  %v538_v55 = vsub.f32 0.0, %v537_v52 }
 0x540   :  { %v539_v57 = vmul.f32 1.442695, %v538_v55 }
 0x542   :  { %5582 = vpow2.f32 %v539_v57 }
 0x548   :  { %v5581_v54 = vpop.eup %5580 }
 0x549   :  { %546 = vrot.lane.b32.xlu0 %v5581_v54, %s5859_s28 }
 0x54c   :  { %v5583_v58 = vpop.eup %5582 }
 0x54d   :  { %v541_v59 = vadd.f32 1.0, %v5583_v58 }
 0x54f   :  { %5584 = vrcp.f32 %v541_v59 }
 0x559   :  { %v5585_v60 = vpop.eup %5584 }
 0x55a   :  { %v544_v63 = vmul.f32 %v5585_v60, %v455_v42 }
 0x5bb   :  { %v547_v61 = vpop.permute.xlu0 %546 }
 0x5bc   :  { %v549_v62 = vmul.f32 %v5585_v60, %v547_v61 }
 0x5be   :  { %551 = vrot.lane.b32.xlu1 %v549_v62, %s5859_s28 }
 0x630   :  { %v552_v0 = vpop.permute.xlu1 %551 }
 0x631   :  { %v554_v4 = vadd.f32 %v552_v0, %v544_v63 }
 0x633   :  { %5586 = vtanh.f32 %v554_v4 }
 0x63d   :  { %v5587_v6 = vpop.eup %5586 }
 0x63e   :  { %557 = vrot.lane.b32.xlu0 %v5587_v6, %s5859_s28 }
 0x6b0   :  { %v558_v7 = vpop.permute.xlu0 %557 }
 0x6b1   :  { %v560_v8 = vmul.f32 %v5585_v60, %v558_v7 }
 0x6b3   :  { %562 = vrot.lane.b32.xlu1 %v560_v8, %s5860_s14 }
 0x725   :  { %v6190_v13 = vpop.permute.xlu1 %562 }
 0x726   :  { %5103 = vmatmul.mubr.msk.f32.vlgmr.msra.gmra.mrb[6].mxu1 %vm240_vm3, %v6190_v13 }
 0x727   :  { %5447 = vmatpush3.bf16.msra.mxu1 %v6078_v43  ;;  %5124 = vmatprep.mubr.msk.f32.mxu1 %vm5857_vm2, %v5858_v48 }
 0x728   :  { %5448 = vmatprep.subr.bf16.mxu1 %v5856_v44 }
 0x72b   :  { %5450 = vmatpush3.bf16.msra.mxu1 %v6090_v47 }
 0x72c   :  { %5457 = vmatprep.subr.bf16.mxu1 %v5856_v44 }
 0x7f9   :  { %v632_v14 = vpop.f32.mrb[6].mxu1 }
 0x7fa   :  { %v636_v16 = vadd.f32 %v632_v14, %v351_v18  ;;  %v5104_v17 = vpop.f32.mrb[7].mxu1 }
 0x7fc   :  { %5588 = vtanh.f32 %v636_v16  ;;  %v637_v20 = vsub.f32 0.0, %v636_v16 }
 0x7fe   :  { %v638_v22 = vmul.f32 1.442695, %v637_v20 }
 0x800   :  { %5590 = vpow2.f32 %v638_v22 }
 0x806   :  { %v5589_v19 = vpop.eup %5588 }
 0x807   :  { %645 = vrot.lane.b32.xlu0 %v5589_v19, %s5859_s28 }
 0x80a   :  { %v5591_v23 = vpop.eup %5590 }
 0x80b   :  { %v640_v30 = vadd.f32 1.0, %v5591_v23 }
 0x80d   :  { %5592 = vrcp.f32 %v640_v30 }
 0x817   :  { %v5593_v31 = vpop.eup %5592 }
 0x818   :  { %v643_v34 = vmul.f32 %v5593_v31, %v554_v4 }
 0x879   :  { %v646_v32 = vpop.permute.xlu0 %645 }
 0x87a   :  { %v648_v33 = vmul.f32 %v5593_v31, %v646_v32 }
 0x87c   :  { %650 = vrot.lane.b32.xlu1 %v648_v33, %s5859_s28 }
 0x8ee   :  { %v651_v35 = vpop.permute.xlu1 %650 }
 0x8ef   :  { %v653_v36 = vadd.f32 %v651_v35, %v643_v34 }
 0x8f1   :  { %5594 = vtanh.f32 %v653_v36 }
 0x8fb   :  { %v5595_v18 = vpop.eup %5594 }
 0x8fc   :  { %656 = vrot.lane.b32.xlu0 %v5595_v18, %s5859_s28 }
 0x96e   :  { %v657_v38 = vpop.permute.xlu0 %656 }
 0x96f   :  { %v659_v40 = vmul.f32 %v5593_v31, %v657_v38 }
 0x971   :  { %661 = vrot.lane.b32.xlu1 %v659_v40, %s5860_s14 }
 0x9e3   :  { %v6209_v41 = vpop.permute.xlu1 %661 }
 0x9e4   :  { %5114 = vmatmul.mubr.msk.f32.vlgmr.msra.gmra.mrb[2].mxu0 %vm240_vm3, %v6209_v41 }
 0x9e5   :  { %5453 = vmatpush3.bf16.msra.mxu0 %v6078_v43  ;;  %5135 = vmatprep.mubr.msk.f32.mxu0 %vm5857_vm2, %v5858_v48 }
 0x9e6   :  { %5454 = vmatprep.subr.bf16.mxu0 %v5856_v44 }
 0x9e9   :  { %5456 = vmatpush3.bf16.msra.mxu0 %v6090_v47 }
 0x9ea   :  { %5463 = vmatprep.subr.bf16.mxu0 %v5856_v44 }
 0xab7   :  { %v731_v42 = vpop.f32.mrb[2].mxu0 }
 0xab8   :  { %v735_v45 = vadd.f32 %v731_v42, %v360_v28  ;;  %v5115_v46 = vpop.f32.mrb[3].mxu0 }
 0xaba   :  { %5596 = vtanh.f32 %v735_v45  ;;  %v736_v51 = vsub.f32 0.0, %v735_v45 }
 0xabc   :  { %v737_v52 = vmul.f32 1.442695, %v736_v51 }
 0xabe   :  { %5598 = vpow2.f32 %v737_v52 }
 0xac4   :  { %v5597_v49 = vpop.eup %5596 }
 0xac5   :  { %744 = vrot.lane.b32.xlu0 %v5597_v49, %s5859_s28 }
 0xac8   :  { %v5599_v53 = vpop.eup %5598 }
 0xac9   :  { %v739_v54 = vadd.f32 1.0, %v5599_v53 }
 0xacb   :  { %5600 = vrcp.f32 %v739_v54 }
 0xad5   :  { %v5601_v55 = vpop.eup %5600 }
 0xad6   :  { %v742_v59 = vmul.f32 %v5601_v55, %v653_v36 }
 0xb37   :  { %v745_v57 = vpop.permute.xlu0 %744 }
 0xb38   :  { %v747_v58 = vmul.f32 %v5601_v55, %v745_v57 }
 0xb3a   :  { %749 = vrot.lane.b32.xlu1 %v747_v58, %s5859_s28 }
 0xbac   :  { %v750_v60 = vpop.permute.xlu1 %749 }
 0xbad   :  { %v752_v61 = vadd.f32 %v750_v60, %v742_v59 }
 0xbaf   :  { %5602 = vtanh.f32 %v752_v61 }
 0xbb9   :  { %v5603_v28 = vpop.eup %5602 }
 0xbba   :  { %755 = vrot.lane.b32.xlu0 %v5603_v28, %s5859_s28 }
 0xc2c   :  { %v756_v62 = vpop.permute.xlu0 %755 }
 0xc2d   :  { %v758_v63 = vmul.f32 %v5601_v55, %v756_v62 }
 0xc2f   :  { %760 = vrot.lane.b32.xlu1 %v758_v63, %s5860_s14 }
 0xca1   :  { %v6228_v0 = vpop.permute.xlu1 %760 }
 0xca2   :  { %5125 = vmatmul.mubr.msk.f32.vlgmr.msra.gmra.mrb[8].mxu1 %vm240_vm3, %v6228_v0 }
 0xca3   :  { %5459 = vmatpush3.bf16.msra.mxu1 %v6078_v43  ;;  %5146 = vmatprep.mubr.msk.f32.mxu1 %vm5857_vm2, %v5858_v48 }
 0xca4   :  { %5460 = vmatprep.subr.bf16.mxu1 %v5856_v44 }
 0xca7   :  { %5462 = vmatpush3.bf16.msra.mxu1 %v6090_v47 }
 0xd75   :  { %v830_v4 = vpop.f32.mrb[8].mxu1 }
 0xd76   :  { %v834_v6 = vadd.f32 %v830_v4, %v361_v29  ;;  %v5126_v7 = vpop.f32.mrb[9].mxu1 }
 0xd78   :  { %5604 = vtanh.f32 %v834_v6  ;;  %v835_v14 = vsub.f32 0.0, %v834_v6 }
 0xd7a   :  { %v836_v16 = vmul.f32 1.442695, %v835_v14 }
 0xd7c   :  { %5606 = vpow2.f32 %v836_v16 }
 0xd82   :  { %v5605_v8 = vpop.eup %5604 }
 0xd83   :  { %843 = vrot.lane.b32.xlu0 %v5605_v8, %s5859_s28 }
 0xd86   :  { %v5607_v17 = vpop.eup %5606 }
 0xd87   :  { %v838_v19 = vadd.f32 1.0, %v5607_v17 }
 0xd89   :  { %5608 = vrcp.f32 %v838_v19 }
 0xd93   :  { %v5609_v20 = vpop.eup %5608 }
 0xd94   :  { %v841_v30 = vmul.f32 %v5609_v20, %v752_v61 }
 0xdf5   :  { %v844_v22 = vpop.permute.xlu0 %843 }
 0xdf6   :  { %v846_v23 = vmul.f32 %v5609_v20, %v844_v22 }
 0xdf8   :  { %848 = vrot.lane.b32.xlu1 %v846_v23, %s5859_s28 }
 0xe6a   :  { %v849_v31 = vpop.permute.xlu1 %848 }
 0xe6b   :  { %v851_v24 = vadd.f32 %v849_v31, %v841_v30 }
 0xe6d   :  { %5610 = vtanh.f32 %v851_v24 }
 0xe77   :  { %v5611_v27 = vpop.eup %5610 }
 0xe78   :  { %854 = vrot.lane.b32.xlu0 %v5611_v27, %s5859_s28 }
 0xeea   :  { %v855_v29 = vpop.permute.xlu0 %854 }
 0xeeb   :  { %v857_v32 = vmul.f32 %v5609_v20, %v855_v29 }
 0xeed   :  { %859 = vrot.lane.b32.xlu1 %v857_v32, %s5860_s14 }
 0xf5f   :  { %v6246_v33 = vpop.permute.xlu1 %859 }
 0xf60   :  { %5136 = vmatmul.mubr.msk.f32.vlgmr.msra.gmra.mrb[4].mxu0 %vm240_vm3, %v6246_v33 }
 0xf61   :  { %5465 = vmatpush3.bf16.msra.mxu0 %v6078_v43  ;;  %5157 = vmatprep.mubr.msk.f32.mxu0 %vm5857_vm2, %v5858_v48 }
 0xf62   :  { %5466 = vmatprep.subr.bf16.mxu0 %v5856_v44 }
 0xf65   :  { %5468 = vmatpush3.bf16.msra.mxu0 %v6090_v47 }
 0xf66   :  { %5477 = vmatprep.subr.bf16.mxu0 %v5856_v44 }
0x1033   :  { %v929_v34 = vpop.f32.mrb[4].mxu0 }
0x1034   :  { %v933_v35 = vadd.f32 %v929_v34, %v362_v21  ;;  %v5137_v36 = vpop.f32.mrb[5].mxu0 }
0x1035   :  { %v4808_v36 = vld [vmem:[%s6988_s3 + $0x28] sm:$0xff] }
0x1036   :  { %5612 = vtanh.f32 %v933_v35  ;;  %v934_v43 = vsub.f32 0.0, %v933_v35  ;;  %v4807_v35 = vld [vmem:[%s6988_s3 + $0x20] sm:$0xff] }
0x1038   :  { %v935_v38 = vmul.f32 1.442695, %v934_v43  ;;  %v5469_v43 = vpack.c.bf16 %v4808_v36, %v4807_v35 }
0x103a   :  { %5614 = vpow2.f32 %v935_v38  ;;  %v4809_v38 = vld [vmem:[%s6988_s3 + $0x30] sm:$0xff]  ;;  %5470 = vmatprep.subr.bf16.mxu1 %v5469_v43 }
0x1040   :  { %v5613_v18 = vpop.eup %5612 }
0x1041   :  { %942 = vrot.lane.b32.xlu0 %v5613_v18, %s5859_s28 }
0x1044   :  { %v5615_v40 = vpop.eup %5614 }
0x1045   :  { %v937_v42 = vadd.f32 1.0, %v5615_v40  ;;  %v4810_v40 = vld [vmem:[%s6988_s3 + $0x38] sm:$0xff] }
0x1047   :  { %5616 = vrcp.f32 %v937_v42  ;;  %v5473_v42 = vpack.c.bf16 %v4810_v40, %v4809_v38 }
0x1051   :  { %v5617_v47 = vpop.eup %5616 }
0x1052   :  { %v940_v49 = vmul.f32 %v5617_v47, %v851_v24 }
0x10b3   :  { %v943_v45 = vpop.permute.xlu0 %942 }
0x10b4   :  { %v945_v46 = vmul.f32 %v5617_v47, %v943_v45  ;;  %v4804_v45 = vld [vmem:[%s6989_s4 + $0x28] sm:$0xff] }
0x10b6   :  { %947 = vrot.lane.b32.xlu1 %v945_v46, %s5859_s28 }
0x1128   :  { %v948_v51 = vpop.permute.xlu1 %947 }
0x1129   :  { %v950_v12 = vadd.f32 %v948_v51, %v940_v49  ;;  %v4805_v49 = vld [vmem:[%s6989_s4 + $0x30] sm:$0xff]  ;;  %v4806_v51 = vld [vmem:[%s6989_s4 + $0x38] sm:$0xff] }
0x112b   :  { %5618 = vtanh.f32 %v950_v12 }
0x1135   :  { %v5619_v15 = vpop.eup %5618 }
0x1136   :  { %953 = vrot.lane.b32.xlu0 %v5619_v15, %s5859_s28  ;;  %v5861_v15 = vmov 1966171168  }
0x11a8   :  { %v954_v21 = vpop.permute.xlu0 %953 }
0x11a9   :  { %v956_v52 = vmul.f32 %v5617_v47, %v954_v21  ;;  %v4803_v47 = vld [vmem:[%s6989_s4 + $0x20] sm:$0xff]  ;;  %v1164_v21 = vunpack.c.l.s4 %v5861_v15 }
0x11aa   :  { %v6311_v46 = vpack.c.bf16 %v4804_v45, %v4803_v47 }
0x11ab   :  { %958 = vrot.lane.b32.xlu1 %v956_v52, %s5860_s14  ;;  %v1165_v52 = vunpack.c.0.s8 %v1164_v21 }
0x121d   :  { %v6265_v53 = vpop.permute.xlu1 %958 }
0x121e   :  { %5147 = vmatmul.mubr.msk.f32.vlgmr.msra.gmra.mrb[10].mxu1 %vm240_vm3, %v6265_v53 }
0x121f   :  { %5472 = vmatpush3.bf16.msra.mxu1 %v5469_v43 }
0x1220   :  { %5474 = vmatprep.subr.bf16.mxu1 %v5473_v42 }
0x1223   :  { %5476 = vmatpush3.bf16.msra.mxu1 %v5473_v42 }
0x1224   :  { %5483 = vmatprep.subr.bf16.mxu1 %v5856_v44 }
0x12f1   :  { %v1028_v54 = vpop.f32.mrb[10].mxu1 }
0x12f2   :  { %v1032_v55 = vadd.f32 %v1028_v54, %v363_v25  ;;  %v5148_v57 = vpop.f32.mrb[11].mxu1  ;;  %v6335_v54 = vsub.s32 %v1165_v52, %v5993_v1 }
0x12f3   :  { %v1322_v57 = vsel %vm222_vm6, %v6246_v33, %v6228_v0 }
0x12f4   :  { %5620 = vtanh.f32 %v1032_v55  ;;  %v1033_v59 = vsub.f32 0.0, %v1032_v55  ;;  %v1283_v55 = vsel %vm222_vm6, %v6228_v0, %v6246_v33 }
0x12f6   :  { %v1034_v60 = vmul.f32 1.442695, %v1033_v59  ;;  %v1331_v59 = vrot.slane %v1322_v57, %v6335_v54 }
0x12f8   :  { %5622 = vpow2.f32 %v1034_v60  ;;  %v1242_v60 = vsel %vm222_vm6, %v6209_v41, %v6265_v53 }
0x12f9   :  { %v1251_v33 = vrot.slane %v1242_v60, %v6335_v54 }
0x12fe   :  { %v5621_v58 = vpop.eup %5620 }
0x12ff   :  { %1041 = vrot.lane.b32.xlu0 %v5621_v58, %s5859_s28  ;;  %v1292_v58 = vrot.slane %v1283_v55, %v6335_v54 }
0x1301   :  { %v1293_v0 = vcombine.high %v1292_v58, %v1292_v58 }
0x1302   :  { %v5623_v61 = vpop.eup %5622 }
0x1303   :  { %v1036_v28 = vadd.f32 1.0, %v5623_v61  ;;  %v1361_v61 = vsel %vm222_vm6, %v6265_v53, %v6209_v41  ;;  %v1252_v41 = vcombine.high %v1251_v33, %v1251_v33 }
0x1305   :  { %5624 = vrcp.f32 %v1036_v28 }
0x130f   :  { %v5625_v62 = vpop.eup %5624 }
0x1310   :  { %v1039_v6 = vmul.f32 %v5625_v62, %v950_v12  ;;  %v6320_v12 = vpack.c.bf16 %v4806_v51, %v4805_v49 }
0x1371   :  { %v1042_v63 = vpop.permute.xlu0 %1041 }
0x1372   :  { %v1044_v4 = vmul.f32 %v5625_v62, %v1042_v63  ;;  %v1370_v63 = vrot.slane %v1361_v61, %v6335_v54 }
0x1374   :  { %1046 = vrot.lane.b32.xlu1 %v1044_v4, %s5859_s28 }
0x13e6   :  { %v1047_v7 = vpop.permute.xlu1 %1046 }
0x13e7   :  { %v1049_v10 = vadd.f32 %v1047_v7, %v1039_v6  ;;  %v1300_v6 = vrot.slane %v1292_v58, %v6335_v54  ;;  %v1339_v7 = vrot.slane %v1331_v59, %v6335_v54 }
0x13e9   :  { %5626 = vtanh.f32 %v1049_v10 }
0x13f3   :  { %v5627_v11 = vpop.eup %5626 }
0x13f4   :  { %1052 = vrot.lane.b32.xlu0 %v5627_v11, %s5859_s28 }
0x1466   :  { %v1053_v25 = vpop.permute.xlu0 %1052 }
0x1467   :  { %v1055_v8 = vmul.f32 %v5625_v62, %v1053_v25  ;;  %v1332_v62 = vcombine.high %v1331_v59, %v1331_v59  ;;  %v1259_v25 = vrot.slane %v1251_v33, %v6335_v54 }
0x1469   :  { %1057 = vrot.lane.b32.xlu1 %v1055_v8, %s5860_s14  ;;  %v1346_v11 = vrot.slane %v1332_v62, %v6335_v54  ;;  %v1371_v8 = vcombine.high %v1370_v63, %v1370_v63 }
0x14db   :  { %v6278_v14 = vpop.permute.xlu1 %1057 }
0x14dc   :  { %5158 = vmatmul.mubr.msk.f32.vlgmr.msra.gmra.mrb[6].mxu0 %vm240_vm3, %v6278_v14  ;;  %v1201_v28 = vsel %vm222_vm6, %v6190_v13, %v6278_v14  ;;  %v1400_v53 = vsel %vm222_vm6, %v6278_v14, %v6190_v13  ;;  %v1352_v13 = vrot.slane %v1339_v7, %v5996_v2 }
0x14dd   :  { %5179 = vmatprep.mubr.msk.f32.mxu0 %vm5857_vm2, %v5858_v48  ;;  %5479 = vmatpush3.bf16.msra.mxu0 %v6311_v46  ;;  %v1210_v4 = vrot.slane %v1201_v28, %v6335_v54  ;;  %v1409_v14 = vrot.slane %v1400_v53, %v6335_v54 }
0x14de   :  { %5480 = vmatprep.subr.bf16.mxu0 %v5856_v44 }
0x14df   :  { %v1410_v36 = vcombine.high %v1409_v14, %v1409_v14  ;;  %v1417_v47 = vrot.slane %v1409_v14, %v6335_v54 }
0x14e1   :  { %5482 = vmatpush3.bf16.msra.mxu0 %v6320_v12  ;;  %v1424_v52 = vrot.slane %v1410_v36, %v6335_v54  ;;  %v1430_v61 = vrot.slane %v1417_v47, %v5996_v2 }
0x14e2   :  { %5489 = vmatprep.subr.bf16.mxu0 %v5856_v44 }
0x14e4   :  { %5180 = vmatmul.mubr.f32.vlgmr.msra.gmra.mrb[8].mxu0 %v5858_v48 }
0x14e5   :  { %5491 = vmatpush3.bf16.msra.mxu0 %v6311_v46  ;;  %5201 = vmatprep.mubr.msk.f32.mxu0 %vm5857_vm2, %v5858_v48 }
0x14e6   :  { %5492 = vmatprep.subr.bf16.mxu0 %v5856_v44 }
0x14e9   :  { %5494 = vmatpush3.bf16.msra.mxu0 %v6320_v12 }
0x14ea   :  { %5501 = vmatprep.subr.bf16.mxu0 %v5856_v44 }
0x15af   :  { %v1127_v16 = vpop.f32.mrb[6].mxu0 }
0x15b0   :  { %v1131_v17 = vadd.f32 %v1127_v16, %v364_v26  ;;  %v5159_v19 = vpop.f32.mrb[7].mxu0 }
0x15b1   :  { %v1211_v19 = vcombine.high %v1210_v4, %v1210_v4 }
0x15b2   :  { %5628 = vtanh.f32 %v1131_v17  ;;  %v1132_v22 = vsub.f32 0.0, %v1131_v17  ;;  %v1378_v17 = vrot.slane %v1370_v63, %v6335_v54 }
0x15b3   :  { %v1225_v35 = vrot.slane %v1211_v19, %v6335_v54  ;;  %v4811_v19 = vld [vmem:[#allocation2 + $0x1] ss:$0 sm:$0xff] }
0x15b4   :  { %v1133_v23 = vmul.f32 1.442695, %v1132_v22 }
0x15b5   :  { %v1235_v51 = vrot.slane %v1225_v35, %v5996_v2 }
0x15b6   :  { %5630 = vpow2.f32 %v1133_v23  ;;  %v1313_v23 = vrot.slane %v1300_v6, %v5996_v2  ;;  %v1434_v6 = vrot.slane %v1424_v52, %v5996_v2 }
0x15bc   :  { %v5629_v20 = vpop.eup %5628 }
0x15bd   :  { %1140 = vrot.lane.b32.xlu0 %v5629_v20, %s5859_s28 }
0x15c0   :  { %v5631_v30 = vpop.eup %5630 }
0x15c1   :  { %v1135_v31 = vadd.f32 1.0, %v5631_v30 }
0x15c3   :  { %5632 = vrcp.f32 %v1135_v31 }
0x15cd   :  { %v5633_v24 = vpop.eup %5632 }
0x15ce   :  { %v1138_v32 = vmul.f32 %v5633_v24, %v1049_v10  ;;  %v1307_v10 = vrot.slane %v1293_v0, %v6335_v54 }
0x15d0   :  { %v1317_v31 = vrot.slane %v1307_v10, %v5996_v2 }
0x162f   :  { %v1141_v27 = vpop.permute.xlu0 %1140 }
0x1630   :  { %v1143_v29 = vmul.f32 %v5633_v24, %v1141_v27  ;;  %v1218_v27 = vrot.slane %v1210_v4, %v6335_v54 }
0x1632   :  { %1145 = vrot.lane.b32.xlu1 %v1143_v29, %s5859_s28  ;;  %v1231_v40 = vrot.slane %v1218_v27, %v5996_v2 }
0x16a4   :  { %v1146_v34 = vpop.permute.xlu1 %1145 }
0x16a5   :  { %v1148_v5 = vadd.f32 %v1146_v34, %v1138_v32  ;;  %v1356_v32 = vrot.slane %v1346_v11, %v5996_v2 }
0x16a7   :  { %5634 = vtanh.f32 %v1148_v5 }
0x16b1   :  { %v5635_v9 = vpop.eup %5634 }
0x16b2   :  { %1151 = vrot.lane.b32.xlu0 %v5635_v9, %s5859_s28  ;;  %v1385_v9 = vrot.slane %v1371_v8, %v6335_v54 }
0x16b4   :  { %v1395_v33 = vrot.slane %v1385_v9, %v5996_v2 }
0x1724   :  { %v1152_v26 = vpop.permute.xlu0 %1151 }
0x1725   :  { %v1154_v18 = vmul.f32 %v5633_v24, %v1152_v26  ;;  %v1266_v24 = vrot.slane %v1252_v41, %v6335_v54  ;;  %v1391_v26 = vrot.slane %v1378_v17, %v5996_v2 }
0x1727   :  { %1157 = vrot.lane.b32.xlu1 %v1154_v18, %s5860_s14  ;;  %v1276_v38 = vrot.slane %v1266_v24, %v5996_v2 }
0x1799   :  { %v1158_v16 = vpop.permute.xlu1 %1157 }
0x179a   :  { %v1160_v20 = vsel %vm222_vm6, %v6176_v50, %v1158_v16  ;;  %v1439_v22 = vsel %vm222_vm6, %v1158_v16, %v6176_v50  ;;  %v1272_v50 = vrot.slane %v1259_v25, %v5996_v2  ;;  %v1683_v16 = vpop.f32.mrb[8].mxu0 }
0x179b   :  { %v1169_v30 = vrot.slane %v1160_v20, %v6335_v54  ;;  %v1448_v29 = vrot.slane %v1439_v22, %v6335_v54  ;;  %v5181_v17 = vpop.f32.mrb[9].mxu0 }
0x179d   :  { %v1170_v34 = vcombine.high %v1169_v30, %v1169_v30  ;;  %v1177_v5 = vrot.slane %v1169_v30, %v6335_v54  ;;  %v1449_v42 = vcombine.high %v1448_v29, %v1448_v29  ;;  %v1456_v21 = vrot.slane %v1448_v29, %v6335_v54 }
0x179f   :  { %v1184_v18 = vrot.slane %v1170_v34, %v6335_v54  ;;  %v1190_v43 = vrot.slane %v1177_v5, %v5996_v2  ;;  %v1463_v59 = vrot.slane %v1449_v42, %v6335_v54  ;;  %v1469_v62 = vrot.slane %v1456_v21, %v5996_v2 }
0x17a1   :  { %v1194_v45 = vrot.slane %v1184_v18, %v5996_v2  ;;  %v1197_v49 = vsel %vm1161_vm7, %v1190_v43, 0.0  ;;  %v1473_v41 = vrot.slane %v1463_v59, %v5996_v2 }
0x17a2   :  { %v1238_v15 = vsel %vm1202_vm8, %v1231_v40, %v1197_v49 }
0x17a3   :  { %v1198_v55 = vsel %vm1161_vm7, %v1194_v45, 0.0  ;;  %v1279_v57 = vsel %vm1243_vm9, %v1272_v50, %v1238_v15 }
0x17a4   :  { %v1239_v58 = vsel %vm1202_vm8, %v1235_v51, %v1198_v55  ;;  %v1320_v60 = vsel %vm1284_vm10, %v1313_v23, %v1279_v57 }
0x17a5   :  { %v1280_v28 = vsel %vm1243_vm9, %v1276_v38, %v1239_v58  ;;  %v1359_v0 = vsel %vm1323_vm11, %v1352_v13, %v1320_v60 }
0x17a6   :  { %v1398_v63 = vsel %vm1362_vm12, %v1391_v26, %v1359_v0  ;;  %v1321_v4 = vsel %vm1284_vm10, %v1317_v31, %v1280_v28 }
0x17a7   :  { %v1437_v7 = vsel %vm1401_vm13, %v1430_v61, %v1398_v63  ;;  %v1360_v10 = vsel %vm1323_vm11, %v1356_v32, %v1321_v4 }
0x17a8   :  { %v1476_v53 = vsel %vm1440_vm14, %v1469_v62, %v1437_v7  ;;  %v1399_v11 = vsel %vm1362_vm12, %v1395_v33, %v1360_v10 }
0x17a9   :  { %5168 = vmatprep.mubr.msk.f32.mxu1 %vm240_vm3, %v1476_v53  ;;  %v1438_v25 = vsel %vm1401_vm13, %v1434_v6, %v1399_v11 }
0x17aa   :  { %v1477_v8 = vsel %vm1440_vm14, %v1473_v41, %v1438_v25 }
0x17ab   :  { %5169 = vmatmul.mubr.msk.f32.vlgmr.msra.gmra.mrb[12].mxu1 %vm240_vm3, %v1477_v8 }
0x17ac   :  { %5485 = vmatpush3.bf16.msra.mxu1 %v6311_v46  ;;  %5190 = vmatprep.mubr.msk.f32.mxu1 %vm5857_vm2, %v5858_v48 }
0x17ad   :  { %5486 = vmatprep.subr.bf16.mxu1 %v5856_v44 }
0x17b0   :  { %5488 = vmatpush3.bf16.msra.mxu1 %v6320_v12 }
0x17b1   :  { %5495 = vmatprep.subr.bf16.mxu1 %v5856_v44 }
0x187e   :  { %v5170_v20 = vpop.f32.mrb[12].mxu1 }
0x187f   :  { %v1574_v22 = vadd.f32 %v5170_v20, %v4811_v19  ;;  %v1568_v23 = vpop.f32.mrb[13].mxu1 }
0x1880   :  { %v1569_v13 = vadd.f32 %v4811_v19, %v1568_v23 }
0x1881   :  { %v1579_v14 = vrot.slane %v1574_v22, 7  ;;  %v1583_v30 = vrot.slane %v1574_v22, 6  ;;  %v1591_v31 = vrot.slane %v1574_v22, 5  ;;  %v1596_v24 = vrot.slane %v1574_v22, 1 }
0x1882   :  { %v1582_v27 = vrot.slane %v1569_v13, 7  ;;  %v1587_v29 = vrot.slane %v1569_v13, 1  ;;  %v1590_v32 = vrot.slane %v1569_v13, 6  ;;  %v1595_v50 = vrot.slane %v1569_v13, 2 }
0x1883   :  { %v6456_v34 = vsel %vm327_vm5, %v1579_v14, %v1569_v13  ;;  %v1599_v5 = vrot.slane %v1569_v13, 5  ;;  %v1600_v9 = vrot.slane %v1574_v22, 4  ;;  %v1604_v26 = vrot.slane %v1569_v13, 3 }
0x1884   :  { %v6459_v35 = vsel %vm327_vm5, %v1583_v30, %v1582_v27  ;;  %v6462_v36 = vsel %vm327_vm5, %v1574_v22, %v1587_v29  ;;  %v6465_v18 = vsel %vm327_vm5, %v1591_v31, %v1590_v32  ;;  %v6468_v43 = vsel %vm327_vm5, %v1596_v24, %v1595_v50 }
0x1885   :  { %v1586_v38 = vsel %vm6112_vm4, %v6456_v34, %v6459_v35  ;;  %v1594_v40 = vsel %vm6112_vm4, %v6462_v36, %v6465_v18  ;;  %v6479_v42 = vsel %vm327_vm5, %v1600_v9, %v1599_v5  ;;  %v1605_v47 = vrot.slane %v1574_v22, 2 }
0x1886   :  { %v1687_v45 = vadd.f32 %v1683_v16, %v1586_v38  ;;  %v1603_v49 = vsel %vm6112_vm4, %v6468_v43, %v6479_v42  ;;  %v1608_v51 = vrot.slane %v1569_v13, 4  ;;  %v1609_v15 = vrot.slane %v1574_v22, 3 }
0x1887   :  { %v6486_v21 = vsel %vm327_vm5, %v1605_v47, %v1604_v26  ;;  %v1614_v52 = vsel %vm6112_vm4, %v6479_v42, %v6468_v43  ;;  %v1615_v55 = vsel %vm6112_vm4, %v6465_v18, %v6462_v36  ;;  %v1616_v57 = vsel %vm6112_vm4, %v6459_v35, %v6456_v34 }
0x1888   :  { %5636 = vtanh.f32 %v1687_v45  ;;  %v6501_v58 = vsel %vm327_vm5, %v1609_v15, %v1608_v51  ;;  %v1688_v28 = vsub.f32 0.0, %v1687_v45  ;;  %vm3437_vm5 = vcmask 1045504  }
0x1889   :  { %v1612_v59 = vsel %vm6112_vm4, %v6486_v21, %v6501_v58  ;;  %v1613_v60 = vsel %vm6112_vm4, %v6501_v58, %v6486_v21  ;;  %vm3435_vm4 = vcmask 1043456  }
0x188a   :  { %v1689_v0 = vmul.f32 1.442695, %v1688_v28 }
0x188c   :  { %5638 = vpow2.f32 %v1689_v0 }
0x1892   :  { %v5637_v61 = vpop.eup %5636 }
0x1893   :  { %1696 = vrot.lane.b32.xlu0 %v5637_v61, %s5859_s28 }
0x1896   :  { %v5639_v33 = vpop.eup %5638 }
0x1897   :  { %v1691_v62 = vadd.f32 1.0, %v5639_v33 }
0x1899   :  { %5640 = vrcp.f32 %v1691_v62 }
0x18a3   :  { %v5641_v63 = vpop.eup %5640 }
0x18a4   :  { %v1694_v7 = vmul.f32 0.0, %v5641_v63 }
0x1905   :  { %v1697_v4 = vpop.permute.xlu0 %1696 }
0x1906   :  { %v1699_v6 = vmul.f32 %v5641_v63, %v1697_v4 }
0x1908   :  { %1701 = vrot.lane.b32.xlu1 %v1699_v6, %s5859_s28 }
0x197a   :  { %v1702_v10 = vpop.permute.xlu1 %1701 }
0x197b   :  { %v1704_v41 = vadd.f32 %v1702_v10, %v1694_v7 }
0x197d   :  { %5642 = vtanh.f32 %v1704_v41 }
0x1987   :  { %v5643_v53 = vpop.eup %5642 }
0x1988   :  { %1707 = vrot.lane.b32.xlu0 %v5643_v53, %s5859_s28 }
0x19fa   :  { %v1708_v11 = vpop.permute.xlu0 %1707 }
0x19fb   :  { %v1710_v25 = vmul.f32 %v5641_v63, %v1708_v11 }
0x19fd   :  { %1712 = vrot.lane.b32.xlu1 %v1710_v25, %s5860_s14 }
0x1a6f   :  { %v6515_v8 = vpop.permute.xlu1 %1712 }
0x1a70   :  { %5191 = vmatmul.mubr.msk.f32.vlgmr.msra.gmra.mrb[14].mxu1 %vm240_vm3, %v6515_v8 }
0x1a71   :  { %5497 = vmatpush3.bf16.msra.mxu1 %v6311_v46  ;;  %5212 = vmatprep.mubr.msk.f32.mxu1 %vm5857_vm2, %v5858_v48 }
0x1a72   :  { %5498 = vmatprep.subr.bf16.mxu1 %v5856_v44 }
0x1a75   :  { %5500 = vmatpush3.bf16.msra.mxu1 %v6320_v12 }
0x1a76   :  { %5507 = vmatprep.subr.bf16.mxu1 %v5856_v44 }
0x1b43   :  { %v1782_v16 = vpop.f32.mrb[14].mxu1 }
0x1b44   :  { %v1786_v17 = vadd.f32 %v1782_v16, %v1594_v40  ;;  %v5192_v19 = vpop.f32.mrb[15].mxu1 }
0x1b46   :  { %5644 = vtanh.f32 %v1786_v17  ;;  %v1787_v22 = vsub.f32 0.0, %v1786_v17 }
0x1b48   :  { %v1788_v23 = vmul.f32 1.442695, %v1787_v22 }
0x1b4a   :  { %5646 = vpow2.f32 %v1788_v23 }
0x1b50   :  { %v5645_v20 = vpop.eup %5644 }
0x1b51   :  { %1795 = vrot.lane.b32.xlu0 %v5645_v20, %s5859_s28 }
0x1b54   :  { %v5647_v13 = vpop.eup %5646 }
0x1b55   :  { %v1790_v14 = vadd.f32 1.0, %v5647_v13 }
0x1b57   :  { %5648 = vrcp.f32 %v1790_v14 }
0x1b61   :  { %v5649_v30 = vpop.eup %5648 }
0x1b62   :  { %v1793_v27 = vmul.f32 %v5649_v30, %v1704_v41 }
0x1bc3   :  { %v1796_v31 = vpop.permute.xlu0 %1795 }
0x1bc4   :  { %v1798_v24 = vmul.f32 %v5649_v30, %v1796_v31 }
0x1bc6   :  { %1800 = vrot.lane.b32.xlu1 %v1798_v24, %s5859_s28 }
0x1c38   :  { %v1801_v29 = vpop.permute.xlu1 %1800 }
0x1c39   :  { %v1803_v32 = vadd.f32 %v1801_v29, %v1793_v27 }
0x1c3b   :  { %5650 = vtanh.f32 %v1803_v32 }
0x1c45   :  { %v5651_v50 = vpop.eup %5650 }
0x1c46   :  { %1806 = vrot.lane.b32.xlu0 %v5651_v50, %s5859_s28 }
0x1cb8   :  { %v1807_v5 = vpop.permute.xlu0 %1806 }
0x1cb9   :  { %v1809_v9 = vmul.f32 %v5649_v30, %v1807_v5 }
0x1cbb   :  { %1811 = vrot.lane.b32.xlu1 %v1809_v9, %s5860_s14 }
0x1d2d   :  { %v6529_v26 = vpop.permute.xlu1 %1811 }
0x1d2e   :  { %5202 = vmatmul.mubr.msk.f32.vlgmr.msra.gmra.mrb[10].mxu0 %vm240_vm3, %v6529_v26 }
0x1d2f   :  { %5503 = vmatpush3.bf16.msra.mxu0 %v6311_v46  ;;  %5223 = vmatprep.mubr.msk.f32.mxu0 %vm5857_vm2, %v5858_v48 }
0x1d30   :  { %5504 = vmatprep.subr.bf16.mxu0 %v5856_v44 }
0x1d33   :  { %5506 = vmatpush3.bf16.msra.mxu0 %v6320_v12 }
0x1d34   :  { %5513 = vmatprep.subr.bf16.mxu0 %v5856_v44 }
0x1e01   :  { %v1881_v38 = vpop.f32.mrb[10].mxu0 }
0x1e02   :  { %v1885_v40 = vadd.f32 %v1881_v38, %v1603_v49  ;;  %v5203_v47 = vpop.f32.mrb[11].mxu0 }
0x1e04   :  { %5652 = vtanh.f32 %v1885_v40  ;;  %v1886_v51 = vsub.f32 0.0, %v1885_v40 }
0x1e06   :  { %v1887_v15 = vmul.f32 1.442695, %v1886_v51 }
0x1e08   :  { %5654 = vpow2.f32 %v1887_v15 }
0x1e0e   :  { %v5653_v45 = vpop.eup %5652 }
0x1e0f   :  { %1894 = vrot.lane.b32.xlu0 %v5653_v45, %s5859_s28 }
0x1e12   :  { %v5655_v61 = vpop.eup %5654 }
0x1e13   :  { %v1889_v28 = vadd.f32 1.0, %v5655_v61 }
0x1e15   :  { %5656 = vrcp.f32 %v1889_v28 }
0x1e1f   :  { %v5657_v0 = vpop.eup %5656 }
0x1e20   :  { %v1892_v63 = vmul.f32 %v5657_v0, %v1803_v32 }
0x1e81   :  { %v1895_v33 = vpop.permute.xlu0 %1894 }
0x1e82   :  { %v1897_v62 = vmul.f32 %v5657_v0, %v1895_v33 }
0x1e84   :  { %1899 = vrot.lane.b32.xlu1 %v1897_v62, %s5859_s28 }
0x1ef6   :  { %v1900_v4 = vpop.permute.xlu1 %1899 }
0x1ef7   :  { %v1902_v6 = vadd.f32 %v1900_v4, %v1892_v63 }
0x1ef9   :  { %5658 = vtanh.f32 %v1902_v6 }
0x1f03   :  { %v5659_v49 = vpop.eup %5658 }
0x1f04   :  { %1905 = vrot.lane.b32.xlu0 %v5659_v49, %s5859_s28 }
0x1f76   :  { %v1906_v7 = vpop.permute.xlu0 %1905 }
0x1f77   :  { %v1908_v10 = vmul.f32 %v5657_v0, %v1906_v7 }
0x1f79   :  { %1910 = vrot.lane.b32.xlu1 %v1908_v10, %s5860_s14 }
0x1feb   :  { %v6548_v41 = vpop.permute.xlu1 %1910 }
0x1fec   :  { %5213 = vmatmul.mubr.msk.f32.vlgmr.msra.gmra.mrb[16].mxu1 %vm240_vm3, %v6548_v41 }
0x1fed   :  { %5509 = vmatpush3.bf16.msra.mxu1 %v6311_v46  ;;  %5234 = vmatprep.mubr.msk.f32.mxu1 %vm5857_vm2, %v5858_v48 }
0x1fee   :  { %5510 = vmatprep.subr.bf16.mxu1 %v5856_v44 }
0x1ff1   :  { %5512 = vmatpush3.bf16.msra.mxu1 %v6320_v12 }
0x1ff2   :  { %5519 = vmatprep.subr.bf16.mxu1 %v5856_v44 }
0x20bf   :  { %v1980_v53 = vpop.f32.mrb[16].mxu1 }
0x20c0   :  { %v1984_v11 = vadd.f32 %v1980_v53, %v1612_v59  ;;  %v5214_v25 = vpop.f32.mrb[17].mxu1 }
0x20c2   :  { %5660 = vtanh.f32 %v1984_v11  ;;  %v1985_v17 = vsub.f32 0.0, %v1984_v11 }
0x20c4   :  { %v1986_v19 = vmul.f32 1.442695, %v1985_v17 }
0x20c6   :  { %5662 = vpow2.f32 %v1986_v19 }
0x20cc   :  { %v5661_v16 = vpop.eup %5660 }
0x20cd   :  { %1993 = vrot.lane.b32.xlu0 %v5661_v16, %s5859_s28 }
0x20d0   :  { %v5663_v20 = vpop.eup %5662 }
0x20d1   :  { %v1988_v22 = vadd.f32 1.0, %v5663_v20 }
0x20d3   :  { %5664 = vrcp.f32 %v1988_v22 }
0x20dd   :  { %v5665_v23 = vpop.eup %5664 }
0x20de   :  { %v1991_v30 = vmul.f32 %v5665_v23, %v1902_v6 }
0x213f   :  { %v1994_v13 = vpop.permute.xlu0 %1993 }
0x2140   :  { %v1996_v14 = vmul.f32 %v5665_v23, %v1994_v13 }
0x2142   :  { %1998 = vrot.lane.b32.xlu1 %v1996_v14, %s5859_s28 }
0x21b4   :  { %v1999_v31 = vpop.permute.xlu1 %1998 }
0x21b5   :  { %v2001_v24 = vadd.f32 %v1999_v31, %v1991_v30 }
0x21b7   :  { %5666 = vtanh.f32 %v2001_v24 }
0x21c1   :  { %v5667_v59 = vpop.eup %5666 }
0x21c2   :  { %2004 = vrot.lane.b32.xlu0 %v5667_v59, %s5859_s28 }
0x2234   :  { %v2005_v27 = vpop.permute.xlu0 %2004 }
0x2235   :  { %v2007_v29 = vmul.f32 %v5665_v23, %v2005_v27 }
0x2237   :  { %2009 = vrot.lane.b32.xlu1 %v2007_v29, %s5860_s14 }
0x22a9   :  { %v6567_v32 = vpop.permute.xlu1 %2009 }
0x22aa   :  { %5224 = vmatmul.mubr.msk.f32.vlgmr.msra.gmra.mrb[12].mxu0 %vm240_vm3, %v6567_v32 }
0x22ab   :  { %5515 = vmatpush3.bf16.msra.mxu0 %v6311_v46  ;;  %5245 = vmatprep.mubr.msk.f32.mxu0 %vm5857_vm2, %v5858_v48 }
0x22ac   :  { %5516 = vmatprep.subr.bf16.mxu0 %v5856_v44 }
0x22af   :  { %5518 = vmatpush3.bf16.msra.mxu0 %v6320_v12 }
0x237d   :  { %v2079_v50 = vpop.f32.mrb[12].mxu0 }
0x237e   :  { %v2083_v5 = vadd.f32 %v2079_v50, %v1613_v60  ;;  %v5225_v9 = vpop.f32.mrb[13].mxu0 }
0x2380   :  { %5668 = vtanh.f32 %v2083_v5  ;;  %v2084_v40 = vsub.f32 0.0, %v2083_v5 }
0x2382   :  { %v2085_v47 = vmul.f32 1.442695, %v2084_v40 }
0x2384   :  { %5670 = vpow2.f32 %v2085_v47 }
0x238a   :  { %v5669_v38 = vpop.eup %5668 }
0x238b   :  { %2092 = vrot.lane.b32.xlu0 %v5669_v38, %s5859_s28 }
0x238e   :  { %v5671_v45 = vpop.eup %5670 }
0x238f   :  { %v2087_v51 = vadd.f32 1.0, %v5671_v45 }
0x2391   :  { %5672 = vrcp.f32 %v2087_v51 }
0x239b   :  { %v5673_v15 = vpop.eup %5672 }
0x239c   :  { %v2090_v0 = vmul.f32 %v5673_v15, %v2001_v24 }
0x23fd   :  { %v2093_v61 = vpop.permute.xlu0 %2092 }
0x23fe   :  { %v2095_v28 = vmul.f32 %v5673_v15, %v2093_v61 }
0x2400   :  { %2097 = vrot.lane.b32.xlu1 %v2095_v28, %s5859_s28 }
0x2472   :  { %v2098_v33 = vpop.permute.xlu1 %2097 }
0x2473   :  { %v2100_v21 = vadd.f32 %v2098_v33, %v2090_v0 }
0x2475   :  { %5674 = vtanh.f32 %v2100_v21 }
0x247f   :  { %v5675_v58 = vpop.eup %5674 }
0x2480   :  { %2103 = vrot.lane.b32.xlu0 %v5675_v58, %s5859_s28 }
0x24f2   :  { %v2104_v60 = vpop.permute.xlu0 %2103 }
0x24f3   :  { %v2106_v62 = vmul.f32 %v5673_v15, %v2104_v60 }
0x24f5   :  { %2108 = vrot.lane.b32.xlu1 %v2106_v62, %s5860_s14 }
0x2567   :  { %v6585_v63 = vpop.permute.xlu1 %2108 }
0x2568   :  { %5235 = vmatmul.mubr.msk.f32.vlgmr.msra.gmra.mrb[18].mxu1 %vm240_vm3, %v6585_v63 }
0x2569   :  { %5521 = vmatpush3.bf16.msra.mxu1 %v6311_v46  ;;  %5256 = vmatprep.mubr.msk.f32.mxu1 %vm5857_vm2, %v5858_v48 }
0x256a   :  { %5522 = vmatprep.subr.bf16.mxu1 %v5856_v44 }
0x256d   :  { %5524 = vmatpush3.bf16.msra.mxu1 %v6320_v12 }
0x256e   :  { %5270 = vmatprep.subr.mxu1 %v5858_v48 }
0x263b   :  { %v2178_v4 = vpop.f32.mrb[18].mxu1 }
0x263c   :  { %v2182_v6 = vadd.f32 %v2178_v4, %v1614_v52  ;;  %v5236_v49 = vpop.f32.mrb[19].mxu1 }
0x263d   :  { %v2704_v49 = vld [vmem:[%s6991_s6 + $0x8] sm:$0xff] }
0x263e   :  { %5676 = vtanh.f32 %v2182_v6  ;;  %v2183_v46 = vsub.f32 0.0, %v2182_v6  ;;  %v2703_v6 = vld [vmem:[%s6991_s6] sm:$0xff] }
0x2640   :  { %v2184_v10 = vmul.f32 1.442695, %v2183_v46  ;;  %v5525_v46 = vpack.c.bf16 %v2704_v49, %v2703_v6 }
0x2642   :  { %5678 = vpow2.f32 %v2184_v10  ;;  %v2706_v10 = vld [vmem:[%s6991_s6 + $0x18] sm:$0xff]  ;;  %5526 = vmatprep.subr.bf16.mxu0 %v5525_v46 }
0x2648   :  { %v5677_v7 = vpop.eup %5676 }
0x2649   :  { %2191 = vrot.lane.b32.xlu0 %v5677_v7, %s5859_s28  ;;  %v2705_v7 = vld [vmem:[%s6991_s6 + $0x10] sm:$0xff]  ;;  %s5862_s6 = smov 120  }
0x264c   :  { %v5679_v44 = vpop.eup %5678 }
0x264d   :  { %v2186_v53 = vadd.f32 1.0, %v5679_v44  ;;  %v5529_v44 = vpack.c.bf16 %v2706_v10, %v2705_v7 }
0x264f   :  { %5680 = vrcp.f32 %v2186_v53  ;;  %v2523_v53 = vsel %vm222_vm6, %v6567_v32, %v6585_v63 }
0x2659   :  { %v5681_v12 = vpop.eup %5680 }
0x265a   :  { %v2189_v16 = vmul.f32 %v5681_v12, %v2100_v21 }
0x26bb   :  { %v2192_v11 = vpop.permute.xlu0 %2191 }
0x26bc   :  { %v2194_v25 = vmul.f32 %v5681_v12, %v2192_v11 }
0x26be   :  { %2196 = vrot.lane.b32.xlu1 %v2194_v25, %s5859_s28  ;;  %v2531_v25 = vrot.slane %v2523_v53, %v6335_v54 }
0x2730   :  { %v2197_v17 = vpop.permute.xlu1 %2196 }
0x2731   :  { %v2199_v43 = vadd.f32 %v2197_v17, %v2189_v16 }
0x2733   :  { %5682 = vtanh.f32 %v2199_v43 }
0x273d   :  { %v5683_v42 = vpop.eup %5682 }
0x273e   :  { %2202 = vrot.lane.b32.xlu0 %v5683_v42, %s5859_s28 }
0x27b0   :  { %v2203_v52 = vpop.permute.xlu0 %2202 }
0x27b1   :  { %v2205_v19 = vmul.f32 %v5681_v12, %v2203_v52  ;;  %v2559_v12 = vsel %vm222_vm6, %v6585_v63, %v6567_v32  ;;  %v2532_v63 = vcombine.high %v2531_v25, %v2531_v25 }
0x27b2   :  { %v2567_v17 = vrot.slane %v2559_v12, %v6335_v54 }
0x27b3   :  { %2207 = vrot.lane.b32.xlu1 %v2205_v19, %s5860_s14  ;;  %v2539_v19 = vrot.slane %v2531_v25, %v6335_v54 }
0x2825   :  { %v6604_v20 = vpop.permute.xlu1 %2207 }
0x2826   :  { %5246 = vmatmul.mubr.msk.f32.vlgmr.msra.gmra.mrb[14].mxu0 %vm240_vm3, %v6604_v20  ;;  %v2485_v16 = vsel %vm222_vm6, %v6548_v41, %v6604_v20  ;;  %v2595_v32 = vsel %vm222_vm6, %v6604_v20, %v6548_v41 }
0x2827   :  { %5528 = vmatpush3.bf16.msra.mxu0 %v5525_v46  ;;  %v2493_v42 = vrot.slane %v2485_v16, %v6335_v54 }
0x2828   :  { %5530 = vmatprep.subr.bf16.mxu0 %v5529_v44 }
0x2829   :  { %v2494_v20 = vcombine.high %v2493_v42, %v2493_v42 }
0x282b   :  { %5532 = vmatpush3.bf16.msra.mxu0 %v5529_v44 }
0x282c   :  { %5290 = vmatprep.subr.mxu0 %v5858_v48 }
0x28f9   :  { %v2277_v22 = vpop.f32.mrb[14].mxu0 }
0x28fa   :  { %v2281_v23 = vadd.f32 %v2277_v22, %v1615_v55  ;;  %v5247_v13 = vpop.f32.mrb[15].mxu0  ;;  %v2568_v22 = vcombine.high %v2567_v17, %v2567_v17 }
0x28fc   :  { %5684 = vtanh.f32 %v2281_v23  ;;  %v2282_v30 = vsub.f32 0.0, %v2281_v23  ;;  %v2575_v23 = vrot.slane %v2567_v17, %v6335_v54 }
0x28fe   :  { %v2283_v31 = vmul.f32 1.442695, %v2282_v30 }
0x2900   :  { %5686 = vpow2.f32 %v2283_v31 }
0x2906   :  { %v5685_v14 = vpop.eup %5684 }
0x2907   :  { %2290 = vrot.lane.b32.xlu0 %v5685_v14, %s5859_s28  ;;  %v2603_v14 = vrot.slane %v2595_v32, %v6335_v54 }
0x290a   :  { %v5687_v24 = vpop.eup %5686 }
0x290b   :  { %v2285_v59 = vadd.f32 1.0, %v5687_v24 }
0x290d   :  { %5688 = vrcp.f32 %v2285_v59  ;;  %v2546_v59 = vrot.slane %v2532_v63, %v6335_v54 }
0x2917   :  { %v5689_v27 = vpop.eup %5688 }
0x2918   :  { %v2288_v5 = vmul.f32 %v5689_v27, %v2199_v43 }
0x2979   :  { %v2291_v29 = vpop.permute.xlu0 %2290 }
0x297a   :  { %v2293_v50 = vmul.f32 %v5689_v27, %v2291_v29 }
0x297c   :  { %2295 = vrot.lane.b32.xlu1 %v2293_v50, %s5859_s28  ;;  %v2550_v50 = vrot.slane %v2539_v19, %v5996_v2 }
0x29ee   :  { %v2296_v9 = vpop.permute.xlu1 %2295 }
0x29ef   :  { %v2298_v36 = vadd.f32 %v2296_v9, %v2288_v5  ;;  %v2501_v5 = vrot.slane %v2493_v42, %v6335_v54 }
0x29f1   :  { %5690 = vtanh.f32 %v2298_v36 }
0x29fb   :  { %v5691_v18 = vpop.eup %5690 }
0x29fc   :  { %2301 = vrot.lane.b32.xlu0 %v5691_v18, %s5859_s28  ;;  %v2586_v18 = vrot.slane %v2575_v23, %v5996_v2 }
0x2a6e   :  { %v2302_v55 = vpop.permute.xlu0 %2301 }
0x2a6f   :  { %v2304_v38 = vmul.f32 %v5689_v27, %v2302_v55  ;;  %v2604_v55 = vcombine.high %v2603_v14, %v2603_v14 }
0x2a71   :  { %2306 = vrot.lane.b32.xlu1 %v2304_v38, %s5860_s14 }
0x2ae3   :  { %v2307_v40 = vpop.permute.xlu1 %2306 }
0x2ae4   :  { %5257 = vmatmul.mubr.msk.f32.vlgmr.msra.gmra.mrb[20].mxu1 %vm240_vm3, %v2307_v40  ;;  %v2447_v11 = vsel %vm222_vm6, %v6529_v26, %v2307_v40  ;;  %v2631_v52 = vsel %vm222_vm6, %v2307_v40, %v6529_v26  ;;  %v2508_v40 = vrot.slane %v2494_v20, %v6335_v54 }
0x2ae5   :  { %5272 = vmatprep.mubr.msk.f32.mxu1 %vm5857_vm2, %v5858_v48  ;;  %v2455_v43 = vrot.slane %v2447_v11, %v6335_v54  ;;  %v2639_v26 = vrot.slane %v2631_v52, %v6335_v54 }
0x2ae7   :  { %v2456_v30 = vcombine.high %v2455_v43, %v2455_v43  ;;  %v2463_v27 = vrot.slane %v2455_v43, %v6335_v54 }
0x2ae9   :  { %v2470_v38 = vrot.slane %v2456_v30, %v6335_v54  ;;  %v4821_v30 = vld [vmem:[#allocation5] ss:$0 sm:$0xff] }
0x2bb7   :  { %v2376_v47 = vpop.f32.mrb[20].mxu1 }
0x2bb8   :  { %v2380_v45 = vadd.f32 %v2376_v47, %v1616_v57  ;;  %v5258_v51 = vpop.f32.mrb[21].mxu1  ;;  %v2640_v47 = vcombine.high %v2639_v26, %v2639_v26 }
0x2bba   :  { %5692 = vtanh.f32 %v2380_v45  ;;  %v2381_v61 = vsub.f32 0.0, %v2380_v45 }
0x2bbc   :  { %v2382_v28 = vmul.f32 1.442695, %v2381_v61  ;;  %v2611_v61 = vrot.slane %v2603_v14, %v6335_v54 }
0x2bbe   :  { %5694 = vpow2.f32 %v2382_v28  ;;  %v2474_v28 = vrot.slane %v2463_v27, %v5996_v2  ;;  %v2622_v7 = vrot.slane %v2611_v61, %v5996_v2 }
0x2bc4   :  { %v5693_v15 = vpop.eup %5692 }
0x2bc5   :  { %2389 = vrot.lane.b32.xlu0 %v5693_v15, %s5859_s28  ;;  %v2554_v15 = vrot.slane %v2546_v59, %v5996_v2 }
0x2bc8   :  { %v5695_v0 = vpop.eup %5694 }
0x2bc9   :  { %v2384_v33 = vadd.f32 1.0, %v5695_v0 }
0x2bcb   :  { %5696 = vrcp.f32 %v2384_v33  ;;  %v2512_v33 = vrot.slane %v2501_v5, %v5996_v2 }
0x2bd5   :  { %v5697_v21 = vpop.eup %5696 }
0x2bd6   :  { %v2387_v56 = vmul.f32 %v5697_v21, %v2298_v36 }
0x2c37   :  { %v2390_v58 = vpop.permute.xlu0 %2389 }
0x2c38   :  { %v2392_v60 = vmul.f32 %v5697_v21, %v2390_v58 }
0x2c3a   :  { %2394 = vrot.lane.b32.xlu1 %v2392_v60, %s5859_s28 }
0x2cac   :  { %v2395_v62 = vpop.permute.xlu1 %2394 }
0x2cad   :  { %v2397_v34 = vadd.f32 %v2395_v62, %v2387_v56  ;;  %v2618_v56 = vrot.slane %v2604_v55, %v6335_v54  ;;  %v2478_v62 = vrot.slane %v2470_v38, %v5996_v2 }
0x2caf   :  { %5698 = vtanh.f32 %v2397_v34  ;;  %v2626_v16 = vrot.slane %v2618_v56, %v5996_v2 }
0x2cb9   :  { %v5699_v35 = vpop.eup %5698 }
0x2cba   :  { %2400 = vrot.lane.b32.xlu0 %v5699_v35, %s5859_s28  ;;  %s5863_s28 = smov 112  }
0x2d2c   :  { %v2401_v57 = vpop.permute.xlu0 %2400 }
0x2d2d   :  { %v2403_v4 = vmul.f32 %v5697_v21, %v2401_v57  ;;  %v2647_v21 = vrot.slane %v2639_v26, %v6335_v54  ;;  %v2516_v57 = vrot.slane %v2508_v40, %v5996_v2 }
0x2d2f   :  { %2406 = vrot.lane.b32.xlu1 %v2403_v4, %s5860_s14  ;;  %v2654_v4 = vrot.slane %v2640_v47, %v6335_v54  ;;  %v2658_v12 = vrot.slane %v2647_v21, %v5996_v2 }
0x2d31   :  { %v2662_v32 = vrot.slane %v2654_v4, %v5996_v2 }
0x2da1   :  { %v2407_v13 = vpop.permute.xlu1 %2406 }
0x2da2   :  { %v2409_v31 = vsel %vm222_vm6, %v6515_v8, %v2407_v13  ;;  %v2667_v41 = vsel %vm222_vm6, %v2407_v13, %v6515_v8  ;;  %v2582_v8 = vrot.slane %v2568_v22, %v6335_v54 }
0x2da3   :  { %v2417_v24 = vrot.slane %v2409_v31, %v6335_v54  ;;  %v2675_v29 = vrot.slane %v2667_v41, %v6335_v54 }
0x2da4   :  { %v2590_v53 = vrot.slane %v2582_v8, %v5996_v2 }
0x2da5   :  { %v2418_v9 = vcombine.high %v2417_v24, %v2417_v24  ;;  %v2425_v36 = vrot.slane %v2417_v24, %v6335_v54  ;;  %v2676_v0 = vcombine.high %v2675_v29, %v2675_v29  ;;  %v2683_v35 = vrot.slane %v2675_v29, %v6335_v54 }
0x2da7   :  { %v2432_v45 = vrot.slane %v2418_v9, %v6335_v54  ;;  %v2436_v51 = vrot.slane %v2425_v36, %v5996_v2  ;;  %v2690_v10 = vrot.slane %v2676_v0, %v6335_v54  ;;  %v2694_v17 = vrot.slane %v2683_v35, %v5996_v2 }
0x2da9   :  { %v2440_v58 = vrot.slane %v2432_v45, %v5996_v2  ;;  %v2443_v60 = vsel %vm1161_vm7, %v2436_v51, 0.0  ;;  %v2698_v19 = vrot.slane %v2690_v10, %v5996_v2  ;;  %v6822_v45 = vld [vmem:[%s6985_s0] sm:$0x3]  ;;  %s5831_s0 = scalar_lea.hbm %s6998_s13, 16 }
0x2daa   :  { %v2481_v34 = vsel %vm1202_vm8, %v2474_v28, %v2443_v60  ;;  %vm94_vm0 = vcmp.eq.s32.totalorder %v6822_v45, 0  ;;  %p5832_p4 = scmp.ne.s32.totalorder %s6998_s13, %s5831_s0  ;;  %p5835_p5 = scmp.lt.u32.totalorder %s5831_s0, %s6998_s13 }
0x2dab   :  { %v2444_v6 = vsel %vm1161_vm7, %v2440_v58, 0.0  ;;  %v2519_v49 = vsel %vm1243_vm9, %v2512_v33, %v2481_v34  ;;  %v95_v51 = vsel %vm94_vm0, -1e+09, %v5858_v48  ;;  %vm4737_vm7 = vcmask 7168  }
0x2dac   :  { %v2482_v46 = vsel %vm1202_vm8, %v2478_v62, %v2444_v6  ;;  %v2557_v44 = vsel %vm1284_vm10, %v2550_v50, %v2519_v49  ;;  %v3429_v61 = vrot.slane %v95_v51, 4  ;;  %v3431_v0 = vrot.slane %v95_v51, 2  ;;  %p5837_p6 = pnand %p5835_p5, %p5832_p4 }
0x2dad   :  { %v2520_v11 = vsel %vm1243_vm9, %v2516_v57, %v2482_v46  ;;  %v2593_v25 = vsel %vm1323_vm11, %v2586_v18, %v2557_v44 }
0x2dae   :  { %v2629_v43 = vsel %vm1362_vm12, %v2622_v7, %v2593_v25  ;;  %v2558_v42 = vsel %vm1284_vm10, %v2554_v15, %v2520_v11  ;;  %v3427_v15 = vrot.slane %v95_v51, 6 }
0x2daf   :  { %v2665_v63 = vsel %vm1401_vm13, %v2658_v12, %v2629_v43  ;;  %v2594_v52 = vsel %vm1323_vm11, %v2590_v53, %v2558_v42 }
0x2db0   :  { %v2701_v22 = vsel %vm1440_vm14, %v2694_v17, %v2665_v63  ;;  %v2630_v23 = vsel %vm1362_vm12, %v2626_v16, %v2594_v52  ;;  %v3434_v28 = vsel %vm3433_vm1, %v95_v51, %v3427_v15 }
0x2db1   :  { %5267 = vmatprep.mubr.msk.f32.mxu0 %vm240_vm3, %v2701_v22  ;;  %v2666_v13 = vsel %vm1401_vm13, %v2662_v32, %v2630_v23  ;;  %v3436_v33 = vsel %vm3435_vm4, %v3434_v28, %v3429_v61 }
0x2db2   :  { %v2702_v14 = vsel %vm1440_vm14, %v2698_v19, %v2666_v13  ;;  %v3438_v21 = vsel %vm3437_vm5, %v3436_v33, %v3431_v0 }
0x2db3   :  { %5268 = vmatmul.mubr.msk.f32.vlgmr.msra.gmra.mrb[16].mxu0 %vm240_vm3, %v2702_v14  ;;  %v3447_v58 = vrot.slane %v3438_v21, %v6335_v54  ;;  %v3440_v11 = vcombine.high %v3438_v21, %v3438_v21 }
0x2db4   :  { %5292 = vmatprep.mubr.msk.f32.mxu0 %vm5857_vm2, %v5858_v48 }
0x2db5   :  { %v3463_v60 = vrot.slane %v3447_v58, %v6335_v54  ;;  %v3455_v56 = vcombine.high %v3447_v58, %v3447_v58  ;;  %v3454_v16 = vrot.slane %v3440_v11, %v6335_v54 }
0x2db7   :  { %v3492_v62 = vrot.slane %v3463_v60, %v5996_v2  ;;  %v3477_v34 = vrot.slane %v3455_v56, %v6335_v54  ;;  %v3485_v25 = vcombine.high %v3463_v60, %v3463_v60  ;;  %v3470_v42 = vrot.slane %v3454_v16, %v6335_v54 }
0x2db8   :  { %v3456_v32 = vcombine.high %v3454_v16, %v3454_v16 }
0x2db9   :  { %v3496_v49 = vrot.slane %v3477_v34, %v5996_v2  ;;  %v3500_v17 = vrot.slane %v3485_v25, %v5996_v2  ;;  %v3487_v43 = vcombine.high %v3477_v34, %v3477_v34  ;;  %v3486_v22 = vcombine.high %v3470_v42, %v3470_v42 }
0x2dba   :  { %v3508_v14 = vrot.slane %v3470_v42, %v5996_v2 }
0x2dbb   :  { %v3504_v13 = vrot.slane %v3487_v43, %v5996_v2 }
0x2e86   :  { %v5269_v31 = vpop.f32.mrb[16].mxu0 }
0x2e87   :  { %v6746_v41 = vadd.f32 %v5269_v31, %v4821_v30  ;;  %v2786_v20 = vpop.f32.mrb[17].mxu0 }
0x2e88   :  { %v2787_v26 = vadd.f32 %v4821_v30, %v2786_v20  ;;  %v3484_v30 = vrot.slane %v3456_v32, %v6335_v54 }
0x2e89   :  { %2799 = vrot.lane.b32.xlu1 %v6746_v41, %s5862_s6 }
0x2e8a   :  { %2797 = vrot.lane.b32.xlu0 %v2787_v26, %s5862_s6  ;;  %s5866_s6 = smov 1.0  }
0x2e8d   :  { %2803 = vrot.lane.b32.xlu1 %v6746_v41, %s5863_s28 }
0x2e8e   :  { %2801 = vrot.lane.b32.xlu0 %v2787_v26, %s5863_s28 }
0x2e91   :  { %2807 = vrot.lane.b32.xlu1 %v6746_v41, %s5864_s26 }
0x2e92   :  { %2805 = vrot.lane.b32.xlu0 %v2787_v26, %s5864_s26 }
0x2e95   :  { %2886 = vrot.lane.b32.xlu1 %v6746_v41, %s5865_s16 }
0x2e96   :  { %2809 = vrot.lane.b32.xlu0 %v2787_v26, %s5865_s16 }
0x2efb   :  { %v6752_v1 = vpop.permute.xlu1 %2799 }
0x2efc   :  { %3038 = vrot.lane.b32.xlu1 %v6752_v1, %s5865_s16  ;;  %v6755_v24 = vpop.permute.xlu0 %2797 }
0x2efd   :  { %2962 = vrot.lane.b32.xlu0 %v6755_v24, %s5865_s16 }
0x2eff   :  { %v6758_v59 = vpop.permute.xlu1 %2803 }
0x2f00   :  { %3190 = vrot.lane.b32.xlu1 %v6758_v59, %s5865_s16  ;;  %v6761_v27 = vpop.permute.xlu0 %2801 }
0x2f01   :  { %3114 = vrot.lane.b32.xlu0 %v6761_v27, %s5865_s16 }
0x2f03   :  { %v6764_v29 = vpop.permute.xlu1 %2807 }
0x2f04   :  { %3342 = vrot.lane.b32.xlu1 %v6764_v29, %s5865_s16  ;;  %v6767_v50 = vpop.permute.xlu0 %2805 }
0x2f05   :  { %3266 = vrot.lane.b32.xlu0 %v6767_v50, %s5865_s16 }
0x2f07   :  { %v2887_v9 = vpop.permute.xlu1 %2886 }
0x2f08   :  { %3625 = vrot.lane.b32.xlu1 %v2787_v26, %s5860_s14  ;;  %v2810_v5 = vpop.permute.xlu0 %2809 }
0x2f09   :  { %5271 = vmatpush3.xpose.msk.msra.mxu1 %vm2811_vm15, %v2810_v5 }
0x2f0a   :  { %5275 = vmatprep.subr.mxu1 %v5858_v48 }
0x2f0c   :  { %5273 = vmatmul.mubr.msk.f32.vlgmr.msra.gmra.mrb[22].mxu1 %vm2811_vm15, %v2787_v26 }
0x2f0d   :  { %5276 = vmatpush3.xpose.msk.msra.mxu1 %vm2811_vm15, %v2887_v9  ;;  %5277 = vmatprep.mubr.msk.f32.mxu1 %vm5857_vm2, %v5858_v48 }
0x2f0e   :  { %5280 = vmatprep.subr.mxu1 %v5858_v48 }
0x2f10   :  { %5278 = vmatmul.mubr.msk.f32.vlgmr.msra.gmra.mrb[24].mxu1 %vm2811_vm15, %v6746_v41 }
0x2f11   :  { %5282 = vmatprep.mubr.msk.f32.mxu1 %vm5857_vm2, %v5858_v48 }
0x2f6e   :  { %v3039_v36 = vpop.permute.xlu1 %3038 }
0x2f6f   :  { %v2963_v8 = vpop.permute.xlu0 %2962 }
0x2f70   :  { %5281 = vmatpush3.xpose.msk.msra.mxu1 %vm2811_vm15, %v2963_v8 }
0x2f71   :  { %5285 = vmatprep.subr.mxu1 %v5858_v48 }
0x2f72   :  { %v3191_v18 = vpop.permute.xlu1 %3190 }
0x2f73   :  { %5283 = vmatmul.mubr.msk.f32.vlgmr.msra.gmra.mrb[26].mxu1 %vm2811_vm15, %v6755_v24  ;;  %v3115_v55 = vpop.permute.xlu0 %3114 }
0x2f74   :  { %5286 = vmatpush3.xpose.msk.msra.mxu1 %vm2811_vm15, %v3039_v36  ;;  %5291 = vmatpush3.xpose.msk.msra.mxu0 %vm2811_vm15, %v3115_v55 }
0x2f75   :  { %5287 = vmatprep.mubr.msk.f32.mxu1 %vm5857_vm2, %v5858_v48  ;;  %5295 = vmatprep.subr.mxu1 %v5858_v48 }
0x2f76   :  { %v3343_v38 = vpop.permute.xlu1 %3342  ;;  %5300 = vmatprep.subr.mxu0 %v5858_v48 }
0x2f77   :  { %5288 = vmatmul.mubr.msk.f32.vlgmr.msra.gmra.mrb[28].mxu1 %vm2811_vm15, %v6752_v1  ;;  %5293 = vmatmul.mubr.msk.f32.vlgmr.msra.gmra.mrb[18].mxu0 %vm2811_vm15, %v6761_v27  ;;  %v3267_v40 = vpop.permute.xlu0 %3266 }
0x2f78   :  { %5296 = vmatpush3.xpose.msk.msra.mxu1 %vm2811_vm15, %v3191_v18  ;;  %5301 = vmatpush3.xpose.msk.msra.mxu0 %vm2811_vm15, %v3267_v40  ;;  %v3516_v18 = vrot.slane %v3486_v22, %v5996_v2  ;;  %v3512_v40 = vrot.slane %v3484_v30, %v5996_v2 }
0x2f79   :  { %5297 = vmatprep.mubr.msk.f32.mxu1 %vm5857_vm2, %v5858_v48  ;;  %5302 = vmatprep.mubr.msk.f32.mxu0 %vm5857_vm2, %v5858_v48 }
0x2f7a   :  { %v3626_v47 = vpop.permute.xlu1 %3625  ;;  %5305 = vmatprep.subr.mxu1 %v5858_v48  ;;  %5310 = vmatprep.subr.mxu0 %v5858_v48 }
0x2f7b   :  { %5298 = vmatmul.mubr.msk.f32.vlgmr.msra.gmra.mrb[30].mxu1 %vm2811_vm15, %v6758_v59  ;;  %5303 = vmatmul.mubr.msk.f32.vlgmr.msra.gmra.mrb[20].mxu0 %vm2811_vm15, %v6767_v50 }
0x2f7c   :  { %5306 = vmatpush3.xpose.msk.msra.mxu1 %vm2811_vm15, %v3343_v38  ;;  %5311 = vmatpush3.msra.mxu0 %v3626_v47  ;;  %v3488_v47 = vcombine.high %v3484_v30, %v3484_v30 }
0x2f7d   :  { %5307 = vmatprep.mubr.msk.f32.mxu1 %vm5857_vm2, %v5858_v48  ;;  %5315 = vmatprep.subr.mxu1 %v5858_v48 }
0x2f7e   :  { %5312 = vmatprep.mubr.msk.f32.mxu0 %vm5857_vm2, %v5858_v48  ;;  %5320 = vmatprep.subr.mxu0 %v5858_v48  ;;  %v3520_v56 = vrot.slane %v3488_v47, %v5996_v2 }
0x2f7f   :  { %5308 = vmatmul.mubr.msk.f32.vlgmr.msra.gmra.mrb[32].mxu1 %vm2811_vm15, %v6764_v29 }
0x2f80   :  { %5317 = vmatprep.mubr.msk.f32.mxu1 %vm5857_vm2, %v5858_v48 }
0x2fdf   :  { %v2882_v35 = vpop.f32.mrb[22].mxu1 }
0x2fe0   :  { %v3418_v57 = vmul.f32 0.35355338, %v2882_v35  ;;  %v5274_v4 = vpop.f32.mrb[23].mxu1 }
0x2fe2   :  { %v6832_v6 = vadd.f32 %v3492_v62, %v3418_v57 }
0x2fe3   :  { %v2958_v7 = vpop.f32.mrb[24].mxu1 }
0x2fe4   :  { %v3419_v46 = vmul.f32 0.35355338, %v2958_v7  ;;  %v5279_v10 = vpop.f32.mrb[25].mxu1  ;;  %v3537_v44 = vsel %vm2811_vm15, %v6832_v6, -inf }
0x2fe5   :  { %3538 = vmax.xlane.f32.xlu0 %v3537_v44 }
0x2fe6   :  { %v3530_v53 = vadd.f32 %v3496_v49, %v3419_v46 }
0x2fe8   :  { %v3540_v12 = vsel %vm2811_vm15, %v3530_v53, -inf }
0x2fe9   :  { %3541 = vmax.xlane.f32.xlu1 %v3540_v12 }
0x3046   :  { %v3034_v63 = vpop.f32.mrb[26].mxu1 }
0x3047   :  { %v3420_v52 = vmul.f32 0.35355338, %v3034_v63  ;;  %v5284_v19 = vpop.f32.mrb[27].mxu1 }
0x3049   :  { %v3531_v23 = vadd.f32 %v3500_v17, %v3420_v52 }
0x304a   :  { %v3110_v31 = vpop.f32.mrb[28].mxu1  ;;  %v3186_v20 = vpop.f32.mrb[18].mxu0 }
0x304b   :  { %v3421_v26 = vmul.f32 0.35355338, %v3110_v31  ;;  %v3422_v5 = vmul.f32 0.35355338, %v3186_v20  ;;  %v5289_v9 = vpop.f32.mrb[29].mxu1  ;;  %v5294_v36 = vpop.f32.mrb[19].mxu0 }
0x304c   :  { %v3543_v8 = vsel %vm2811_vm15, %v3531_v23, -inf }
0x304d   :  { %3544 = vmax.xlane.f32.xlu0 %v3543_v8  ;;  %v3532_v55 = vadd.f32 %v3504_v13, %v3421_v26  ;;  %v3533_v38 = vadd.f32 %v3508_v14, %v3422_v5 }
0x304e   :  { %v3262_v51 = vpop.f32.mrb[30].mxu1  ;;  %v3338_v15 = vpop.f32.mrb[20].mxu0 }
0x304f   :  { %v3423_v61 = vmul.f32 0.35355338, %v3262_v51  ;;  %v3424_v54 = vmul.f32 0.35355338, %v3338_v15  ;;  %v5299_v28 = vpop.f32.mrb[31].mxu1  ;;  %v5304_v0 = vpop.f32.mrb[21].mxu0 }
0x3050   :  { %v3546_v33 = vsel %vm2811_vm15, %v3532_v55, -inf  ;;  %v3549_v21 = vsel %vm2811_vm15, %v3533_v38, -inf }
0x3051   :  { %3547 = vmax.xlane.f32.xlu0 %v3546_v33  ;;  %3550 = vmax.xlane.f32.xlu1 %v3549_v21  ;;  %v6849_v58 = vadd.f32 %v3516_v18, %v3424_v54  ;;  %v3534_v60 = vadd.f32 %v3512_v40, %v3423_v61 }
0x3052   :  { %v3414_v62 = vpop.f32.mrb[32].mxu1 }
0x3053   :  { %v3425_v34 = vmul.f32 0.35355338, %v3414_v62  ;;  %v5309_v35 = vpop.f32.mrb[33].mxu1  ;;  %v3555_v57 = vsel %vm2811_vm15, %v6849_v58, -inf  ;;  %v3552_v4 = vsel %vm2811_vm15, %v3534_v60, -inf }
0x3055   :  { %3556 = vmax.xlane.f32.xlu1 %v3555_v57  ;;  %3553 = vmax.xlane.f32.xlu0 %v3552_v4  ;;  %v3536_v49 = vadd.f32 %v3520_v56, %v3425_v34 }
0x3057   :  { %v3558_v7 = vsel %vm2811_vm15, %v3536_v49, -inf }
0x3059   :  { %3559 = vmax.xlane.f32.xlu0 %v3558_v7 }
0x3066   :  { %3777 = vrot.lane.b32.xlu1 %v6755_v24, %s5860_s14 }
0x306f   :  { %3701 = vrot.lane.b32.xlu0 %v6746_v41, %s5860_s14 }
0x3072   :  { %v3539_v46 = vpop.xlane.xlu0 %3538 }
0x3073   :  { %v3561_v10 = vsub.f32 %v6832_v6, %v3539_v46 }
0x3075   :  { %v3569_v12 = vmul.f32 1.442695, %v3561_v10 }
0x3076   :  { %v3542_v44 = vpop.xlane.xlu1 %3541 }
0x3077   :  { %v3562_v11 = vsub.f32 %v3530_v53, %v3542_v44  ;;  %5700 = vpow2.f32 %v3569_v12 }
0x3079   :  { %v3571_v25 = vmul.f32 1.442695, %v3562_v11 }
0x307b   :  { %5702 = vpow2.f32 %v3571_v25 }
0x3081   :  { %v5701_v16 = vpop.eup %5700 }
0x3082   :  { %v3585_v17 = vsel %vm2811_vm15, %v5701_v16, 0.0 }
0x3085   :  { %v5703_v43 = vpop.eup %5702 }
0x3086   :  { %v3588_v42 = vsel %vm2811_vm15, %v5703_v43, 0.0 }
0x308a   :  { %3586 = vadd.xlane.f32.xlu1 %v3585_v17 }
0x308e   :  { %3589 = vadd.xlane.f32.xlu0 %v3588_v42 }
0x30da   :  { %v3545_v24 = vpop.xlane.xlu0 %3544 }
0x30db   :  { %v3563_v32 = vsub.f32 %v3531_v23, %v3545_v24 }
0x30dd   :  { %v3573_v41 = vmul.f32 1.442695, %v3563_v32 }
0x30de   :  { %v3548_v63 = vpop.xlane.xlu0 %3547  ;;  %v3551_v52 = vpop.xlane.xlu1 %3550 }
0x30df   :  { %5704 = vpow2.f32 %v3573_v41  ;;  %v3564_v6 = vsub.f32 %v3532_v55, %v3548_v63  ;;  %v3565_v19 = vsub.f32 %v3533_v38, %v3551_v52  ;;  %v4234_v63 = vld [vmem:[%s6993_s8 + $0x8] sm:$0xff]  ;;  %v4233_v52 = vld [vmem:[%s6993_s8] sm:$0xff] }
0x30e1   :  { %v3575_v53 = vmul.f32 1.442695, %v3564_v6  ;;  %v3577_v22 = vmul.f32 1.442695, %v3565_v19 }
0x30e2   :  { %v3554_v13 = vpop.xlane.xlu0 %3553  ;;  %v3557_v36 = vpop.xlane.xlu1 %3556 }
0x30e3   :  { %5706 = vpow2.f32 %v3575_v53  ;;  %v3566_v8 = vsub.f32 %v3534_v60, %v3554_v13  ;;  %v3567_v38 = vsub.f32 %v6849_v58, %v3557_v36  ;;  %v4575_v13 = vld [vmem:[%s6995_s10 + $0x8] sm:$0xff]  ;;  %v4481_v36 = vld [vmem:[%s6993_s8 + $0x18] sm:$0xff] }
0x30e4   :  { %5708 = vpow2.f32 %v3577_v22  ;;  %v4574_v22 = vld [vmem:[%s6995_s10] sm:$0xff] }
0x30e5   :  { %v3579_v18 = vmul.f32 1.442695, %v3566_v8  ;;  %v3581_v51 = vmul.f32 1.442695, %v3567_v38 }
0x30e6   :  { %v3560_v14 = vpop.xlane.xlu0 %3559  ;;  %v3778_v40 = vpop.permute.xlu1 %3777 }
0x30e7   :  { %v3568_v55 = vsub.f32 %v3536_v49, %v3560_v14  ;;  %5710 = vpow2.f32 %v3579_v18  ;;  %v5533_v14 = vpack.c.bf16 %v4575_v13, %v4574_v22 }
0x30e9   :  { %v5705_v30 = vpop.eup %5704  ;;  %v3583_v47 = vmul.f32 1.442695, %v3568_v55 }
0x30ea   :  { %v3702_v31 = vpop.permute.xlu0 %3701  ;;  %v3591_v20 = vsel %vm2811_vm15, %v5705_v30, 0.0 }
0x30eb   :  { %3592 = vadd.xlane.f32.xlu1 %v3591_v20  ;;  %5316 = vmatpush3.msra.mxu1 %v3702_v31 }
0x30ec   :  { %5325 = vmatprep.subr.mxu1 %v5858_v48 }
0x30ed   :  { %v5707_v23 = vpop.eup %5706 }
0x30ee   :  { %v6865_v26 = vpop.eup %5708  ;;  %v3594_v5 = vsel %vm2811_vm15, %v5707_v23, 0.0 }
0x30ef   :  { %v3597_v9 = vsel %vm2811_vm15, %v6865_v26, 0.0  ;;  %3595 = vadd.xlane.f32.xlu0 %v3594_v5 }
0x30f0   :  { %3598 = vadd.xlane.f32.xlu1 %v3597_v9 }
0x3101   :  { %3929 = vrot.lane.b32.xlu1 %v6761_v27, %s5860_s14 }
0x3105   :  { %4005 = vrot.lane.b32.xlu1 %v6758_v59, %s5860_s14  ;;  %3853 = vrot.lane.b32.xlu0 %v6752_v1, %s5860_s14  ;;  %v5711_v59 = vpop.eup %5710 }
0x3106   :  { %v3600_v1 = vsel %vm2811_vm15, %v5711_v59, 0.0 }
0x3117   :  { %v3587_v15 = vpop.xlane.xlu1 %3586 }
0x3118   :  { %5712 = vrcp.f32 %v3587_v15  ;;  %v4577_v15 = vld [vmem:[%s6995_s10 + $0x18] sm:$0xff] }
0x3119   :  { %5714 = vpow2.f32 %v3583_v47 }
0x311a   :  { %5716 = vpow2.f32 %v3581_v51  ;;  %v4576_v51 = vld [vmem:[%s6995_s10 + $0x10] sm:$0xff] }
0x311b   :  { %v3590_v27 = vpop.xlane.xlu0 %3589 }
0x311c   :  { %5718 = vrcp.f32 %v3590_v27  ;;  %v5537_v27 = vpack.c.bf16 %v4577_v15, %v4576_v51 }
0x3122   :  { %v5713_v61 = vpop.eup %5712 }
0x3123   :  { %v3617_v54 = vmul.f32 %v5713_v61, %v5701_v16  ;;  %v5715_v28 = vpop.eup %5714 }
0x3124   :  { %3601 = vadd.xlane.f32.xlu0 %v3600_v1  ;;  %v5717_v0 = vpop.eup %5716  ;;  %v3606_v58 = vsel %vm2811_vm15, %v5715_v28, 0.0 }
0x3125   :  { %5313 = vmatmul.mubr.msk.f32.vlgmr.msra.gmra.mrb[22].mxu0 %vm2811_vm15, %v3617_v54  ;;  %v3603_v60 = vsel %vm2811_vm15, %v5717_v0, 0.0 }
0x3126   :  { %v5719_v33 = vpop.eup %5718  ;;  %5321 = vmatpush3.msra.mxu0 %v3778_v40  ;;  %5322 = vmatprep.mubr.msk.f32.mxu0 %vm5857_vm2, %v5858_v48 }
0x3127   :  { %v3618_v21 = vmul.f32 %v5719_v33, %v5703_v43  ;;  %5330 = vmatprep.subr.mxu0 %v5858_v48 }
0x3128   :  { %3607 = vadd.xlane.f32.xlu0 %v3606_v58 }
0x3129   :  { %3604 = vadd.xlane.f32.xlu1 %v3603_v60  ;;  %5318 = vmatmul.mubr.msk.f32.vlgmr.msra.gmra.mrb[34].mxu1 %vm2811_vm15, %v3618_v21 }
0x312a   :  { %5327 = vmatprep.mubr.msk.f32.mxu1 %vm5857_vm2, %v5858_v48 }
0x313a   :  { %4157 = vrot.lane.b32.xlu1 %v6764_v29, %s5860_s14 }
0x313e   :  { %4081 = vrot.lane.b32.xlu0 %v6767_v50, %s5860_s14 }
0x3178   :  { %v3593_v56 = vpop.xlane.xlu1 %3592 }
0x3179   :  { %5720 = vrcp.f32 %v3593_v56 }
0x317c   :  { %v3596_v62 = vpop.xlane.xlu0 %3595 }
0x317d   :  { %v3599_v34 = vpop.xlane.xlu1 %3598  ;;  %5722 = vrcp.f32 %v3596_v62 }
0x317e   :  { %5724 = vrcp.f32 %v3599_v34  ;;  %v4693_v34 = vld [vmem:[%s6986_s1] sm:$0x3] }
0x3180   :  { %v3854_v35 = vpop.permute.xlu0 %3853 }
0x3181   :  { %5326 = vmatpush3.msra.mxu1 %v3854_v35  ;;  %v3930_v49 = vpop.permute.xlu1 %3929  ;;  %v4704_v35 = vrot.slane %v4693_v34, %v5999_v3 }
0x3182   :  { %5335 = vmatprep.subr.mxu1 %v5858_v48 }
0x3183   :  { %v5721_v57 = vpop.eup %5720 }
0x3184   :  { %v3619_v4 = vmul.f32 %v5721_v57, %v5705_v30  ;;  %v4697_v57 = vrot.slane %v4693_v34, %v5996_v2 }
0x3185   :  { %v4006_v10 = vpop.permute.xlu1 %4005 }
0x3186   :  { %5323 = vmatmul.mubr.msk.f32.vlgmr.msra.gmra.mrb[24].mxu0 %vm2811_vm15, %v3619_v4 }
0x3187   :  { %v5723_v7 = vpop.eup %5722  ;;  %5331 = vmatpush3.msra.mxu0 %v3930_v49  ;;  %5332 = vmatprep.mubr.msk.f32.mxu0 %vm5857_vm2, %v5858_v48 }
0x3188   :  { %v5725_v29 = vpop.eup %5724  ;;  %v3620_v50 = vmul.f32 %v5723_v7, %v5707_v23  ;;  %5340 = vmatprep.subr.mxu0 %v5858_v48  ;;  %v4397_v23 = vld [vmem:[%s6993_s8 + $0x10] sm:$0xff] }
0x3189   :  { %v3621_v46 = vmul.f32 %v5725_v29, %v6865_v26 }
0x318a   :  { %5328 = vmatmul.mubr.msk.f32.vlgmr.msra.gmra.mrb[36].mxu1 %vm2811_vm15, %v3620_v50 }
0x318b   :  { %5333 = vmatmul.mubr.msk.f32.vlgmr.msra.gmra.mrb[26].mxu0 %vm2811_vm15, %v3621_v46  ;;  %5336 = vmatpush3.msra.mxu1 %v4006_v10 }
0x318c   :  { %5337 = vmatprep.mubr.msk.f32.mxu1 %vm5857_vm2, %v5858_v48  ;;  %5345 = vmatprep.subr.mxu1 %v5858_v48 }
0x318d   :  { %5342 = vmatprep.mubr.msk.f32.mxu0 %vm5857_vm2, %v5858_v48 }
0x31b1   :  { %v3602_v44 = vpop.xlane.xlu0 %3601 }
0x31b2   :  { %5726 = vrcp.f32 %v3602_v44 }
0x31b5   :  { %v3608_v12 = vpop.xlane.xlu0 %3607 }
0x31b6   :  { %v3605_v11 = vpop.xlane.xlu1 %3604  ;;  %5728 = vrcp.f32 %v3608_v12 }
0x31b7   :  { %5730 = vrcp.f32 %v3605_v11 }
0x31b9   :  { %v4082_v25 = vpop.permute.xlu0 %4081 }
0x31ba   :  { %5341 = vmatpush3.msra.mxu0 %v4082_v25  ;;  %v4158_v43 = vpop.permute.xlu1 %4157 }
0x31bb   :  { %5350 = vmatprep.subr.mxu0 %v4234_v63 }
0x31bc   :  { %v5727_v16 = vpop.eup %5726 }
0x31bd   :  { %v3622_v17 = vmul.f32 %v5727_v16, %v5711_v59  ;;  %v4856_v59 = vld [vmem:[#allocation7] ss:$0 sm:$0xff] }
0x31bf   :  { %5338 = vmatmul.mubr.msk.f32.vlgmr.msra.gmra.mrb[38].mxu1 %vm2811_vm15, %v3622_v17 }
0x31c0   :  { %v5729_v42 = vpop.eup %5728  ;;  %5346 = vmatpush3.msra.mxu1 %v4158_v43  ;;  %5347 = vmatprep.mubr.msk.f32.mxu1 %vm5857_vm2, %v5858_v48  ;;  %vm4666_vm2 = vcmask 39936  }
0x31c1   :  { %v5731_v24 = vpop.eup %5730  ;;  %v3624_v32 = vmul.f32 %v5729_v42, %v5715_v28  ;;  %5534 = vmatprep.subr.bf16.mxu1 %v5533_v14 }
0x31c2   :  { %v3623_v41 = vmul.f32 %v5731_v24, %v5717_v0  ;;  %v4857_v0 = vld [vmem:[#allocation8] ss:$0 sm:$0xff] }
0x31c3   :  { %5348 = vmatmul.mubr.msk.f32.vlgmr.msra.gmra.mrb[40].mxu1 %vm2811_vm15, %v3624_v32  ;;  %v4718_v32 = vsel %vm94_vm0, 0.0, %v5855_v39 }
0x31c4   :  { %5343 = vmatmul.mubr.msk.f32.vlgmr.msra.gmra.mrb[28].mxu0 %vm2811_vm15, %v3623_v41  ;;  %5536 = vmatpush3.bf16.msra.mxu1 %v5533_v14  ;;  %v4729_v41 = vrot.slane %v4718_v32, %v5999_v3 }
0x31c5   :  { %5351 = vmatpush3.msra.mxu0 %v4234_v63  ;;  %5538 = vmatprep.subr.bf16.mxu1 %v5537_v27 }
0x31c6   :  { %5355 = vmatprep.subr.mxu0 %v4233_v52 }
0x31c8   :  { %5540 = vmatpush3.bf16.msra.mxu1 %v5537_v27 }
0x31f8   :  { %v3697_v6 = vpop.f32.mrb[22].mxu0 }
0x31f9   :  { %v5314_v48 = vpop.f32.mrb[23].mxu0 }
0x31fc   :  { %v3773_v19 = vpop.f32.mrb[34].mxu1 }
0x31fd   :  { %v5319_v53 = vpop.f32.mrb[35].mxu1 }
0x3259   :  { %v3849_v30 = vpop.f32.mrb[24].mxu0 }
0x325a   :  { %v5324_v31 = vpop.f32.mrb[25].mxu0  ;;  %5352 = vmatprep.mubr.msk.f32.mxu0 %vm2811_vm15, %v3849_v30 }
0x325d   :  { %v3925_v20 = vpop.f32.mrb[36].mxu1 }
0x325e   :  { %v4001_v26 = vpop.f32.mrb[26].mxu0  ;;  %v5329_v5 = vpop.f32.mrb[37].mxu1  ;;  %5353 = vmatmul.mubr.msk.f32.vlgmr.msra.gmra.mrb[30].mxu0 %vm2811_vm15, %v3925_v20 }
0x325f   :  { %v5334_v9 = vpop.f32.mrb[27].mxu0  ;;  %5357 = vmatprep.mubr.msk.f32.mxu0 %vm2811_vm15, %v3697_v6  ;;  %5356 = vmatpush3.msra.mxu0 %v4233_v52 }
0x3260   :  { %5360 = vmatprep.subr.mxu0 %v4397_v23 }
0x3266   :  { %5358 = vmatmul.mubr.msk.f32.vlgmr.msra.gmra.mrb[30].mxu0 %vm2811_vm15, %v3773_v19 }
0x3267   :  { %5362 = vmatprep.mubr.msk.f32.mxu0 %vm2811_vm15, %v4001_v26  ;;  %5361 = vmatpush3.msra.mxu0 %v4397_v23 }
0x3268   :  { %5365 = vmatprep.subr.mxu0 %v4481_v36 }
0x3292   :  { %v4077_v8 = vpop.f32.mrb[38].mxu1 }
0x3293   :  { %v5339_v18 = vpop.f32.mrb[39].mxu1  ;;  %5363 = vmatmul.mubr.msk.f32.vlgmr.msra.gmra.mrb[30].mxu0 %vm2811_vm15, %v4077_v8 }
0x3294   :  { %5366 = vmatpush3.msra.mxu0 %v4481_v36 }
0x3296   :  { %v4229_v55 = vpop.f32.mrb[40].mxu1 }
0x3297   :  { %v4153_v38 = vpop.f32.mrb[28].mxu0  ;;  %v5349_v40 = vpop.f32.mrb[41].mxu1 }
0x3298   :  { %v5344_v47 = vpop.f32.mrb[29].mxu0  ;;  %5367 = vmatprep.mubr.msk.f32.mxu0 %vm2811_vm15, %v4153_v38 }
0x329b   :  { %5368 = vmatmul.mubr.msk.f32.vlgmr.msra.gmra.mrb[30].mxu0 %vm2811_vm15, %v4229_v55 }
0x336e   :  { %v5369_v61 = vpop.f32.mrb[30].mxu0 }
0x336f   :  { %v4554_v54 = vpop.f32.mrb[31].mxu0  ;;  %v4573_v28 = vadd.f32 %v5369_v61, %v4856_v59 }
0x3370   :  { %v4572_v1 = vadd.f32 %v4856_v59, %v4554_v54 }
0x3372   :  { %5378 = vmatprep.mubr.msk.f32.mxu1 %vm240_vm3, %v4572_v1 }
0x3373   :  { %5379 = vmatmul.mubr.msk.f32.vlgmr.msra.gmra.mrb[42].mxu1 %vm240_vm3, %v4573_v28 }
0x3446   :  { %v5380_v33 = vpop.f32.mrb[42].mxu1 }
0x3447   :  { %v4663_v21 = vadd.f32 %v5380_v33, %v4857_v0  ;;  %v4657_v58 = vpop.f32.mrb[43].mxu1 }
0x3448   :  { %v4658_v60 = vadd.f32 %v4857_v0, %v4657_v58 }
0x3449   :  { %4668 = vst.msk [vmem:[%s6997_s12 + $0x8] sm:$0xff] %vm4666_vm2, %v4663_v21  ;;  %v4672_v56 = vsel %vm4666_vm2, %v4663_v21, -inf }
0x344a   :  { %4667 = vst.msk [vmem:[%s6997_s12] sm:$0xff] %vm4666_vm2, %v4658_v60  ;;  %4673 = vmax.xlane.f32.xlu1 %v4672_v56  ;;  %v4669_v62 = vsel %vm4666_vm2, %v4658_v60, -inf }
0x344b   :  { %4670 = vmax.xlane.f32.xlu0 %v4669_v62 }
0x345b   :  { %4706 = vbcast.lane.b32.xlu1 %v4704_v35, 256 }
0x3461   :  { %4699 = vbcast.lane.b32.xlu0 %v4697_v57, 256 }
0x34d7   :  { %v4674_v4 = vpop.xlane.xlu1 %4673 }
0x34d8   :  { %v4676_v49 = vsub.f32 %v4663_v21, %v4674_v4  ;;  %v4671_v7 = vpop.xlane.xlu0 %4670 }
0x34d9   :  { %v4675_v29 = vsub.f32 %v4658_v60, %v4671_v7 }
0x34da   :  { %v4679_v50 = vmul.f32 1.442695, %v4676_v49 }
0x34db   :  { %v4677_v46 = vmul.f32 1.442695, %v4675_v29  ;;  %v4707_v10 = vpop.permute.xlu1 %4706 }
0x34dc   :  { %5732 = vpow2.f32 %v4679_v50  ;;  %vm4709_vm3 = vcmp.eq.s32.totalorder %v4707_v10, %v6066_v37  ;;  %v4700_v44 = vpop.permute.xlu0 %4699 }
0x34dd   :  { %5734 = vpow2.f32 %v4677_v46  ;;  %v4711_v12 = vsel %vm4709_vm3, %v4663_v21, 0.0  ;;  %vm4708_vm6 = vcmp.eq.s32.totalorder %v4700_v44, %v6066_v37  ;;  %v4722_v37 = vrot.slane %v4718_v32, %v5996_v2 }
0x34de   :  { %v4715_v11 = vsel %vm4666_vm2, %v4711_v12, 0.0  ;;  %v4710_v25 = vsel %vm4708_vm6, %v4658_v60, 0.0 }
0x34df   :  { %4716 = vadd.xlane.f32.xlu0 %v4715_v11  ;;  %v4712_v16 = vsel %vm4666_vm2, %v4710_v25, 0.0 }
0x34e3   :  { %4713 = vadd.xlane.f32.xlu0 %v4712_v16 }
0x34e6   :  { %v5733_v17 = vpop.eup %5732 }
0x34e7   :  { %v5735_v43 = vpop.eup %5734  ;;  %v4684_v42 = vsel %vm4666_vm2, %v5733_v17, 0.0 }
0x34e8   :  { %4685 = vadd.xlane.f32.xlu1 %v4684_v42  ;;  %v4681_v24 = vsel %vm4666_vm2, %v5735_v43, 0.0 }
0x34e9   :  { %4682 = vadd.xlane.f32.xlu0 %v4681_v24 }
0x34f9   :  { %4724 = vbcast.lane.b32.xlu1 %v4722_v37, 256 }
0x34ff   :  { %4731 = vbcast.lane.b32.xlu0 %v4729_v41, 256 }
0x356c   :  { %v4717_v63 = vpop.xlane.xlu0 %4716 }
0x3570   :  { %v4714_v52 = vpop.xlane.xlu0 %4713 }
0x3575   :  { %v4686_v6 = vpop.xlane.xlu1 %4685 }
0x3576   :  { %5736 = vlog2.f32 %v4686_v6  ;;  %v4683_v48 = vpop.xlane.xlu0 %4682 }
0x3577   :  { %5738 = vlog2.f32 %v4683_v48 }
0x3579   :  { %v4725_v19 = vpop.permute.xlu1 %4724 }
0x357a   :  { %v4750_v53 = vsel %vm4737_vm7, %v4725_v19, 0.0  ;;  %v4732_v22 = vpop.permute.xlu0 %4731 }
0x357b   :  { %v4751_v45 = vsel %vm4737_vm7, %v4732_v22, 0.0 }
0x357c   :  { %v4752_v39 = vadd.f32 %v4751_v45, %v4750_v53 }
0x357e   :  { %4753 = vadd.xlane.f32.xlu0 %v4752_v39 }
0x3580   :  { %v5737_v2 = vpop.eup %5736 }
0x3581   :  { %v5739_v13 = vpop.eup %5738  ;;  %v4690_v14 = vmul.f32 0.6931472, %v5737_v2 }
0x3582   :  { %v4688_v3 = vmul.f32 0.6931472, %v5739_v13 }
0x3583   :  { %v4692_v30 = vadd.f32 %v4690_v14, %v4674_v4 }
0x3584   :  { %v4691_v31 = vadd.f32 %v4688_v3, %v4671_v7 }
0x3585   :  { %v4734_v20 = vsub.f32 %v4692_v30, %v4717_v63 }
0x3586   :  { %v4733_v23 = vsub.f32 %v4691_v31, %v4714_v52 }
0x3587   :  { %v4736_v26 = vmul.f32 %v4734_v20, %v4732_v22 }
0x3588   :  { %v4735_v5 = vmul.f32 %v4733_v23, %v4725_v19 }
0x3589   :  { %v4739_v9 = vsel %vm4737_vm7, %v4736_v26, 0.0 }
0x358a   :  { %v4738_v36 = vsel %vm4737_vm7, %v4735_v5, 0.0 }
0x358b   :  { %v4740_v8 = vadd.f32 %v4739_v9, %v4738_v36 }
0x358d   :  { %4741 = vadd.xlane.f32.xlu1 %v4740_v8 }
0x360b   :  { %v4754_v18 = vpop.xlane.xlu0 %4753 }
0x360c   :  { %v4755_v55 = vrot.slane %v4754_v18, 4 }
0x360e   :  { %v4756_v38 = vadd.f32 %v4755_v55, %v4754_v18 }
0x3610   :  { %v4757_v40 = vrot.slane %v4756_v38, 2 }
0x3612   :  { %v4758_v27 = vadd.f32 %v4757_v40, %v4756_v38 }
0x3614   :  { %v4759_v54 = vrot.slane %v4758_v27, 1 }
0x3616   :  { %v4760_v0 = vadd.f32 %v4759_v54, %v4758_v27 }
0x361a   :  { %v4742_v47 = vpop.xlane.xlu1 %4741 }
0x361b   :  { %v4743_v51 = vrot.slane %v4742_v47, 4 }
0x361d   :  { %v4744_v15 = vadd.f32 %v4743_v51, %v4742_v47 }
0x361f   :  { %v4745_v59 = vrot.slane %v4744_v15, 2 }
0x3621   :  { %v4746_v61 = vadd.f32 %v4745_v59, %v4744_v15 }
0x3623   :  { %v4747_v1 = vrot.slane %v4746_v61, 1 }
0x3625   :  { %v4748_v28 = vadd.f32 %v4747_v1, %v4746_v61 }
0x3627   :  { %5547 = vpush %v4748_v28 }
0x3628   :  { %5549 = vpush %v4760_v0 }
0x3658   :  { %s5548_s1 = spop %5547 }
0x3659   :  { %s5550_s12 = spop %5549 }
0x365a   :  { %s4762_s28 = smax.f32 %s5866_s6, %s5550_s12 }
0x365b   :  { %v4763_v33 = vstv %s4762_s28 }
0x365c   :  { %5740 = vrcp.f32 %v4763_v33 }
0x3666   :  { %v5741_v21 = vpop.eup %5740 }
0x3667   :  { %5551 = vpush %v5741_v21 }
0x3698   :  { %s5552_s26 = spop %5551 }
0x3699   :  { %s4766_s16 = smul.f32 %s5552_s26, %s5548_s1 }
0x369b   :  { %4768 = sst [smem:[#allocation10]] %s4766_s16 }
0x369c   :  { %5840 = shalt.err (!%p5837_p6)
}
0x369d   :  { %s5867_s24 = smov [#allocation10]  }
0x369e   :  { %4778 = dma.smem_to_hbm %s5867_s24, 16, %s6998_s13, [#allocation4]  }
0x369f   :  { %5847 = dma.done.wait [#allocation4], 16  }
0x36a0   :  { %5848 = vsyncadd [#allocation4], 4294967280 }
0x36a1   :  { %4784 = sfence }
0x36a2   :  { %4785 = vsyncpa [#allocation3], 1 }
0x36a3   :  { %4786 = vsyncpa [#allocation6], 1 }
0x36a4   :  { %4787 = vsyncpa [#allocation9], 1 }
0x36a5   :  { %4788 = vsyncpa [#allocation4], 1 }

</bundles_post_ra>
